<compile_context>
chip_gen: v7x
topology: tpu7x:2x2x1
jax: 0.10.0
libtpu: 0.0.40
codegen_flags: <defaults>
</compile_context>

<pallas_src>
import functools

import jax
import jax.numpy as jnp
import numpy as np
from jax import lax
from jax.experimental import pallas as pl
from jax.experimental.pallas import tpu as pltpu

# ----------------------------- model constants ------------------------------
X_CHANNEL = 3
X_DIM = 40            # module uses 200; any multiple of 4 works (40 exercises padded + multi-tile M)
BATCH = 4
H_DIM = 32
NF = 8                # CONV_NUM_FEATURE_MAP
K = 4                 # CONV_KERNEL_SIZE
S = 2                 # CONV_STRIDE
P = 1                 # CONV_PADDING
H_DIM2 = 2 * NF * (X_DIM // (S * S)) ** 2
BN_EPS = 1e-5

TM_CAP = 1024                      # lane-tile cap (review: 1024-2048 ~ 86% of HBM roofline)
VMEM_LIMIT = 32 * 1024 * 1024      # explicit scoped-VMEM budget (v5e default is only 16 MiB)


def _round_up(x, k):
    return (x + k - 1) // k * k


def _tile_m(m):
    """Pick a lane-tile size (multiple of 128, <= TM_CAP) and the padded M.

    Prefers an exact 128-multiple divisor >= 512 (no padding); otherwise pads M up
    to a TM_CAP multiple so tiling always engages (never one giant block)."""
    m128 = _round_up(m, 128)
    if m128 <= TM_CAP:
        return m128, m128
    f = m128 // 128
    for k in range(TM_CAP // 128, 3, -1):
        if f % k == 0:
            return k * 128, m128
    return TM_CAP, _round_up(m128, TM_CAP)


def _apply_act(y, act):
    if act == "leaky":
        return jnp.where(y >= 0, y, 0.2 * y)
    if act == "relu":
        return jnp.maximum(y, 0.0)
    if act == "sigmoid":
        return jax.nn.sigmoid(y)
    return y


# ------------------------------ Pallas kernels -------------------------------
def _mm_act_kernel(w_ref, x_ref, o_ref, *, act):
    # (C_out, Kd) @ (Kd, TM) -> lane-dense (C_out, TM) tile, fused activation.
    y = jnp.dot(w_ref[...], x_ref[...], preferred_element_type=jnp.float32)
    o_ref[...] = _apply_act(y, act).astype(o_ref.dtype)


def pallas_mm_act(w, cols, act):
    """bf16 conv-as-matmul + activation, tiled over M (parallel -> megacore-shardable)."""
    c_out, kd = w.shape
    m = cols.shape[1]
    tm, m_pad = _tile_m(m)
    if m_pad != m:
        cols = jnp.pad(cols, ((0, 0), (0, m_pad - m)))
    out = pl.pallas_call(
        functools.partial(_mm_act_kernel, act=act),
        out_shape=jax.ShapeDtypeStruct((c_out, m_pad), jnp.bfloat16),
        grid=(m_pad // tm,),
        in_specs=[
            pl.BlockSpec((c_out, kd), lambda i: (0, 0)),      # weight resident
            pl.BlockSpec((kd, tm), lambda i: (0, i)),         # cols tiled over M
        ],
        out_specs=pl.BlockSpec((c_out, tm), lambda i: (0, i)),
        compiler_params=pltpu.CompilerParams(
            dimension_semantics=("parallel",), vmem_limit_bytes=VMEM_LIMIT),
    )(w, cols)
    return out[:, :m] if m_pad != m else out


def _mm_bn_act_kernel(w_ref, x_ref, g_ref, b_ref, o_ref,
                      raw_ref, sum_ref, ssq_ref, scale_ref, shift_ref, *, act, count):
    """Fused (phase-grouped) conv-matmul + training BatchNorm + activation.

    grid = (2, n_tiles):
      pass 0: per M-tile matmul for every phase group, stash raw f32 y in VMEM
              scratch, accumulate per-channel sum / sum-of-squares.
      pass 1: compute per-channel scale/shift once, then per M-tile normalize +
              activate + cast bf16 and write the lane-dense output tile (epilogue
              is pipelined against the previous tile's HBM writeback).
    """
    p = pl.program_id(0)
    i = pl.program_id(1)
    groups = w_ref.shape[0]
    tm = o_ref.shape[2]
    off = pl.multiple_of(i * tm, 128)

    @pl.when((p == 0) & (i == 0))
    def _():
        sum_ref[...] = jnp.zeros_like(sum_ref)
        ssq_ref[...] = jnp.zeros_like(ssq_ref)

    @pl.when(p == 0)
    def _():
        x = x_ref[...]
        for g in range(groups):                       # static unroll over phase groups
            y = jnp.dot(w_ref[g], x, preferred_element_type=jnp.float32)
            sum_ref[...] += jnp.sum(y, axis=1, keepdims=True)
            ssq_ref[...] += jnp.sum(y * y, axis=1, keepdims=True)
            raw_ref[g, :, pl.ds(off, tm)] = y

    @pl.when((p == 1) & (i == 0))
    def _():
        inv = 1.0 / count
        mean = sum_ref[...] * inv
        var = ssq_ref[...] * inv - mean * mean        # biased var (training-mode BN)
        sc = lax.rsqrt(var + BN_EPS) * g_ref[...]
        scale_ref[...] = sc
        shift_ref[...] = b_ref[...] - mean * sc

    @pl.when(p == 1)
    def _():
        y = raw_ref[:, :, pl.ds(off, tm)]             # (groups, c_out, tm) f32
        o_ref[...] = _apply_act(y * scale_ref[...] + shift_ref[...],
                                act).astype(o_ref.dtype)


def pallas_mm_bn_act(w, cols, gamma, beta, act, count):
    """w: (groups, C_out, Kd) bf16, cols: (Kd, M) bf16 -> bf16 (groups, C_out, M).

    `count` is the true BatchNorm element count per channel (groups * true M); the
    zero-padded M columns contribute nothing to the f32 sums, so stats stay exact."""
    groups, c_out, kd = w.shape
    m = cols.shape[1]
    tm, m_pad = _tile_m(m)
    if m_pad != m:
        cols = jnp.pad(cols, ((0, 0), (0, m_pad - m)))
    n_tiles = m_pad // tm
    out = pl.pallas_call(
        functools.partial(_mm_bn_act_kernel, act=act, count=float(count)),
        out_shape=jax.ShapeDtypeStruct((groups, c_out, m_pad), jnp.bfloat16),
        grid=(2, n_tiles),
        in_specs=[
            pl.BlockSpec((groups, c_out, kd), lambda p, i: (0, 0, 0)),   # weights resident
            # cols tile i in pass 0; stay on the last tile in pass 1 (no re-fetch)
            pl.BlockSpec((kd, tm),
                         lambda p, i: (0, i * (1 - p) + (n_tiles - 1) * p)),
            pl.BlockSpec((c_out, 1), lambda p, i: (0, 0)),               # gamma resident
            pl.BlockSpec((c_out, 1), lambda p, i: (0, 0)),               # beta resident
        ],
        # pass 0 parks on block 0 (never written / never flushed); pass 1 visits
        # every tile once so each bf16 tile is written back exactly once.
        out_specs=pl.BlockSpec((groups, c_out, tm), lambda p, i: (0, 0, i * p)),
        scratch_shapes=[
            pltpu.VMEM((groups, c_out, m_pad), jnp.float32),   # raw pre-BN stash
            pltpu.VMEM((c_out, 1), jnp.float32),               # sum
            pltpu.VMEM((c_out, 1), jnp.float32),               # sum of squares
            pltpu.VMEM((c_out, 1), jnp.float32),               # scale
            pltpu.VMEM((c_out, 1), jnp.float32),               # shift
        ],
        compiler_params=pltpu.CompilerParams(
            dimension_semantics=("arbitrary", "arbitrary"),
            vmem_limit_bytes=VMEM_LIMIT),
    )(w, cols, gamma, beta)
    return out[:, :, :m] if m_pad != m else out


def _mlp2_kernel(h_ref, w1_ref, b1_ref, w2_ref, b2_ref, o_ref):
    # z = h @ Wz + bz ; d = leaky(z @ Wd1 + bd1)   (fused encoder z + decoder1)
    z = jnp.dot(h_ref[...], w1_ref[...], preferred_element_type=jnp.float32) + b1_ref[...]
    d = jnp.dot(z.astype(jnp.bfloat16), w2_ref[...],          # bf16 x bf16, f32 acc
                preferred_element_type=jnp.float32) + b2_ref[...]
    o_ref[...] = _apply_act(d, "leaky").astype(o_ref.dtype)


def pallas_mlp2(h, w1, b1, w2, b2):
    n, kd = h.shape
    h1 = w1.shape[1]
    h2d = w2.shape[1]
    return pl.pallas_call(
        _mlp2_kernel,
        out_shape=jax.ShapeDtypeStruct((n, h2d), jnp.bfloat16),
        grid=(1,),
        in_specs=[
            pl.BlockSpec((n, kd), lambda i: (0, 0)),
            pl.BlockSpec((kd, h1), lambda i: (0, 0)),
            pl.BlockSpec((1, h1), lambda i: (0, 0)),
            pl.BlockSpec((h1, h2d), lambda i: (0, 0)),
            pl.BlockSpec((1, h2d), lambda i: (0, 0)),
        ],
        out_specs=pl.BlockSpec((n, h2d), lambda i: (0, 0)),
        compiler_params=pltpu.CompilerParams(
            dimension_semantics=("arbitrary",), vmem_limit_bytes=VMEM_LIMIT),
    )(h, w1, b1, w2, b2)


# --------------------------- plain-JAX glue helpers ---------------------------
def im2col_T(x_cnhw, k, s, p):
    """Patch extraction on a CNHW tensor -> ((C*k*k, N*OH*OW), OH, OW).

    Row order (c, ki, kj) matches PyTorch conv-weight flattening; column order is
    (n, oh, ow).  Output dtype follows the (bf16) input.
    TODO(synk): move in-kernel (shifted pl.ds reads of a resident padded input)."""
    C, N, H, W = x_cnhw.shape
    xp = jnp.pad(x_cnhw, ((0, 0), (0, 0), (p, p), (p, p)))
    OH = (H + 2 * p - k) // s + 1
    OW = (W + 2 * p - k) // s + 1
    taps = []
    for ki in range(k):
        for kj in range(k):
            taps.append(xp[:, :, ki:ki + s * (OH - 1) + 1:s,
                           kj:kj + s * (OW - 1) + 1:s])       # (C, N, OH, OW)
    cols = jnp.stack(taps, axis=1)                            # (C, k*k, N, OH, OW)
    return cols.reshape(C * k * k, N * OH * OW), OH, OW


def _tconv_subpixel_weight(wt):
    """ConvTranspose2d weight (C_in, C_out, 4, 4) [stride 2, pad 1] ->
    (4, C_out, C_in*9): one 3x3-patch conv weight per output-parity phase (a, b),
    acting on the NON-upsampled input.  Phase order: row parity a major, col parity b."""
    c_in, c_out = wt.shape[0], wt.shape[1]
    wf = jnp.transpose(wt, (1, 0, 2, 3))[:, :, ::-1, ::-1]    # flipped conv kernel (O,I,4,4)
    taps = {0: ((0, 0), (1, 2)),    # even output row/col: (patch index, flipped-kernel tap)
            1: ((1, 1), (2, 3))}    # odd output row/col
    w = jnp.zeros((2, 2, c_out, c_in, 3, 3), wt.dtype)
    for a in (0, 1):
        for b in (0, 1):
            for pr, u in taps[a]:
                for pc, v in taps[b]:
                    w = w.at[a, b, :, :, pr, pc].set(wf[:, :, u, v])
    return w.reshape(4, c_out, c_in * 9)


def _pixel_shuffle(y, n, h, w):
    """(4, C, n*h*w) phase-stacked tconv output -> (C, n, 2h, 2w) CNHW."""
    c = y.shape[1]
    y = y.reshape(2, 2, c, n, h, w)                 # (a, b, c, n, i, j)
    y = jnp.transpose(y, (2, 3, 4, 0, 5, 1))        # (c, n, i, a, j, b)
    return y.reshape(c, n, 2 * h, 2 * w)


# ----------------------------- parameters ------------------------------------
def init_params(key):
    ks = jax.random.split(key, 12)
    n = lambda k, shape, sc=0.1: sc * jax.random.normal(k, shape, jnp.float32)
    return {
        "conv1_w": n(ks[0], (NF, X_CHANNEL, K, K)),          # Conv2d(3->8)
        "conv2_w": n(ks[1], (2 * NF, NF, K, K)),             # Conv2d(8->16)
        "bn_e_g": 1.0 + n(ks[2], (2 * NF,)),
        "bn_e_b": n(ks[3], (2 * NF,)),
        "z_w": n(ks[4], (H_DIM, H_DIM2)),                    # Linear(h_dim2->h_dim)
        "z_b": n(ks[5], (H_DIM,)),
        "d1_w": n(ks[6], (H_DIM2, H_DIM)),                   # Linear(h_dim->h_dim2)
        "d1_b": n(ks[7], (H_DIM2,)),
        "t1_w": n(ks[8], (2 * NF, NF, K, K)),                # ConvT(16->8)
        "bn_d1_g": 1.0 + n(ks[9], (NF,)),
        "bn_d1_b": n(ks[9], (NF,), 0.05),
        "t2_w": n(ks[10], (NF, X_CHANNEL, K, K)),            # ConvT(8->3)
        "bn_d2_g": 1.0 + n(ks[11], (X_CHANNEL,)),
        "bn_d2_b": n(ks[11], (X_CHANNEL,), 0.05),
    }


def preprocess_params(prm):
    """One-time (hoisted) weight transforms: flatten / sub-pixel decompose / bf16 cast."""
    bf = jnp.bfloat16
    return {
        "w1f": prm["conv1_w"].reshape(NF, -1).astype(bf),               # (8, 48)
        "w2f": prm["conv2_w"].reshape(1, 2 * NF, -1).astype(bf),        # (1, 16, 128)
        "bn_e_g": prm["bn_e_g"][:, None],
        "bn_e_b": prm["bn_e_b"][:, None],
        "zwT": prm["z_w"].T.astype(bf),                                 # (h_dim2, 32)
        "zb": prm["z_b"][None, :],
        "d1wT": prm["d1_w"].T.astype(bf),                               # (32, h_dim2)
        "d1b": prm["d1_b"][None, :],
        "t1s": _tconv_subpixel_weight(prm["t1_w"]).astype(bf),          # (4, 8, 144)
        "bn_d1_g": prm["bn_d1_g"][:, None],
        "bn_d1_b": prm["bn_d1_b"][:, None],
        "t2s": _tconv_subpixel_weight(prm["t2_w"]).astype(bf),          # (4, 3, 72)
        "bn_d2_g": prm["bn_d2_g"][:, None],
        "bn_d2_b": prm["bn_d2_b"][:, None],
    }


# ------------------------------ forward pass ----------------------------------
def forward(x, pp):
    """AE_single.forward.  Activations travel in the transposed (C, N*H*W) bf16 layout;
    NCHW ordering is produced only where the module's .view() semantics require."""
    bf = jnp.bfloat16
    n = x.shape[0]
    x = x.reshape(n, X_CHANNEL, X_DIM, X_DIM)
    xc = jnp.transpose(x, (1, 0, 2, 3)).astype(bf)                 # CNHW

    # encoder: Conv2d(3->8, k4 s2 p1) + LeakyReLU(0.2)
    cols, oh1, ow1 = im2col_T(xc, K, S, P)
    h1 = pallas_mm_act(pp["w1f"], cols, "leaky").reshape(NF, n, oh1, ow1)

    # encoder: Conv2d(8->16) + BatchNorm2d(16) + LeakyReLU(0.2)   (one fused kernel)
    cols, oh2, ow2 = im2col_T(h1, K, S, P)
    m2 = n * oh2 * ow2
    h2 = pallas_mm_bn_act(pp["w2f"], cols, pp["bn_e_g"], pp["bn_e_b"],
                          "leaky", count=m2)[0]                    # (16, m2) bf16

    # flatten in NCHW order, fused z-Linear + decoder1-Linear + LeakyReLU
    hf = h2.reshape(2 * NF, n, oh2, ow2).transpose(1, 0, 2, 3).reshape(n, -1)
    d = pallas_mlp2(hf, pp["zwT"], pp["zb"], pp["d1wT"], pp["d1b"])    # (n, h_dim2) bf16

    # decoder2: ConvTranspose2d(16->8) + BN(8) + ReLU   (sub-pixel decomposition)
    dc = d.reshape(n, 2 * NF, oh2, ow2).transpose(1, 0, 2, 3)      # CNHW bf16
    cols, _, _ = im2col_T(dc, 3, 1, 1)
    h3s = pallas_mm_bn_act(pp["t1s"], cols, pp["bn_d1_g"], pp["bn_d1_b"],
                           "relu", count=4 * m2)
    h3 = _pixel_shuffle(h3s, n, oh2, ow2)                          # (8, n, 2*oh2, 2*ow2)

    # decoder2: ConvTranspose2d(8->3) + BN(3) + Sigmoid  (sub-pixel decomposition)
    th, tw = 2 * oh2, 2 * ow2
    cols, _, _ = im2col_T(h3, 3, 1, 1)
    rs = pallas_mm_bn_act(pp["t2s"], cols, pp["bn_d2_g"], pp["bn_d2_b"],
                          "sigmoid", count=4 * n * th * tw)
    r = _pixel_shuffle(rs, n, th, tw)                              # (3, n, X_DIM, X_DIM)

    # x_recon.view(n, -1) in NCHW order
    return jnp.transpose(r, (1, 0, 2, 3)).reshape(n, -1).astype(jnp.float32)


# ----------------- pure-XLA f32 golden reference (correctness) -----------------
def _bn_train(y, g, b):
    mean = jnp.mean(y, axis=(0, 2, 3), keepdims=True)
    var = jnp.var(y, axis=(0, 2, 3), keepdims=True)                # biased (training BN)
    return (y - mean) * lax.rsqrt(var + BN_EPS) * g.reshape(1, -1, 1, 1) + b.reshape(1, -1, 1, 1)


def golden_forward(x, prm):
    n = x.shape[0]
    dn = ("NCHW", "OIHW", "NCHW")
    h = x.reshape(n, X_CHANNEL, X_DIM, X_DIM)
    h = lax.conv_general_dilated(h, prm["conv1_w"], (S, S), [(P, P), (P, P)],
                                 dimension_numbers=dn)
    h = jnp.where(h >= 0, h, 0.2 * h)
    h = lax.conv_general_dilated(h, prm["conv2_w"], (S, S), [(P, P), (P, P)],
                                 dimension_numbers=dn)
    h = _bn_train(h, prm["bn_e_g"], prm["bn_e_b"])
    h = jnp.where(h >= 0, h, 0.2 * h)
    z = h.reshape(n, -1) @ prm["z_w"].T + prm["z_b"]
    d = z @ prm["d1_w"].T + prm["d1_b"]
    d = jnp.where(d >= 0, d, 0.2 * d)
    d = d.reshape(n, 2 * NF, X_DIM // 4, X_DIM // 4)

    def tconv(u, wt):   # ConvTranspose2d(k4,s2,p1) == input-dilated conv with flipped kernel
        wf = jnp.transpose(wt, (1, 0, 2, 3))[:, :, ::-1, ::-1]
        return lax.conv_general_dilated(u, wf, (1, 1), [(K - 1 - P,) * 2] * 2,
                                        lhs_dilation=(S, S), dimension_numbers=dn)

    t = tconv(d, prm["t1_w"])
    t = jnp.maximum(_bn_train(t, prm["bn_d1_g"], prm["bn_d1_b"]), 0.0)
    t = tconv(t, prm["t2_w"])
    t = jax.nn.sigmoid(_bn_train(t, prm["bn_d2_g"], prm["bn_d2_b"]))
    return t.reshape(n, -1)


# ----------------------------------- main -------------------------------------
if __name__ == "__main__":
    key = jax.random.PRNGKey(0)
    k_x, k_p = jax.random.split(key)
    prm = init_params(k_p)
    pp = preprocess_params(prm)

    # input: NCHW, batch=4, 3 channels, 40x40 spatial (exercises multi-tile + padded-M BN)
    x = jax.random.normal(k_x, (BATCH, X_CHANNEL, X_DIM, X_DIM), jnp.float32)

    out = jax.block_until_ready(jax.jit(forward)(x, pp))
    ref = jax.block_until_ready(jax.jit(golden_forward)(x, prm))

    assert out.shape == (BATCH, X_CHANNEL * X_DIM * X_DIM), out.shape
    out_np = np.asarray(out)
    assert np.all(np.isfinite(out_np))
    np.testing.assert_allclose(out_np, np.asarray(ref), atol=5e-2, rtol=5e-2)

    print("KERNEL_OK")
</pallas_src>

<mosaic_0001>
module attributes {stable_mosaic.version = 11 : i64} {
  func.func @_mm_act_kernel(%arg0: i32, %arg1: memref<8x48xbf16, #tpu.memory_space<vmem>>, %arg2: memref<48x1024xbf16, #tpu.memory_space<vmem>>, %arg3: memref<8x1024xbf16, #tpu.memory_space<vmem>>) attributes {dimension_semantics = [#tpu.dimension_semantics<parallel>], iteration_bounds = array<i64: 2>, scalar_prefetch = 0 : i64, scratch_operands = 0 : i64, tpu.core_type = #tpu.core_type<tc>, window_params = [{pipeline_mode = #tpu.pipeline_mode<synchronous>, transform_indices = @transform_0, window_bounds = array<i64: 8, 48>}, {transform_indices = @transform_1, window_bounds = array<i64: 48, 1024>}, {transform_indices = @transform_2, window_bounds = array<i64: 8, 1024>}]} {
    %c0 = arith.constant 0 : index
    %c0_0 = arith.constant 0 : index
    %0 = vector.load %arg1[%c0, %c0_0] : memref<8x48xbf16, #tpu.memory_space<vmem>>, vector<8x48xbf16>
    %c0_1 = arith.constant 0 : index
    %c0_2 = arith.constant 0 : index
    %1 = vector.load %arg2[%c0_1, %c0_2] : memref<48x1024xbf16, #tpu.memory_space<vmem>>, vector<48x1024xbf16>
    %cst = arith.constant dense<0.000000e+00> : vector<8x1024xf32>
    %2 = tpu.matmul %0, %1, %cst {dimension_numbers = #tpu.dot_dimension_numbers<[1], [0], [0], [1], [0, 0, 1, 1], [], []>} : vector<8x48xbf16>, vector<48x1024xbf16>, vector<8x1024xf32> -> vector<8x1024xf32>
    %cst_3 = arith.constant 0.000000e+00 : f32
    %3 = vector.broadcast %cst_3 : f32 to vector<8x1024xf32>
    %4 = arith.cmpf oge, %2, %3 : vector<8x1024xf32>
    %cst_4 = arith.constant 2.000000e-01 : f32
    %5 = vector.broadcast %cst_4 : f32 to vector<8x1024xf32>
    %6 = arith.mulf %5, %2 : vector<8x1024xf32>
    %7 = arith.select %4, %2, %6 : vector<8x1024xi1>, vector<8x1024xf32>
    %8 = arith.truncf %7 : vector<8x1024xf32> to vector<8x1024xbf16>
    %c0_5 = arith.constant 0 : index
    %c0_6 = arith.constant 0 : index
    %9 = vector.load %arg3[%c0_5, %c0_6] : memref<8x1024xbf16, #tpu.memory_space<vmem>>, vector<8x1024xbf16>
    tpu.vector_store %arg3[%c0_5, %c0_6], %8 {strides = array<i32>} : memref<8x1024xbf16, #tpu.memory_space<vmem>>, vector<8x1024xbf16>,
    return
  }
  func.func @transform_0(%arg0: i32) -> (i32, i32) {
    %c0_i32 = arith.constant 0 : i32
    %c0_i32_0 = arith.constant 0 : i32
    %c0_i32_1 = arith.constant 0 : i32
    return %c0_i32, %c0_i32_0 : i32, i32
  }
  func.func @transform_1(%arg0: i32) -> (i32, i32) {
    %c0_i32 = arith.constant 0 : i32
    %c0_i32_0 = arith.constant 0 : i32
    return %c0_i32, %arg0 : i32, i32
  }
  func.func @transform_2(%arg0: i32) -> (i32, i32) {
    %c0_i32 = arith.constant 0 : i32
    %c0_i32_0 = arith.constant 0 : i32
    return %c0_i32, %arg0 : i32, i32
  }
}

module attributes {stable_mosaic.version = 11 : i64} {
  func.func @_mm_bn_act_kernel(%arg0: i32, %arg1: i32, %arg2: memref<1x16x128xbf16, #tpu.memory_space<vmem>>, %arg3: memref<128x512xbf16, #tpu.memory_space<vmem>>, %arg4: memref<16x1xf32, #tpu.memory_space<vmem>>, %arg5: memref<16x1xf32, #tpu.memory_space<vmem>>, %arg6: memref<1x16x512xbf16, #tpu.memory_space<vmem>>, %arg7: memref<1x16x512xf32, #tpu.memory_space<vmem>>, %arg8: memref<16x1xf32, #tpu.memory_space<vmem>>, %arg9: memref<16x1xf32, #tpu.memory_space<vmem>>, %arg10: memref<16x1xf32, #tpu.memory_space<vmem>>, %arg11: memref<16x1xf32, #tpu.memory_space<vmem>>) attributes {dimension_semantics = [#tpu.dimension_semantics<arbitrary>, #tpu.dimension_semantics<arbitrary>], iteration_bounds = array<i64: 2, 1>, scalar_prefetch = 0 : i64, scratch_operands = 5 : i64, tpu.core_type = #tpu.core_type<tc>, window_params = [{pipeline_mode = #tpu.pipeline_mode<synchronous>, transform_indices = @transform_0, window_bounds = array<i64: 1, 16, 128>}, {transform_indices = @transform_1, window_bounds = array<i64: 128, 512>}, {pipeline_mode = #tpu.pipeline_mode<synchronous>, transform_indices = @transform_2, window_bounds = array<i64: 16, 1>}, {pipeline_mode = #tpu.pipeline_mode<synchronous>, transform_indices = @transform_3, window_bounds = array<i64: 16, 1>}, {transform_indices = @transform_4, window_bounds = array<i64: 1, 16, 512>}]} {
    %c512_i32 = arith.constant 512 : i32
    %0 = arith.muli %arg1, %c512_i32 : i32
    %1 = tpu.assume_multiple %0, 128 : i32
    %c0_i32 = arith.constant 0 : i32
    %2 = arith.cmpi eq, %arg0, %c0_i32 : i32
    %c0_i32_0 = arith.constant 0 : i32
    %3 = arith.cmpi eq, %arg1, %c0_i32_0 : i32
    %4 = arith.andi %2, %3 : i1
    %5 = arith.extui %4 : i1 to i32
    %c0_i32_1 = arith.constant 0 : i32
    %6 = arith.cmpi ne, %5, %c0_i32_1 : i32
    scf.if %6 {
      %cst = arith.constant 0.000000e+00 : f32
      %18 = vector.broadcast %cst : f32 to vector<16x1xf32>
      %c0 = arith.constant 0 : index
      %c0_8 = arith.constant 0 : index
      %19 = vector.load %arg8[%c0, %c0_8] : memref<16x1xf32, #tpu.memory_space<vmem>>, vector<16x1xf32>
      tpu.vector_store %arg8[%c0, %c0_8], %18 {strides = array<i32>} : memref<16x1xf32, #tpu.memory_space<vmem>>, vector<16x1xf32>,
      %cst_9 = arith.constant 0.000000e+00 : f32
      %20 = vector.broadcast %cst_9 : f32 to vector<16x1xf32>
      %c0_10 = arith.constant 0 : index
      %c0_11 = arith.constant 0 : index
      %21 = vector.load %arg9[%c0_10, %c0_11] : memref<16x1xf32, #tpu.memory_space<vmem>>, vector<16x1xf32>
      tpu.vector_store %arg9[%c0_10, %c0_11], %20 {strides = array<i32>} : memref<16x1xf32, #tpu.memory_space<vmem>>, vector<16x1xf32>,
    } else {
    }
    %c0_i32_2 = arith.constant 0 : i32
    %7 = arith.cmpi eq, %arg0, %c0_i32_2 : i32
    %8 = arith.extui %7 : i1 to i32
    %c0_i32_3 = arith.constant 0 : i32
    %9 = arith.cmpi ne, %8, %c0_i32_3 : i32
    scf.if %9 {
      %c0 = arith.constant 0 : index
      %c0_8 = arith.constant 0 : index
      %18 = vector.load %arg3[%c0, %c0_8] : memref<128x512xbf16, #tpu.memory_space<vmem>>, vector<128x512xbf16>
      %c0_9 = arith.constant 0 : index
      %c0_10 = arith.constant 0 : index
      %c0_11 = arith.constant 0 : index
      %19 = vector.load %arg2[%c0_9, %c0_10, %c0_11] : memref<1x16x128xbf16, #tpu.memory_space<vmem>>, vector<1x16x128xbf16>
      %20 = vector.shape_cast %19 : vector<1x16x128xbf16> to vector<16x128xbf16>
      %cst = arith.constant dense<0.000000e+00> : vector<16x512xf32>
      %21 = tpu.matmul %20, %18, %cst {dimension_numbers = #tpu.dot_dimension_numbers<[1], [0], [0], [1], [0, 0, 1, 1], [], []>} : vector<16x128xbf16>, vector<128x512xbf16>, vector<16x512xf32> -> vector<16x512xf32>
      %c0_12 = arith.constant 0 : index
      %c0_13 = arith.constant 0 : index
      %22 = vector.load %arg8[%c0_12, %c0_13] : memref<16x1xf32, #tpu.memory_space<vmem>>, vector<16x1xf32>
      %cst_14 = arith.constant dense<0.000000e+00> : vector<16xf32>
      %23 = vector.multi_reduction <add>, %21, %cst_14 [1] : vector<16x512xf32> to vector<16xf32>
      %24 = vector.shape_cast %23 : vector<16xf32> to vector<16x1xf32>
      %25 = arith.addf %22, %24 : vector<16x1xf32>
      %c0_15 = arith.constant 0 : index
      %c0_16 = arith.constant 0 : index
      %26 = vector.load %arg8[%c0_15, %c0_16] : memref<16x1xf32, #tpu.memory_space<vmem>>, vector<16x1xf32>
      tpu.vector_store %arg8[%c0_15, %c0_16], %25 {strides = array<i32>} : memref<16x1xf32, #tpu.memory_space<vmem>>, vector<16x1xf32>,
      %c0_17 = arith.constant 0 : index
      %c0_18 = arith.constant 0 : index
      %27 = vector.load %arg9[%c0_17, %c0_18] : memref<16x1xf32, #tpu.memory_space<vmem>>, vector<16x1xf32>
      %28 = arith.mulf %21, %21 : vector<16x512xf32>
      %cst_19 = arith.constant dense<0.000000e+00> : vector<16xf32>
      %29 = vector.multi_reduction <add>, %28, %cst_19 [1] : vector<16x512xf32> to vector<16xf32>
      %30 = vector.shape_cast %29 : vector<16xf32> to vector<16x1xf32>
      %31 = arith.addf %27, %30 : vector<16x1xf32>
      %c0_20 = arith.constant 0 : index
      %c0_21 = arith.constant 0 : index
      %32 = vector.load %arg9[%c0_20, %c0_21] : memref<16x1xf32, #tpu.memory_space<vmem>>, vector<16x1xf32>
      tpu.vector_store %arg9[%c0_20, %c0_21], %31 {strides = array<i32>} : memref<16x1xf32, #tpu.memory_space<vmem>>, vector<16x1xf32>,
      %c0_22 = arith.constant 0 : index
      %c0_23 = arith.constant 0 : index
      %33 = arith.index_cast %1 : i32 to index
      %34 = vector.load %arg7[%c0_22, %c0_23, %33] : memref<1x16x512xf32, #tpu.memory_space<vmem>>, vector<1x16x512xf32>
      %35 = vector.shape_cast %34 : vector<1x16x512xf32> to vector<16x512xf32>
      %36 = vector.shape_cast %21 : vector<16x512xf32> to vector<1x16x512xf32>
      tpu.vector_store %arg7[%c0_22, %c0_23, %33], %36 {strides = array<i32>} : memref<1x16x512xf32, #tpu.memory_space<vmem>>, vector<1x16x512xf32>,
    } else {
    }
    %c1_i32 = arith.constant 1 : i32
    %10 = arith.cmpi eq, %arg0, %c1_i32 : i32
    %c0_i32_4 = arith.constant 0 : i32
    %11 = arith.cmpi eq, %arg1, %c0_i32_4 : i32
    %12 = arith.andi %10, %11 : i1
    %13 = arith.extui %12 : i1 to i32
    %c0_i32_5 = arith.constant 0 : i32
    %14 = arith.cmpi ne, %13, %c0_i32_5 : i32
    scf.if %14 {
      %c0 = arith.constant 0 : index
      %c0_8 = arith.constant 0 : index
      %18 = vector.load %arg8[%c0, %c0_8] : memref<16x1xf32, #tpu.memory_space<vmem>>, vector<16x1xf32>
      %cst = arith.constant 2.500000e-03 : f32
      %19 = vector.broadcast %cst : f32 to vector<16x1xf32>
      %20 = arith.mulf %18, %19 : vector<16x1xf32>
      %c0_9 = arith.constant 0 : index
      %c0_10 = arith.constant 0 : index
      %21 = vector.load %arg9[%c0_9, %c0_10] : memref<16x1xf32, #tpu.memory_space<vmem>>, vector<16x1xf32>
      %cst_11 = arith.constant 2.500000e-03 : f32
      %22 = vector.broadcast %cst_11 : f32 to vector<16x1xf32>
      %23 = arith.mulf %21, %22 : vector<16x1xf32>
      %24 = arith.mulf %20, %20 : vector<16x1xf32>
      %25 = arith.subf %23, %24 : vector<16x1xf32>
      %cst_12 = arith.constant 9.99999974E-6 : f32
      %26 = vector.broadcast %cst_12 : f32 to vector<16x1xf32>
      %27 = arith.addf %25, %26 : vector<16x1xf32>
      %28 = math.rsqrt %27 : vector<16x1xf32>
      %c0_13 = arith.constant 0 : index
      %c0_14 = arith.constant 0 : index
      %29 = vector.load %arg4[%c0_13, %c0_14] : memref<16x1xf32, #tpu.memory_space<vmem>>, vector<16x1xf32>
      %30 = arith.mulf %28, %29 : vector<16x1xf32>
      %c0_15 = arith.constant 0 : index
      %c0_16 = arith.constant 0 : index
      %31 = vector.load %arg10[%c0_15, %c0_16] : memref<16x1xf32, #tpu.memory_space<vmem>>, vector<16x1xf32>
      tpu.vector_store %arg10[%c0_15, %c0_16], %30 {strides = array<i32>} : memref<16x1xf32, #tpu.memory_space<vmem>>, vector<16x1xf32>,
      %c0_17 = arith.constant 0 : index
      %c0_18 = arith.constant 0 : index
      %32 = vector.load %arg5[%c0_17, %c0_18] : memref<16x1xf32, #tpu.memory_space<vmem>>, vector<16x1xf32>
      %33 = arith.mulf %20, %30 : vector<16x1xf32>
      %34 = arith.subf %32, %33 : vector<16x1xf32>
      %c0_19 = arith.constant 0 : index
      %c0_20 = arith.constant 0 : index
      %35 = vector.load %arg11[%c0_19, %c0_20] : memref<16x1xf32, #tpu.memory_space<vmem>>, vector<16x1xf32>
      tpu.vector_store %arg11[%c0_19, %c0_20], %34 {strides = array<i32>} : memref<16x1xf32, #tpu.memory_space<vmem>>, vector<16x1xf32>,
    } else {
    }
    %c1_i32_6 = arith.constant 1 : i32
    %15 = arith.cmpi eq, %arg0, %c1_i32_6 : i32
    %16 = arith.extui %15 : i1 to i32
    %c0_i32_7 = arith.constant 0 : i32
    %17 = arith.cmpi ne, %16, %c0_i32_7 : i32
    scf.if %17 {
      %c0 = arith.constant 0 : index
      %c0_8 = arith.constant 0 : index
      %18 = arith.index_cast %1 : i32 to index
      %19 = vector.load %arg7[%c0, %c0_8, %18] : memref<1x16x512xf32, #tpu.memory_space<vmem>>, vector<1x16x512xf32>
      %c0_9 = arith.constant 0 : index
      %c0_10 = arith.constant 0 : index
      %20 = vector.load %arg10[%c0_9, %c0_10] : memref<16x1xf32, #tpu.memory_space<vmem>>, vector<16x1xf32>
      %21 = vector.shape_cast %20 : vector<16x1xf32> to vector<1x16x1xf32>
      %22 = vector.broadcast %21 : vector<1x16x1xf32> to vector<1x16x512xf32>
      %23 = arith.mulf %19, %22 : vector<1x16x512xf32>
      %c0_11 = arith.constant 0 : index
      %c0_12 = arith.constant 0 : index
      %24 = vector.load %arg11[%c0_11, %c0_12] : memref<16x1xf32, #tpu.memory_space<vmem>>, vector<16x1xf32>
      %25 = vector.shape_cast %24 : vector<16x1xf32> to vector<1x16x1xf32>
      %26 = vector.broadcast %25 : vector<1x16x1xf32> to vector<1x16x512xf32>
      %27 = arith.addf %23, %26 : vector<1x16x512xf32>
      %cst = arith.constant 0.000000e+00 : f32
      %28 = vector.broadcast %cst : f32 to vector<1x16x512xf32>
      %29 = arith.cmpf oge, %27, %28 : vector<1x16x512xf32>
      %cst_13 = arith.constant 2.000000e-01 : f32
      %30 = vector.broadcast %cst_13 : f32 to vector<1x16x512xf32>
      %31 = arith.mulf %30, %27 : vector<1x16x512xf32>
      %32 = arith.select %29, %27, %31 : vector<1x16x512xi1>, vector<1x16x512xf32>
      %33 = arith.truncf %32 : vector<1x16x512xf32> to vector<1x16x512xbf16>
      %c0_14 = arith.constant 0 : index
      %c0_15 = arith.constant 0 : index
      %c0_16 = arith.constant 0 : index
      %34 = vector.load %arg6[%c0_14, %c0_15, %c0_16] : memref<1x16x512xbf16, #tpu.memory_space<vmem>>, vector<1x16x512xbf16>
      tpu.vector_store %arg6[%c0_14, %c0_15, %c0_16], %33 {strides = array<i32>} : memref<1x16x512xbf16, #tpu.memory_space<vmem>>, vector<1x16x512xbf16>,
    } else {
    }
    return
  }
  func.func @transform_0(%arg0: i32, %arg1: i32) -> (i32, i32, i32) {
    %c0_i32 = arith.constant 0 : i32
    %c0_i32_0 = arith.constant 0 : i32
    %c0_i32_1 = arith.constant 0 : i32
    %c0_i32_2 = arith.constant 0 : i32
    return %c0_i32, %c0_i32_0, %c0_i32_1 : i32, i32, i32
  }
  func.func @transform_1(%arg0: i32, %arg1: i32) -> (i32, i32) {
    %c1_i32 = arith.constant 1 : i32
    %0 = arith.subi %c1_i32, %arg0 : i32
    %1 = arith.muli %arg1, %0 : i32
    %c0_i32 = arith.constant 0 : i32
    %2 = arith.muli %c0_i32, %arg0 : i32
    %3 = arith.addi %1, %2 : i32
    %c0_i32_0 = arith.constant 0 : i32
    %c0_i32_1 = arith.constant 0 : i32
    return %c0_i32_0, %3 : i32, i32
  }
  func.func @transform_2(%arg0: i32, %arg1: i32) -> (i32, i32) {
    %c0_i32 = arith.constant 0 : i32
    %c0_i32_0 = arith.constant 0 : i32
    %c0_i32_1 = arith.constant 0 : i32
    return %c0_i32, %c0_i32_0 : i32, i32
  }
  func.func @transform_3(%arg0: i32, %arg1: i32) -> (i32, i32) {
    %c0_i32 = arith.constant 0 : i32
    %c0_i32_0 = arith.constant 0 : i32
    %c0_i32_1 = arith.constant 0 : i32
    return %c0_i32, %c0_i32_0 : i32, i32
  }
  func.func @transform_4(%arg0: i32, %arg1: i32) -> (i32, i32, i32) {
    %0 = arith.muli %arg1, %arg0 : i32
    %c0_i32 = arith.constant 0 : i32
    %c0_i32_0 = arith.constant 0 : i32
    %c0_i32_1 = arith.constant 0 : i32
    return %c0_i32, %c0_i32_0, %0 : i32, i32, i32
  }
}

module attributes {stable_mosaic.version = 11 : i64} {
  func.func @_mlp2_kernel(%arg0: i32, %arg1: memref<4x1600xbf16, #tpu.memory_space<vmem>>, %arg2: memref<1600x32xbf16, #tpu.memory_space<vmem>>, %arg3: memref<1x32xf32, #tpu.memory_space<vmem>>, %arg4: memref<32x1600xbf16, #tpu.memory_space<vmem>>, %arg5: memref<1x1600xf32, #tpu.memory_space<vmem>>, %arg6: memref<4x1600xbf16, #tpu.memory_space<vmem>>) attributes {dimension_semantics = [#tpu.dimension_semantics<arbitrary>], iteration_bounds = array<i64: 1>, scalar_prefetch = 0 : i64, scratch_operands = 0 : i64, tpu.core_type = #tpu.core_type<tc>, window_params = [{pipeline_mode = #tpu.pipeline_mode<synchronous>, transform_indices = @transform_0, window_bounds = array<i64: 4, 1600>}, {pipeline_mode = #tpu.pipeline_mode<synchronous>, transform_indices = @transform_1, window_bounds = array<i64: 1600, 32>}, {pipeline_mode = #tpu.pipeline_mode<synchronous>, transform_indices = @transform_2, window_bounds = array<i64: 1, 32>}, {pipeline_mode = #tpu.pipeline_mode<synchronous>, transform_indices = @transform_3, window_bounds = array<i64: 32, 1600>}, {pipeline_mode = #tpu.pipeline_mode<synchronous>, transform_indices = @transform_4, window_bounds = array<i64: 1, 1600>}, {pipeline_mode = #tpu.pipeline_mode<synchronous>, transform_indices = @transform_5, window_bounds = array<i64: 4, 1600>}]} {
    %c0 = arith.constant 0 : index
    %c0_0 = arith.constant 0 : index
    %0 = vector.load %arg1[%c0, %c0_0] : memref<4x1600xbf16, #tpu.memory_space<vmem>>, vector<4x1600xbf16>
    %c0_1 = arith.constant 0 : index
    %c0_2 = arith.constant 0 : index
    %1 = vector.load %arg2[%c0_1, %c0_2] : memref<1600x32xbf16, #tpu.memory_space<vmem>>, vector<1600x32xbf16>
    %cst = arith.constant dense<0.000000e+00> : vector<4x32xf32>
    %2 = tpu.matmul %0, %1, %cst {dimension_numbers = #tpu.dot_dimension_numbers<[1], [0], [0], [1], [0, 0, 1, 1], [], []>} : vector<4x1600xbf16>, vector<1600x32xbf16>, vector<4x32xf32> -> vector<4x32xf32>
    %c0_3 = arith.constant 0 : index
    %c0_4 = arith.constant 0 : index
    %3 = vector.load %arg3[%c0_3, %c0_4] : memref<1x32xf32, #tpu.memory_space<vmem>>, vector<1x32xf32>
    %4 = vector.broadcast %3 : vector<1x32xf32> to vector<4x32xf32>
    %5 = arith.addf %2, %4 : vector<4x32xf32>
    %6 = arith.truncf %5 : vector<4x32xf32> to vector<4x32xbf16>
    %c0_5 = arith.constant 0 : index
    %c0_6 = arith.constant 0 : index
    %7 = vector.load %arg4[%c0_5, %c0_6] : memref<32x1600xbf16, #tpu.memory_space<vmem>>, vector<32x1600xbf16>
    %cst_7 = arith.constant dense<0.000000e+00> : vector<4x1600xf32>
    %8 = tpu.matmul %6, %7, %cst_7 {dimension_numbers = #tpu.dot_dimension_numbers<[1], [0], [0], [1], [0, 0, 1, 1], [], []>} : vector<4x32xbf16>, vector<32x1600xbf16>, vector<4x1600xf32> -> vector<4x1600xf32>
    %c0_8 = arith.constant 0 : index
    %c0_9 = arith.constant 0 : index
    %9 = vector.load %arg5[%c0_8, %c0_9] : memref<1x1600xf32, #tpu.memory_space<vmem>>, vector<1x1600xf32>
    %10 = vector.broadcast %9 : vector<1x1600xf32> to vector<4x1600xf32>
    %11 = arith.addf %8, %10 : vector<4x1600xf32>
    %cst_10 = arith.constant 0.000000e+00 : f32
    %12 = vector.broadcast %cst_10 : f32 to vector<4x1600xf32>
    %13 = arith.cmpf oge, %11, %12 : vector<4x1600xf32>
    %cst_11 = arith.constant 2.000000e-01 : f32
    %14 = vector.broadcast %cst_11 : f32 to vector<4x1600xf32>
    %15 = arith.mulf %14, %11 : vector<4x1600xf32>
    %16 = arith.select %13, %11, %15 : vector<4x1600xi1>, vector<4x1600xf32>
    %17 = arith.truncf %16 : vector<4x1600xf32> to vector<4x1600xbf16>
    %c0_12 = arith.constant 0 : index
    %c0_13 = arith.constant 0 : index
    %18 = vector.load %arg6[%c0_12, %c0_13] : memref<4x1600xbf16, #tpu.memory_space<vmem>>, vector<4x1600xbf16>
    tpu.vector_store %arg6[%c0_12, %c0_13], %17 {strides = array<i32>} : memref<4x1600xbf16, #tpu.memory_space<vmem>>, vector<4x1600xbf16>,
    return
  }
  func.func @transform_0(%arg0: i32) -> (i32, i32) {
    %c0_i32 = arith.constant 0 : i32
    %c0_i32_0 = arith.constant 0 : i32
    %c0_i32_1 = arith.constant 0 : i32
    return %c0_i32, %c0_i32_0 : i32, i32
  }
  func.func @transform_1(%arg0: i32) -> (i32, i32) {
    %c0_i32 = arith.constant 0 : i32
    %c0_i32_0 = arith.constant 0 : i32
    %c0_i32_1 = arith.constant 0 : i32
    return %c0_i32, %c0_i32_0 : i32, i32
  }
  func.func @transform_2(%arg0: i32) -> (i32, i32) {
    %c0_i32 = arith.constant 0 : i32
    %c0_i32_0 = arith.constant 0 : i32
    %c0_i32_1 = arith.constant 0 : i32
    return %c0_i32, %c0_i32_0 : i32, i32
  }
  func.func @transform_3(%arg0: i32) -> (i32, i32) {
    %c0_i32 = arith.constant 0 : i32
    %c0_i32_0 = arith.constant 0 : i32
    %c0_i32_1 = arith.constant 0 : i32
    return %c0_i32, %c0_i32_0 : i32, i32
  }
  func.func @transform_4(%arg0: i32) -> (i32, i32) {
    %c0_i32 = arith.constant 0 : i32
    %c0_i32_0 = arith.constant 0 : i32
    %c0_i32_1 = arith.constant 0 : i32
    return %c0_i32, %c0_i32_0 : i32, i32
  }
  func.func @transform_5(%arg0: i32) -> (i32, i32) {
    %c0_i32 = arith.constant 0 : i32
    %c0_i32_0 = arith.constant 0 : i32
    %c0_i32_1 = arith.constant 0 : i32
    return %c0_i32, %c0_i32_0 : i32, i32
  }
}

module attributes {stable_mosaic.version = 11 : i64} {
  func.func @_mm_bn_act_kernel(%arg0: i32, %arg1: i32, %arg2: memref<4x8x144xbf16, #tpu.memory_space<vmem>>, %arg3: memref<144x512xbf16, #tpu.memory_space<vmem>>, %arg4: memref<8x1xf32, #tpu.memory_space<vmem>>, %arg5: memref<8x1xf32, #tpu.memory_space<vmem>>, %arg6: memref<4x8x512xbf16, #tpu.memory_space<vmem>>, %arg7: memref<4x8x512xf32, #tpu.memory_space<vmem>>, %arg8: memref<8x1xf32, #tpu.memory_space<vmem>>, %arg9: memref<8x1xf32, #tpu.memory_space<vmem>>, %arg10: memref<8x1xf32, #tpu.memory_space<vmem>>, %arg11: memref<8x1xf32, #tpu.memory_space<vmem>>) attributes {dimension_semantics = [#tpu.dimension_semantics<arbitrary>, #tpu.dimension_semantics<arbitrary>], iteration_bounds = array<i64: 2, 1>, scalar_prefetch = 0 : i64, scratch_operands = 5 : i64, tpu.core_type = #tpu.core_type<tc>, window_params = [{pipeline_mode = #tpu.pipeline_mode<synchronous>, transform_indices = @transform_0, window_bounds = array<i64: 4, 8, 144>}, {transform_indices = @transform_1, window_bounds = array<i64: 144, 512>}, {pipeline_mode = #tpu.pipeline_mode<synchronous>, transform_indices = @transform_2, window_bounds = array<i64: 8, 1>}, {pipeline_mode = #tpu.pipeline_mode<synchronous>, transform_indices = @transform_3, window_bounds = array<i64: 8, 1>}, {transform_indices = @transform_4, window_bounds = array<i64: 4, 8, 512>}]} {
    %c512_i32 = arith.constant 512 : i32
    %0 = arith.muli %arg1, %c512_i32 : i32
    %1 = tpu.assume_multiple %0, 128 : i32
    %c0_i32 = arith.constant 0 : i32
    %2 = arith.cmpi eq, %arg0, %c0_i32 : i32
    %c0_i32_0 = arith.constant 0 : i32
    %3 = arith.cmpi eq, %arg1, %c0_i32_0 : i32
    %4 = arith.andi %2, %3 : i1
    %5 = arith.extui %4 : i1 to i32
    %c0_i32_1 = arith.constant 0 : i32
    %6 = arith.cmpi ne, %5, %c0_i32_1 : i32
    scf.if %6 {
      %cst = arith.constant 0.000000e+00 : f32
      %18 = vector.broadcast %cst : f32 to vector<8x1xf32>
      %c0 = arith.constant 0 : index
      %c0_8 = arith.constant 0 : index
      %19 = vector.load %arg8[%c0, %c0_8] : memref<8x1xf32, #tpu.memory_space<vmem>>, vector<8x1xf32>
      tpu.vector_store %arg8[%c0, %c0_8], %18 {strides = array<i32>} : memref<8x1xf32, #tpu.memory_space<vmem>>, vector<8x1xf32>,
      %cst_9 = arith.constant 0.000000e+00 : f32
      %20 = vector.broadcast %cst_9 : f32 to vector<8x1xf32>
      %c0_10 = arith.constant 0 : index
      %c0_11 = arith.constant 0 : index
      %21 = vector.load %arg9[%c0_10, %c0_11] : memref<8x1xf32, #tpu.memory_space<vmem>>, vector<8x1xf32>
      tpu.vector_store %arg9[%c0_10, %c0_11], %20 {strides = array<i32>} : memref<8x1xf32, #tpu.memory_space<vmem>>, vector<8x1xf32>,
    } else {
    }
    %c0_i32_2 = arith.constant 0 : i32
    %7 = arith.cmpi eq, %arg0, %c0_i32_2 : i32
    %8 = arith.extui %7 : i1 to i32
    %c0_i32_3 = arith.constant 0 : i32
    %9 = arith.cmpi ne, %8, %c0_i32_3 : i32
    scf.if %9 {
      %c0 = arith.constant 0 : index
      %c0_8 = arith.constant 0 : index
      %18 = vector.load %arg3[%c0, %c0_8] : memref<144x512xbf16, #tpu.memory_space<vmem>>, vector<144x512xbf16>
      %c0_9 = arith.constant 0 : index
      %c0_10 = arith.constant 0 : index
      %c0_11 = arith.constant 0 : index
      %19 = vector.load %arg2[%c0_9, %c0_10, %c0_11] : memref<4x8x144xbf16, #tpu.memory_space<vmem>>, vector<1x8x144xbf16>
      %20 = vector.shape_cast %19 : vector<1x8x144xbf16> to vector<8x144xbf16>
      %cst = arith.constant dense<0.000000e+00> : vector<8x512xf32>
      %21 = tpu.matmul %20, %18, %cst {dimension_numbers = #tpu.dot_dimension_numbers<[1], [0], [0], [1], [0, 0, 1, 1], [], []>} : vector<8x144xbf16>, vector<144x512xbf16>, vector<8x512xf32> -> vector<8x512xf32>
      %c0_12 = arith.constant 0 : index
      %c0_13 = arith.constant 0 : index
      %22 = vector.load %arg8[%c0_12, %c0_13] : memref<8x1xf32, #tpu.memory_space<vmem>>, vector<8x1xf32>
      %cst_14 = arith.constant dense<0.000000e+00> : vector<8xf32>
      %23 = vector.multi_reduction <add>, %21, %cst_14 [1] : vector<8x512xf32> to vector<8xf32>
      %24 = vector.shape_cast %23 : vector<8xf32> to vector<8x1xf32>
      %25 = arith.addf %22, %24 : vector<8x1xf32>
      %c0_15 = arith.constant 0 : index
      %c0_16 = arith.constant 0 : index
      %26 = vector.load %arg8[%c0_15, %c0_16] : memref<8x1xf32, #tpu.memory_space<vmem>>, vector<8x1xf32>
      tpu.vector_store %arg8[%c0_15, %c0_16], %25 {strides = array<i32>} : memref<8x1xf32, #tpu.memory_space<vmem>>, vector<8x1xf32>,
      %c0_17 = arith.constant 0 : index
      %c0_18 = arith.constant 0 : index
      %27 = vector.load %arg9[%c0_17, %c0_18] : memref<8x1xf32, #tpu.memory_space<vmem>>, vector<8x1xf32>
      %28 = arith.mulf %21, %21 : vector<8x512xf32>
      %cst_19 = arith.constant dense<0.000000e+00> : vector<8xf32>
      %29 = vector.multi_reduction <add>, %28, %cst_19 [1] : vector<8x512xf32> to vector<8xf32>
      %30 = vector.shape_cast %29 : vector<8xf32> to vector<8x1xf32>
      %31 = arith.addf %27, %30 : vector<8x1xf32>
      %c0_20 = arith.constant 0 : index
      %c0_21 = arith.constant 0 : index
      %32 = vector.load %arg9[%c0_20, %c0_21] : memref<8x1xf32, #tpu.memory_space<vmem>>, vector<8x1xf32>
      tpu.vector_store %arg9[%c0_20, %c0_21], %31 {strides = array<i32>} : memref<8x1xf32, #tpu.memory_space<vmem>>, vector<8x1xf32>,
      %c0_22 = arith.constant 0 : index
      %c0_23 = arith.constant 0 : index
      %33 = arith.index_cast %1 : i32 to index
      %34 = vector.load %arg7[%c0_22, %c0_23, %33] : memref<4x8x512xf32, #tpu.memory_space<vmem>>, vector<1x8x512xf32>
      %35 = vector.shape_cast %34 : vector<1x8x512xf32> to vector<8x512xf32>
      %36 = vector.shape_cast %21 : vector<8x512xf32> to vector<1x8x512xf32>
      tpu.vector_store %arg7[%c0_22, %c0_23, %33], %36 {strides = array<i32>} : memref<4x8x512xf32, #tpu.memory_space<vmem>>, vector<1x8x512xf32>,
      %c1 = arith.constant 1 : index
      %c0_24 = arith.constant 0 : index
      %c0_25 = arith.constant 0 : index
      %37 = vector.load %arg2[%c1, %c0_24, %c0_25] : memref<4x8x144xbf16, #tpu.memory_space<vmem>>, vector<1x8x144xbf16>
      %38 = vector.shape_cast %37 : vector<1x8x144xbf16> to vector<8x144xbf16>
      %cst_26 = arith.constant dense<0.000000e+00> : vector<8x512xf32>
      %39 = tpu.matmul %38, %18, %cst_26 {dimension_numbers = #tpu.dot_dimension_numbers<[1], [0], [0], [1], [0, 0, 1, 1], [], []>} : vector<8x144xbf16>, vector<144x512xbf16>, vector<8x512xf32> -> vector<8x512xf32>
      %c0_27 = arith.constant 0 : index
      %c0_28 = arith.constant 0 : index
      %40 = vector.load %arg8[%c0_27, %c0_28] : memref<8x1xf32, #tpu.memory_space<vmem>>, vector<8x1xf32>
      %cst_29 = arith.constant dense<0.000000e+00> : vector<8xf32>
      %41 = vector.multi_reduction <add>, %39, %cst_29 [1] : vector<8x512xf32> to vector<8xf32>
      %42 = vector.shape_cast %41 : vector<8xf32> to vector<8x1xf32>
      %43 = arith.addf %40, %42 : vector<8x1xf32>
      %c0_30 = arith.constant 0 : index
      %c0_31 = arith.constant 0 : index
      %44 = vector.load %arg8[%c0_30, %c0_31] : memref<8x1xf32, #tpu.memory_space<vmem>>, vector<8x1xf32>
      tpu.vector_store %arg8[%c0_30, %c0_31], %43 {strides = array<i32>} : memref<8x1xf32, #tpu.memory_space<vmem>>, vector<8x1xf32>,
      %c0_32 = arith.constant 0 : index
      %c0_33 = arith.constant 0 : index
      %45 = vector.load %arg9[%c0_32, %c0_33] : memref<8x1xf32, #tpu.memory_space<vmem>>, vector<8x1xf32>
      %46 = arith.mulf %39, %39 : vector<8x512xf32>
      %cst_34 = arith.constant dense<0.000000e+00> : vector<8xf32>
      %47 = vector.multi_reduction <add>, %46, %cst_34 [1] : vector<8x512xf32> to vector<8xf32>
      %48 = vector.shape_cast %47 : vector<8xf32> to vector<8x1xf32>
      %49 = arith.addf %45, %48 : vector<8x1xf32>
      %c0_35 = arith.constant 0 : index
      %c0_36 = arith.constant 0 : index
      %50 = vector.load %arg9[%c0_35, %c0_36] : memref<8x1xf32, #tpu.memory_space<vmem>>, vector<8x1xf32>
      tpu.vector_store %arg9[%c0_35, %c0_36], %49 {strides = array<i32>} : memref<8x1xf32, #tpu.memory_space<vmem>>, vector<8x1xf32>,
      %c1_37 = arith.constant 1 : index
      %c0_38 = arith.constant 0 : index
      %51 = arith.index_cast %1 : i32 to index
      %52 = vector.load %arg7[%c1_37, %c0_38, %51] : memref<4x8x512xf32, #tpu.memory_space<vmem>>, vector<1x8x512xf32>
      %53 = vector.shape_cast %52 : vector<1x8x512xf32> to vector<8x512xf32>
      %54 = vector.shape_cast %39 : vector<8x512xf32> to vector<1x8x512xf32>
      tpu.vector_store %arg7[%c1_37, %c0_38, %51], %54 {strides = array<i32>} : memref<4x8x512xf32, #tpu.memory_space<vmem>>, vector<1x8x512xf32>,
      %c2 = arith.constant 2 : index
      %c0_39 = arith.constant 0 : index
      %c0_40 = arith.constant 0 : index
      %55 = vector.load %arg2[%c2, %c0_39, %c0_40] : memref<4x8x144xbf16, #tpu.memory_space<vmem>>, vector<1x8x144xbf16>
      %56 = vector.shape_cast %55 : vector<1x8x144xbf16> to vector<8x144xbf16>
      %cst_41 = arith.constant dense<0.000000e+00> : vector<8x512xf32>
      %57 = tpu.matmul %56, %18, %cst_41 {dimension_numbers = #tpu.dot_dimension_numbers<[1], [0], [0], [1], [0, 0, 1, 1], [], []>} : vector<8x144xbf16>, vector<144x512xbf16>, vector<8x512xf32> -> vector<8x512xf32>
      %c0_42 = arith.constant 0 : index
      %c0_43 = arith.constant 0 : index
      %58 = vector.load %arg8[%c0_42, %c0_43] : memref<8x1xf32, #tpu.memory_space<vmem>>, vector<8x1xf32>
      %cst_44 = arith.constant dense<0.000000e+00> : vector<8xf32>
      %59 = vector.multi_reduction <add>, %57, %cst_44 [1] : vector<8x512xf32> to vector<8xf32>
      %60 = vector.shape_cast %59 : vector<8xf32> to vector<8x1xf32>
      %61 = arith.addf %58, %60 : vector<8x1xf32>
      %c0_45 = arith.constant 0 : index
      %c0_46 = arith.constant 0 : index
      %62 = vector.load %arg8[%c0_45, %c0_46] : memref<8x1xf32, #tpu.memory_space<vmem>>, vector<8x1xf32>
      tpu.vector_store %arg8[%c0_45, %c0_46], %61 {strides = array<i32>} : memref<8x1xf32, #tpu.memory_space<vmem>>, vector<8x1xf32>,
      %c0_47 = arith.constant 0 : index
      %c0_48 = arith.constant 0 : index
      %63 = vector.load %arg9[%c0_47, %c0_48] : memref<8x1xf32, #tpu.memory_space<vmem>>, vector<8x1xf32>
      %64 = arith.mulf %57, %57 : vector<8x512xf32>
      %cst_49 = arith.constant dense<0.000000e+00> : vector<8xf32>
      %65 = vector.multi_reduction <add>, %64, %cst_49 [1] : vector<8x512xf32> to vector<8xf32>
      %66 = vector.shape_cast %65 : vector<8xf32> to vector<8x1xf32>
      %67 = arith.addf %63, %66 : vector<8x1xf32>
      %c0_50 = arith.constant 0 : index
      %c0_51 = arith.constant 0 : index
      %68 = vector.load %arg9[%c0_50, %c0_51] : memref<8x1xf32, #tpu.memory_space<vmem>>, vector<8x1xf32>
      tpu.vector_store %arg9[%c0_50, %c0_51], %67 {strides = array<i32>} : memref<8x1xf32, #tpu.memory_space<vmem>>, vector<8x1xf32>,
      %c2_52 = arith.constant 2 : index
      %c0_53 = arith.constant 0 : index
      %69 = arith.index_cast %1 : i32 to index
      %70 = vector.load %arg7[%c2_52, %c0_53, %69] : memref<4x8x512xf32, #tpu.memory_space<vmem>>, vector<1x8x512xf32>
      %71 = vector.shape_cast %70 : vector<1x8x512xf32> to vector<8x512xf32>
      %72 = vector.shape_cast %57 : vector<8x512xf32> to vector<1x8x512xf32>
      tpu.vector_store %arg7[%c2_52, %c0_53, %69], %72 {strides = array<i32>} : memref<4x8x512xf32, #tpu.memory_space<vmem>>, vector<1x8x512xf32>,
      %c3 = arith.constant 3 : index
      %c0_54 = arith.constant 0 : index
      %c0_55 = arith.constant 0 : index
      %73 = vector.load %arg2[%c3, %c0_54, %c0_55] : memref<4x8x144xbf16, #tpu.memory_space<vmem>>, vector<1x8x144xbf16>
      %74 = vector.shape_cast %73 : vector<1x8x144xbf16> to vector<8x144xbf16>
      %cst_56 = arith.constant dense<0.000000e+00> : vector<8x512xf32>
      %75 = tpu.matmul %74, %18, %cst_56 {dimension_numbers = #tpu.dot_dimension_numbers<[1], [0], [0], [1], [0, 0, 1, 1], [], []>} : vector<8x144xbf16>, vector<144x512xbf16>, vector<8x512xf32> -> vector<8x512xf32>
      %c0_57 = arith.constant 0 : index
      %c0_58 = arith.constant 0 : index
      %76 = vector.load %arg8[%c0_57, %c0_58] : memref<8x1xf32, #tpu.memory_space<vmem>>, vector<8x1xf32>
      %cst_59 = arith.constant dense<0.000000e+00> : vector<8xf32>
      %77 = vector.multi_reduction <add>, %75, %cst_59 [1] : vector<8x512xf32> to vector<8xf32>
      %78 = vector.shape_cast %77 : vector<8xf32> to vector<8x1xf32>
      %79 = arith.addf %76, %78 : vector<8x1xf32>
      %c0_60 = arith.constant 0 : index
      %c0_61 = arith.constant 0 : index
      %80 = vector.load %arg8[%c0_60, %c0_61] : memref<8x1xf32, #tpu.memory_space<vmem>>, vector<8x1xf32>
      tpu.vector_store %arg8[%c0_60, %c0_61], %79 {strides = array<i32>} : memref<8x1xf32, #tpu.memory_space<vmem>>, vector<8x1xf32>,
      %c0_62 = arith.constant 0 : index
      %c0_63 = arith.constant 0 : index
      %81 = vector.load %arg9[%c0_62, %c0_63] : memref<8x1xf32, #tpu.memory_space<vmem>>, vector<8x1xf32>
      %82 = arith.mulf %75, %75 : vector<8x512xf32>
      %cst_64 = arith.constant dense<0.000000e+00> : vector<8xf32>
      %83 = vector.multi_reduction <add>, %82, %cst_64 [1] : vector<8x512xf32> to vector<8xf32>
      %84 = vector.shape_cast %83 : vector<8xf32> to vector<8x1xf32>
      %85 = arith.addf %81, %84 : vector<8x1xf32>
      %c0_65 = arith.constant 0 : index
      %c0_66 = arith.constant 0 : index
      %86 = vector.load %arg9[%c0_65, %c0_66] : memref<8x1xf32, #tpu.memory_space<vmem>>, vector<8x1xf32>
      tpu.vector_store %arg9[%c0_65, %c0_66], %85 {strides = array<i32>} : memref<8x1xf32, #tpu.memory_space<vmem>>, vector<8x1xf32>,
      %c3_67 = arith.constant 3 : index
      %c0_68 = arith.constant 0 : index
      %87 = arith.index_cast %1 : i32 to index
      %88 = vector.load %arg7[%c3_67, %c0_68, %87] : memref<4x8x512xf32, #tpu.memory_space<vmem>>, vector<1x8x512xf32>
      %89 = vector.shape_cast %88 : vector<1x8x512xf32> to vector<8x512xf32>
      %90 = vector.shape_cast %75 : vector<8x512xf32> to vector<1x8x512xf32>
      tpu.vector_store %arg7[%c3_67, %c0_68, %87], %90 {strides = array<i32>} : memref<4x8x512xf32, #tpu.memory_space<vmem>>, vector<1x8x512xf32>,
    } else {
    }
    %c1_i32 = arith.constant 1 : i32
    %10 = arith.cmpi eq, %arg0, %c1_i32 : i32
    %c0_i32_4 = arith.constant 0 : i32
    %11 = arith.cmpi eq, %arg1, %c0_i32_4 : i32
    %12 = arith.andi %10, %11 : i1
    %13 = arith.extui %12 : i1 to i32
    %c0_i32_5 = arith.constant 0 : i32
    %14 = arith.cmpi ne, %13, %c0_i32_5 : i32
    scf.if %14 {
      %c0 = arith.constant 0 : index
      %c0_8 = arith.constant 0 : index
      %18 = vector.load %arg8[%c0, %c0_8] : memref<8x1xf32, #tpu.memory_space<vmem>>, vector<8x1xf32>
      %cst = arith.constant 6.250000e-04 : f32
      %19 = vector.broadcast %cst : f32 to vector<8x1xf32>
      %20 = arith.mulf %18, %19 : vector<8x1xf32>
      %c0_9 = arith.constant 0 : index
      %c0_10 = arith.constant 0 : index
      %21 = vector.load %arg9[%c0_9, %c0_10] : memref<8x1xf32, #tpu.memory_space<vmem>>, vector<8x1xf32>
      %cst_11 = arith.constant 6.250000e-04 : f32
      %22 = vector.broadcast %cst_11 : f32 to vector<8x1xf32>
      %23 = arith.mulf %21, %22 : vector<8x1xf32>
      %24 = arith.mulf %20, %20 : vector<8x1xf32>
      %25 = arith.subf %23, %24 : vector<8x1xf32>
      %cst_12 = arith.constant 9.99999974E-6 : f32
      %26 = vector.broadcast %cst_12 : f32 to vector<8x1xf32>
      %27 = arith.addf %25, %26 : vector<8x1xf32>
      %28 = math.rsqrt %27 : vector<8x1xf32>
      %c0_13 = arith.constant 0 : index
      %c0_14 = arith.constant 0 : index
      %29 = vector.load %arg4[%c0_13, %c0_14] : memref<8x1xf32, #tpu.memory_space<vmem>>, vector<8x1xf32>
      %30 = arith.mulf %28, %29 : vector<8x1xf32>
      %c0_15 = arith.constant 0 : index
      %c0_16 = arith.constant 0 : index
      %31 = vector.load %arg10[%c0_15, %c0_16] : memref<8x1xf32, #tpu.memory_space<vmem>>, vector<8x1xf32>
      tpu.vector_store %arg10[%c0_15, %c0_16], %30 {strides = array<i32>} : memref<8x1xf32, #tpu.memory_space<vmem>>, vector<8x1xf32>,
      %c0_17 = arith.constant 0 : index
      %c0_18 = arith.constant 0 : index
      %32 = vector.load %arg5[%c0_17, %c0_18] : memref<8x1xf32, #tpu.memory_space<vmem>>, vector<8x1xf32>
      %33 = arith.mulf %20, %30 : vector<8x1xf32>
      %34 = arith.subf %32, %33 : vector<8x1xf32>
      %c0_19 = arith.constant 0 : index
      %c0_20 = arith.constant 0 : index
      %35 = vector.load %arg11[%c0_19, %c0_20] : memref<8x1xf32, #tpu.memory_space<vmem>>, vector<8x1xf32>
      tpu.vector_store %arg11[%c0_19, %c0_20], %34 {strides = array<i32>} : memref<8x1xf32, #tpu.memory_space<vmem>>, vector<8x1xf32>,
    } else {
    }
    %c1_i32_6 = arith.constant 1 : i32
    %15 = arith.cmpi eq, %arg0, %c1_i32_6 : i32
    %16 = arith.extui %15 : i1 to i32
    %c0_i32_7 = arith.constant 0 : i32
    %17 = arith.cmpi ne, %16, %c0_i32_7 : i32
    scf.if %17 {
      %c0 = arith.constant 0 : index
      %c0_8 = arith.constant 0 : index
      %18 = arith.index_cast %1 : i32 to index
      %19 = vector.load %arg7[%c0, %c0_8, %18] : memref<4x8x512xf32, #tpu.memory_space<vmem>>, vector<4x8x512xf32>
      %c0_9 = arith.constant 0 : index
      %c0_10 = arith.constant 0 : index
      %20 = vector.load %arg10[%c0_9, %c0_10] : memref<8x1xf32, #tpu.memory_space<vmem>>, vector<8x1xf32>
      %21 = vector.shape_cast %20 : vector<8x1xf32> to vector<1x8x1xf32>
      %22 = vector.broadcast %21 : vector<1x8x1xf32> to vector<4x8x512xf32>
      %23 = arith.mulf %19, %22 : vector<4x8x512xf32>
      %c0_11 = arith.constant 0 : index
      %c0_12 = arith.constant 0 : index
      %24 = vector.load %arg11[%c0_11, %c0_12] : memref<8x1xf32, #tpu.memory_space<vmem>>, vector<8x1xf32>
      %25 = vector.shape_cast %24 : vector<8x1xf32> to vector<1x8x1xf32>
      %26 = vector.broadcast %25 : vector<1x8x1xf32> to vector<4x8x512xf32>
      %27 = arith.addf %23, %26 : vector<4x8x512xf32>
      %cst = arith.constant 0.000000e+00 : f32
      %28 = vector.broadcast %cst : f32 to vector<4x8x512xf32>
      %29 = arith.maximumf %27, %28 : vector<4x8x512xf32>
      %30 = arith.truncf %29 : vector<4x8x512xf32> to vector<4x8x512xbf16>
      %c0_13 = arith.constant 0 : index
      %c0_14 = arith.constant 0 : index
      %c0_15 = arith.constant 0 : index
      %31 = vector.load %arg6[%c0_13, %c0_14, %c0_15] : memref<4x8x512xbf16, #tpu.memory_space<vmem>>, vector<4x8x512xbf16>
      tpu.vector_store %arg6[%c0_13, %c0_14, %c0_15], %30 {strides = array<i32>} : memref<4x8x512xbf16, #tpu.memory_space<vmem>>, vector<4x8x512xbf16>,
    } else {
    }
    return
  }
  func.func @transform_0(%arg0: i32, %arg1: i32) -> (i32, i32, i32) {
    %c0_i32 = arith.constant 0 : i32
    %c0_i32_0 = arith.constant 0 : i32
    %c0_i32_1 = arith.constant 0 : i32
    %c0_i32_2 = arith.constant 0 : i32
    return %c0_i32, %c0_i32_0, %c0_i32_1 : i32, i32, i32
  }
  func.func @transform_1(%arg0: i32, %arg1: i32) -> (i32, i32) {
    %c1_i32 = arith.constant 1 : i32
    %0 = arith.subi %c1_i32, %arg0 : i32
    %1 = arith.muli %arg1, %0 : i32
    %c0_i32 = arith.constant 0 : i32
    %2 = arith.muli %c0_i32, %arg0 : i32
    %3 = arith.addi %1, %2 : i32
    %c0_i32_0 = arith.constant 0 : i32
    %c0_i32_1 = arith.constant 0 : i32
    return %c0_i32_0, %3 : i32, i32
  }
  func.func @transform_2(%arg0: i32, %arg1: i32) -> (i32, i32) {
    %c0_i32 = arith.constant 0 : i32
    %c0_i32_0 = arith.constant 0 : i32
    %c0_i32_1 = arith.constant 0 : i32
    return %c0_i32, %c0_i32_0 : i32, i32
  }
  func.func @transform_3(%arg0: i32, %arg1: i32) -> (i32, i32) {
    %c0_i32 = arith.constant 0 : i32
    %c0_i32_0 = arith.constant 0 : i32
    %c0_i32_1 = arith.constant 0 : i32
    return %c0_i32, %c0_i32_0 : i32, i32
  }
  func.func @transform_4(%arg0: i32, %arg1: i32) -> (i32, i32, i32) {
    %0 = arith.muli %arg1, %arg0 : i32
    %c0_i32 = arith.constant 0 : i32
    %c0_i32_0 = arith.constant 0 : i32
    %c0_i32_1 = arith.constant 0 : i32
    return %c0_i32, %c0_i32_0, %0 : i32, i32, i32
  }
}

module attributes {stable_mosaic.version = 11 : i64} {
  func.func @_mm_bn_act_kernel(%arg0: i32, %arg1: i32, %arg2: memref<4x3x72xbf16, #tpu.memory_space<vmem>>, %arg3: memref<72x1024xbf16, #tpu.memory_space<vmem>>, %arg4: memref<3x1xf32, #tpu.memory_space<vmem>>, %arg5: memref<3x1xf32, #tpu.memory_space<vmem>>, %arg6: memref<4x3x1024xbf16, #tpu.memory_space<vmem>>, %arg7: memref<4x3x2048xf32, #tpu.memory_space<vmem>>, %arg8: memref<3x1xf32, #tpu.memory_space<vmem>>, %arg9: memref<3x1xf32, #tpu.memory_space<vmem>>, %arg10: memref<3x1xf32, #tpu.memory_space<vmem>>, %arg11: memref<3x1xf32, #tpu.memory_space<vmem>>) attributes {dimension_semantics = [#tpu.dimension_semantics<arbitrary>, #tpu.dimension_semantics<arbitrary>], iteration_bounds = array<i64: 2, 2>, scalar_prefetch = 0 : i64, scratch_operands = 5 : i64, tpu.core_type = #tpu.core_type<tc>, window_params = [{pipeline_mode = #tpu.pipeline_mode<synchronous>, transform_indices = @transform_0, window_bounds = array<i64: 4, 3, 72>}, {transform_indices = @transform_1, window_bounds = array<i64: 72, 1024>}, {pipeline_mode = #tpu.pipeline_mode<synchronous>, transform_indices = @transform_2, window_bounds = array<i64: 3, 1>}, {pipeline_mode = #tpu.pipeline_mode<synchronous>, transform_indices = @transform_3, window_bounds = array<i64: 3, 1>}, {transform_indices = @transform_4, window_bounds = array<i64: 4, 3, 1024>}]} {
    %c1024_i32 = arith.constant 1024 : i32
    %0 = arith.muli %arg1, %c1024_i32 : i32
    %1 = tpu.assume_multiple %0, 128 : i32
    %c0_i32 = arith.constant 0 : i32
    %2 = arith.cmpi eq, %arg0, %c0_i32 : i32
    %c0_i32_0 = arith.constant 0 : i32
    %3 = arith.cmpi eq, %arg1, %c0_i32_0 : i32
    %4 = arith.andi %2, %3 : i1
    %5 = arith.extui %4 : i1 to i32
    %c0_i32_1 = arith.constant 0 : i32
    %6 = arith.cmpi ne, %5, %c0_i32_1 : i32
    scf.if %6 {
      %cst = arith.constant 0.000000e+00 : f32
      %18 = vector.broadcast %cst : f32 to vector<3x1xf32>
      %c0 = arith.constant 0 : index
      %c0_8 = arith.constant 0 : index
      %19 = vector.load %arg8[%c0, %c0_8] : memref<3x1xf32, #tpu.memory_space<vmem>>, vector<3x1xf32>
      tpu.vector_store %arg8[%c0, %c0_8], %18 {strides = array<i32>} : memref<3x1xf32, #tpu.memory_space<vmem>>, vector<3x1xf32>,
      %cst_9 = arith.constant 0.000000e+00 : f32
      %20 = vector.broadcast %cst_9 : f32 to vector<3x1xf32>
      %c0_10 = arith.constant 0 : index
      %c0_11 = arith.constant 0 : index
      %21 = vector.load %arg9[%c0_10, %c0_11] : memref<3x1xf32, #tpu.memory_space<vmem>>, vector<3x1xf32>
      tpu.vector_store %arg9[%c0_10, %c0_11], %20 {strides = array<i32>} : memref<3x1xf32, #tpu.memory_space<vmem>>, vector<3x1xf32>,
    } else {
    }
    %c0_i32_2 = arith.constant 0 : i32
    %7 = arith.cmpi eq, %arg0, %c0_i32_2 : i32
    %8 = arith.extui %7 : i1 to i32
    %c0_i32_3 = arith.constant 0 : i32
    %9 = arith.cmpi ne, %8, %c0_i32_3 : i32
    scf.if %9 {
      %c0 = arith.constant 0 : index
      %c0_8 = arith.constant 0 : index
      %18 = vector.load %arg3[%c0, %c0_8] : memref<72x1024xbf16, #tpu.memory_space<vmem>>, vector<72x1024xbf16>
      %c0_9 = arith.constant 0 : index
      %c0_10 = arith.constant 0 : index
      %c0_11 = arith.constant 0 : index
      %19 = vector.load %arg2[%c0_9, %c0_10, %c0_11] : memref<4x3x72xbf16, #tpu.memory_space<vmem>>, vector<1x3x72xbf16>
      %20 = vector.shape_cast %19 : vector<1x3x72xbf16> to vector<3x72xbf16>
      %cst = arith.constant dense<0.000000e+00> : vector<3x1024xf32>
      %21 = tpu.matmul %20, %18, %cst {dimension_numbers = #tpu.dot_dimension_numbers<[1], [0], [0], [1], [0, 0, 1, 1], [], []>} : vector<3x72xbf16>, vector<72x1024xbf16>, vector<3x1024xf32> -> vector<3x1024xf32>
      %c0_12 = arith.constant 0 : index
      %c0_13 = arith.constant 0 : index
      %22 = vector.load %arg8[%c0_12, %c0_13] : memref<3x1xf32, #tpu.memory_space<vmem>>, vector<3x1xf32>
      %cst_14 = arith.constant dense<0.000000e+00> : vector<3xf32>
      %23 = vector.multi_reduction <add>, %21, %cst_14 [1] : vector<3x1024xf32> to vector<3xf32>
      %24 = vector.shape_cast %23 : vector<3xf32> to vector<3x1xf32>
      %25 = arith.addf %22, %24 : vector<3x1xf32>
      %c0_15 = arith.constant 0 : index
      %c0_16 = arith.constant 0 : index
      %26 = vector.load %arg8[%c0_15, %c0_16] : memref<3x1xf32, #tpu.memory_space<vmem>>, vector<3x1xf32>
      tpu.vector_store %arg8[%c0_15, %c0_16], %25 {strides = array<i32>} : memref<3x1xf32, #tpu.memory_space<vmem>>, vector<3x1xf32>,
      %c0_17 = arith.constant 0 : index
      %c0_18 = arith.constant 0 : index
      %27 = vector.load %arg9[%c0_17, %c0_18] : memref<3x1xf32, #tpu.memory_space<vmem>>, vector<3x1xf32>
      %28 = arith.mulf %21, %21 : vector<3x1024xf32>
      %cst_19 = arith.constant dense<0.000000e+00> : vector<3xf32>
      %29 = vector.multi_reduction <add>, %28, %cst_19 [1] : vector<3x1024xf32> to vector<3xf32>
      %30 = vector.shape_cast %29 : vector<3xf32> to vector<3x1xf32>
      %31 = arith.addf %27, %30 : vector<3x1xf32>
      %c0_20 = arith.constant 0 : index
      %c0_21 = arith.constant 0 : index
      %32 = vector.load %arg9[%c0_20, %c0_21] : memref<3x1xf32, #tpu.memory_space<vmem>>, vector<3x1xf32>
      tpu.vector_store %arg9[%c0_20, %c0_21], %31 {strides = array<i32>} : memref<3x1xf32, #tpu.memory_space<vmem>>, vector<3x1xf32>,
      %c0_22 = arith.constant 0 : index
      %c0_23 = arith.constant 0 : index
      %33 = arith.index_cast %1 : i32 to index
      %34 = vector.load %arg7[%c0_22, %c0_23, %33] : memref<4x3x2048xf32, #tpu.memory_space<vmem>>, vector<1x3x1024xf32>
      %35 = vector.shape_cast %34 : vector<1x3x1024xf32> to vector<3x1024xf32>
      %36 = vector.shape_cast %21 : vector<3x1024xf32> to vector<1x3x1024xf32>
      tpu.vector_store %arg7[%c0_22, %c0_23, %33], %36 {strides = array<i32>} : memref<4x3x2048xf32, #tpu.memory_space<vmem>>, vector<1x3x1024xf32>,
      %c1 = arith.constant 1 : index
      %c0_24 = arith.constant 0 : index
      %c0_25 = arith.constant 0 : index
      %37 = vector.load %arg2[%c1, %c0_24, %c0_25] : memref<4x3x72xbf16, #tpu.memory_space<vmem>>, vector<1x3x72xbf16>
      %38 = vector.shape_cast %37 : vector<1x3x72xbf16> to vector<3x72xbf16>
      %cst_26 = arith.constant dense<0.000000e+00> : vector<3x1024xf32>
      %39 = tpu.matmul %38, %18, %cst_26 {dimension_numbers = #tpu.dot_dimension_numbers<[1], [0], [0], [1], [0, 0, 1, 1], [], []>} : vector<3x72xbf16>, vector<72x1024xbf16>, vector<3x1024xf32> -> vector<3x1024xf32>
      %c0_27 = arith.constant 0 : index
      %c0_28 = arith.constant 0 : index
      %40 = vector.load %arg8[%c0_27, %c0_28] : memref<3x1xf32, #tpu.memory_space<vmem>>, vector<3x1xf32>
      %cst_29 = arith.constant dense<0.000000e+00> : vector<3xf32>
      %41 = vector.multi_reduction <add>, %39, %cst_29 [1] : vector<3x1024xf32> to vector<3xf32>
      %42 = vector.shape_cast %41 : vector<3xf32> to vector<3x1xf32>
      %43 = arith.addf %40, %42 : vector<3x1xf32>
      %c0_30 = arith.constant 0 : index
      %c0_31 = arith.constant 0 : index
      %44 = vector.load %arg8[%c0_30, %c0_31] : memref<3x1xf32, #tpu.memory_space<vmem>>, vector<3x1xf32>
      tpu.vector_store %arg8[%c0_30, %c0_31], %43 {strides = array<i32>} : memref<3x1xf32, #tpu.memory_space<vmem>>, vector<3x1xf32>,
      %c0_32 = arith.constant 0 : index
      %c0_33 = arith.constant 0 : index
      %45 = vector.load %arg9[%c0_32, %c0_33] : memref<3x1xf32, #tpu.memory_space<vmem>>, vector<3x1xf32>
      %46 = arith.mulf %39, %39 : vector<3x1024xf32>
      %cst_34 = arith.constant dense<0.000000e+00> : vector<3xf32>
      %47 = vector.multi_reduction <add>, %46, %cst_34 [1] : vector<3x1024xf32> to vector<3xf32>
      %48 = vector.shape_cast %47 : vector<3xf32> to vector<3x1xf32>
      %49 = arith.addf %45, %48 : vector<3x1xf32>
      %c0_35 = arith.constant 0 : index
      %c0_36 = arith.constant 0 : index
      %50 = vector.load %arg9[%c0_35, %c0_36] : memref<3x1xf32, #tpu.memory_space<vmem>>, vector<3x1xf32>
      tpu.vector_store %arg9[%c0_35, %c0_36], %49 {strides = array<i32>} : memref<3x1xf32, #tpu.memory_space<vmem>>, vector<3x1xf32>,
      %c1_37 = arith.constant 1 : index
      %c0_38 = arith.constant 0 : index
      %51 = arith.index_cast %1 : i32 to index
      %52 = vector.load %arg7[%c1_37, %c0_38, %51] : memref<4x3x2048xf32, #tpu.memory_space<vmem>>, vector<1x3x1024xf32>
      %53 = vector.shape_cast %52 : vector<1x3x1024xf32> to vector<3x1024xf32>
      %54 = vector.shape_cast %39 : vector<3x1024xf32> to vector<1x3x1024xf32>
      tpu.vector_store %arg7[%c1_37, %c0_38, %51], %54 {strides = array<i32>} : memref<4x3x2048xf32, #tpu.memory_space<vmem>>, vector<1x3x1024xf32>,
      %c2 = arith.constant 2 : index
      %c0_39 = arith.constant 0 : index
      %c0_40 = arith.constant 0 : index
      %55 = vector.load %arg2[%c2, %c0_39, %c0_40] : memref<4x3x72xbf16, #tpu.memory_space<vmem>>, vector<1x3x72xbf16>
      %56 = vector.shape_cast %55 : vector<1x3x72xbf16> to vector<3x72xbf16>
      %cst_41 = arith.constant dense<0.000000e+00> : vector<3x1024xf32>
      %57 = tpu.matmul %56, %18, %cst_41 {dimension_numbers = #tpu.dot_dimension_numbers<[1], [0], [0], [1], [0, 0, 1, 1], [], []>} : vector<3x72xbf16>, vector<72x1024xbf16>, vector<3x1024xf32> -> vector<3x1024xf32>
      %c0_42 = arith.constant 0 : index
      %c0_43 = arith.constant 0 : index
      %58 = vector.load %arg8[%c0_42, %c0_43] : memref<3x1xf32, #tpu.memory_space<vmem>>, vector<3x1xf32>
      %cst_44 = arith.constant dense<0.000000e+00> : vector<3xf32>
      %59 = vector.multi_reduction <add>, %57, %cst_44 [1] : vector<3x1024xf32> to vector<3xf32>
      %60 = vector.shape_cast %59 : vector<3xf32> to vector<3x1xf32>
      %61 = arith.addf %58, %60 : vector<3x1xf32>
      %c0_45 = arith.constant 0 : index
      %c0_46 = arith.constant 0 : index
      %62 = vector.load %arg8[%c0_45, %c0_46] : memref<3x1xf32, #tpu.memory_space<vmem>>, vector<3x1xf32>
      tpu.vector_store %arg8[%c0_45, %c0_46], %61 {strides = array<i32>} : memref<3x1xf32, #tpu.memory_space<vmem>>, vector<3x1xf32>,
      %c0_47 = arith.constant 0 : index
      %c0_48 = arith.constant 0 : index
      %63 = vector.load %arg9[%c0_47, %c0_48] : memref<3x1xf32, #tpu.memory_space<vmem>>, vector<3x1xf32>
      %64 = arith.mulf %57, %57 : vector<3x1024xf32>
      %cst_49 = arith.constant dense<0.000000e+00> : vector<3xf32>
      %65 = vector.multi_reduction <add>, %64, %cst_49 [1] : vector<3x1024xf32> to vector<3xf32>
      %66 = vector.shape_cast %65 : vector<3xf32> to vector<3x1xf32>
      %67 = arith.addf %63, %66 : vector<3x1xf32>
      %c0_50 = arith.constant 0 : index
      %c0_51 = arith.constant 0 : index
      %68 = vector.load %arg9[%c0_50, %c0_51] : memref<3x1xf32, #tpu.memory_space<vmem>>, vector<3x1xf32>
      tpu.vector_store %arg9[%c0_50, %c0_51], %67 {strides = array<i32>} : memref<3x1xf32, #tpu.memory_space<vmem>>, vector<3x1xf32>,
      %c2_52 = arith.constant 2 : index
      %c0_53 = arith.constant 0 : index
      %69 = arith.index_cast %1 : i32 to index
      %70 = vector.load %arg7[%c2_52, %c0_53, %69] : memref<4x3x2048xf32, #tpu.memory_space<vmem>>, vector<1x3x1024xf32>
      %71 = vector.shape_cast %70 : vector<1x3x1024xf32> to vector<3x1024xf32>
      %72 = vector.shape_cast %57 : vector<3x1024xf32> to vector<1x3x1024xf32>
      tpu.vector_store %arg7[%c2_52, %c0_53, %69], %72 {strides = array<i32>} : memref<4x3x2048xf32, #tpu.memory_space<vmem>>, vector<1x3x1024xf32>,
      %c3 = arith.constant 3 : index
      %c0_54 = arith.constant 0 : index
      %c0_55 = arith.constant 0 : index
      %73 = vector.load %arg2[%c3, %c0_54, %c0_55] : memref<4x3x72xbf16, #tpu.memory_space<vmem>>, vector<1x3x72xbf16>
      %74 = vector.shape_cast %73 : vector<1x3x72xbf16> to vector<3x72xbf16>
      %cst_56 = arith.constant dense<0.000000e+00> : vector<3x1024xf32>
      %75 = tpu.matmul %74, %18, %cst_56 {dimension_numbers = #tpu.dot_dimension_numbers<[1], [0], [0], [1], [0, 0, 1, 1], [], []>} : vector<3x72xbf16>, vector<72x1024xbf16>, vector<3x1024xf32> -> vector<3x1024xf32>
      %c0_57 = arith.constant 0 : index
      %c0_58 = arith.constant 0 : index
      %76 = vector.load %arg8[%c0_57, %c0_58] : memref<3x1xf32, #tpu.memory_space<vmem>>, vector<3x1xf32>
      %cst_59 = arith.constant dense<0.000000e+00> : vector<3xf32>
      %77 = vector.multi_reduction <add>, %75, %cst_59 [1] : vector<3x1024xf32> to vector<3xf32>
      %78 = vector.shape_cast %77 : vector<3xf32> to vector<3x1xf32>
      %79 = arith.addf %76, %78 : vector<3x1xf32>
      %c0_60 = arith.constant 0 : index
      %c0_61 = arith.constant 0 : index
      %80 = vector.load %arg8[%c0_60, %c0_61] : memref<3x1xf32, #tpu.memory_space<vmem>>, vector<3x1xf32>
      tpu.vector_store %arg8[%c0_60, %c0_61], %79 {strides = array<i32>} : memref<3x1xf32, #tpu.memory_space<vmem>>, vector<3x1xf32>,
      %c0_62 = arith.constant 0 : index
      %c0_63 = arith.constant 0 : index
      %81 = vector.load %arg9[%c0_62, %c0_63] : memref<3x1xf32, #tpu.memory_space<vmem>>, vector<3x1xf32>
      %82 = arith.mulf %75, %75 : vector<3x1024xf32>
      %cst_64 = arith.constant dense<0.000000e+00> : vector<3xf32>
      %83 = vector.multi_reduction <add>, %82, %cst_64 [1] : vector<3x1024xf32> to vector<3xf32>
      %84 = vector.shape_cast %83 : vector<3xf32> to vector<3x1xf32>
      %85 = arith.addf %81, %84 : vector<3x1xf32>
      %c0_65 = arith.constant 0 : index
      %c0_66 = arith.constant 0 : index
      %86 = vector.load %arg9[%c0_65, %c0_66] : memref<3x1xf32, #tpu.memory_space<vmem>>, vector<3x1xf32>
      tpu.vector_store %arg9[%c0_65, %c0_66], %85 {strides = array<i32>} : memref<3x1xf32, #tpu.memory_space<vmem>>, vector<3x1xf32>,
      %c3_67 = arith.constant 3 : index
      %c0_68 = arith.constant 0 : index
      %87 = arith.index_cast %1 : i32 to index
      %88 = vector.load %arg7[%c3_67, %c0_68, %87] : memref<4x3x2048xf32, #tpu.memory_space<vmem>>, vector<1x3x1024xf32>
      %89 = vector.shape_cast %88 : vector<1x3x1024xf32> to vector<3x1024xf32>
      %90 = vector.shape_cast %75 : vector<3x1024xf32> to vector<1x3x1024xf32>
      tpu.vector_store %arg7[%c3_67, %c0_68, %87], %90 {strides = array<i32>} : memref<4x3x2048xf32, #tpu.memory_space<vmem>>, vector<1x3x1024xf32>,
    } else {
    }
    %c1_i32 = arith.constant 1 : i32
    %10 = arith.cmpi eq, %arg0, %c1_i32 : i32
    %c0_i32_4 = arith.constant 0 : i32
    %11 = arith.cmpi eq, %arg1, %c0_i32_4 : i32
    %12 = arith.andi %10, %11 : i1
    %13 = arith.extui %12 : i1 to i32
    %c0_i32_5 = arith.constant 0 : i32
    %14 = arith.cmpi ne, %13, %c0_i32_5 : i32
    scf.if %14 {
      %c0 = arith.constant 0 : index
      %c0_8 = arith.constant 0 : index
      %18 = vector.load %arg8[%c0, %c0_8] : memref<3x1xf32, #tpu.memory_space<vmem>>, vector<3x1xf32>
      %cst = arith.constant 1.562500e-04 : f32
      %19 = vector.broadcast %cst : f32 to vector<3x1xf32>
      %20 = arith.mulf %18, %19 : vector<3x1xf32>
      %c0_9 = arith.constant 0 : index
      %c0_10 = arith.constant 0 : index
      %21 = vector.load %arg9[%c0_9, %c0_10] : memref<3x1xf32, #tpu.memory_space<vmem>>, vector<3x1xf32>
      %cst_11 = arith.constant 1.562500e-04 : f32
      %22 = vector.broadcast %cst_11 : f32 to vector<3x1xf32>
      %23 = arith.mulf %21, %22 : vector<3x1xf32>
      %24 = arith.mulf %20, %20 : vector<3x1xf32>
      %25 = arith.subf %23, %24 : vector<3x1xf32>
      %cst_12 = arith.constant 9.99999974E-6 : f32
      %26 = vector.broadcast %cst_12 : f32 to vector<3x1xf32>
      %27 = arith.addf %25, %26 : vector<3x1xf32>
      %28 = math.rsqrt %27 : vector<3x1xf32>
      %c0_13 = arith.constant 0 : index
      %c0_14 = arith.constant 0 : index
      %29 = vector.load %arg4[%c0_13, %c0_14] : memref<3x1xf32, #tpu.memory_space<vmem>>, vector<3x1xf32>
      %30 = arith.mulf %28, %29 : vector<3x1xf32>
      %c0_15 = arith.constant 0 : index
      %c0_16 = arith.constant 0 : index
      %31 = vector.load %arg10[%c0_15, %c0_16] : memref<3x1xf32, #tpu.memory_space<vmem>>, vector<3x1xf32>
      tpu.vector_store %arg10[%c0_15, %c0_16], %30 {strides = array<i32>} : memref<3x1xf32, #tpu.memory_space<vmem>>, vector<3x1xf32>,
      %c0_17 = arith.constant 0 : index
      %c0_18 = arith.constant 0 : index
      %32 = vector.load %arg5[%c0_17, %c0_18] : memref<3x1xf32, #tpu.memory_space<vmem>>, vector<3x1xf32>
      %33 = arith.mulf %20, %30 : vector<3x1xf32>
      %34 = arith.subf %32, %33 : vector<3x1xf32>
      %c0_19 = arith.constant 0 : index
      %c0_20 = arith.constant 0 : index
      %35 = vector.load %arg11[%c0_19, %c0_20] : memref<3x1xf32, #tpu.memory_space<vmem>>, vector<3x1xf32>
      tpu.vector_store %arg11[%c0_19, %c0_20], %34 {strides = array<i32>} : memref<3x1xf32, #tpu.memory_space<vmem>>, vector<3x1xf32>,
    } else {
    }
    %c1_i32_6 = arith.constant 1 : i32
    %15 = arith.cmpi eq, %arg0, %c1_i32_6 : i32
    %16 = arith.extui %15 : i1 to i32
    %c0_i32_7 = arith.constant 0 : i32
    %17 = arith.cmpi ne, %16, %c0_i32_7 : i32
    scf.if %17 {
      %c0 = arith.constant 0 : index
      %c0_8 = arith.constant 0 : index
      %18 = arith.index_cast %1 : i32 to index
      %19 = vector.load %arg7[%c0, %c0_8, %18] : memref<4x3x2048xf32, #tpu.memory_space<vmem>>, vector<4x3x1024xf32>
      %c0_9 = arith.constant 0 : index
      %c0_10 = arith.constant 0 : index
      %20 = vector.load %arg10[%c0_9, %c0_10] : memref<3x1xf32, #tpu.memory_space<vmem>>, vector<3x1xf32>
      %21 = vector.shape_cast %20 : vector<3x1xf32> to vector<1x3x1xf32>
      %22 = vector.broadcast %21 : vector<1x3x1xf32> to vector<4x3x1024xf32>
      %23 = arith.mulf %19, %22 : vector<4x3x1024xf32>
      %c0_11 = arith.constant 0 : index
      %c0_12 = arith.constant 0 : index
      %24 = vector.load %arg11[%c0_11, %c0_12] : memref<3x1xf32, #tpu.memory_space<vmem>>, vector<3x1xf32>
      %25 = vector.shape_cast %24 : vector<3x1xf32> to vector<1x3x1xf32>
      %26 = vector.broadcast %25 : vector<1x3x1xf32> to vector<4x3x1024xf32>
      %27 = arith.addf %23, %26 : vector<4x3x1024xf32>
      %28 = arith.negf %27 : vector<4x3x1024xf32>
      %29 = math.exp %28 : vector<4x3x1024xf32>
      %cst = arith.constant 1.000000e+00 : f32
      %30 = vector.broadcast %cst : f32 to vector<4x3x1024xf32>
      %31 = arith.addf %30, %29 : vector<4x3x1024xf32>
      %32 = arith.divf %30, %31 : vector<4x3x1024xf32>
      %33 = arith.truncf %32 : vector<4x3x1024xf32> to vector<4x3x1024xbf16>
      %c0_13 = arith.constant 0 : index
      %c0_14 = arith.constant 0 : index
      %c0_15 = arith.constant 0 : index
      %34 = vector.load %arg6[%c0_13, %c0_14, %c0_15] : memref<4x3x1024xbf16, #tpu.memory_space<vmem>>, vector<4x3x1024xbf16>
      tpu.vector_store %arg6[%c0_13, %c0_14, %c0_15], %33 {strides = array<i32>} : memref<4x3x1024xbf16, #tpu.memory_space<vmem>>, vector<4x3x1024xbf16>,
    } else {
    }
    return
  }
  func.func @transform_0(%arg0: i32, %arg1: i32) -> (i32, i32, i32) {
    %c0_i32 = arith.constant 0 : i32
    %c0_i32_0 = arith.constant 0 : i32
    %c0_i32_1 = arith.constant 0 : i32
    %c0_i32_2 = arith.constant 0 : i32
    return %c0_i32, %c0_i32_0, %c0_i32_1 : i32, i32, i32
  }
  func.func @transform_1(%arg0: i32, %arg1: i32) -> (i32, i32) {
    %c1_i32 = arith.constant 1 : i32
    %0 = arith.subi %c1_i32, %arg0 : i32
    %1 = arith.muli %arg1, %0 : i32
    %c1_i32_0 = arith.constant 1 : i32
    %2 = arith.muli %c1_i32_0, %arg0 : i32
    %3 = arith.addi %1, %2 : i32
    %c0_i32 = arith.constant 0 : i32
    %c0_i32_1 = arith.constant 0 : i32
    return %c0_i32, %3 : i32, i32
  }
  func.func @transform_2(%arg0: i32, %arg1: i32) -> (i32, i32) {
    %c0_i32 = arith.constant 0 : i32
    %c0_i32_0 = arith.constant 0 : i32
    %c0_i32_1 = arith.constant 0 : i32
    return %c0_i32, %c0_i32_0 : i32, i32
  }
  func.func @transform_3(%arg0: i32, %arg1: i32) -> (i32, i32) {
    %c0_i32 = arith.constant 0 : i32
    %c0_i32_0 = arith.constant 0 : i32
    %c0_i32_1 = arith.constant 0 : i32
    return %c0_i32, %c0_i32_0 : i32, i32
  }
  func.func @transform_4(%arg0: i32, %arg1: i32) -> (i32, i32, i32) {
    %0 = arith.muli %arg1, %arg0 : i32
    %c0_i32 = arith.constant 0 : i32
    %c0_i32_0 = arith.constant 0 : i32
    %c0_i32_1 = arith.constant 0 : i32
    return %c0_i32, %c0_i32_0, %0 : i32, i32, i32
  }
}

</mosaic_0001>

<bundles_post_ra>
// kernel: forward.5
= control target key start
LH: loop header
LB: loop body
LE: loop exit
PB: predicated region body
PF: predicated region fallthrough
CT: control target
= control target key end

     0   :  { %s763_s9 = smov 0   ;;  %s765_s10 = smov 0   ;;  %s910_s0 = inlined_call_operand.vmem [shape: bf16[8,48], index: 0, kind: input, shape index: {}]   ;;  %s911_s1 = inlined_call_operand.vmem [shape: bf16[48,2048], index: 1, kind: input, shape index: {}]   ;;  %s912_s2 = inlined_call_operand.vmem [shape: bf16[8,2048], index: 2, kind: output, shape index: {}]  }
   0x1   :  { %s767_s11 = smov 0  }
   0x2 LB: > { %s648_s12 = sadd.s32 4294967295, %s745_s11   ;;  %s780_s13 = sadd.s32 1, %s745_s11   ;;  %s745_s11 = sphi %s767_s11, %s915_s11   ;;  %s741_s10 = sphi %s765_s10, %s914_s10   ;;  %s737_s9 = sphi %s763_s9, %s913_s9  }
   0x3   : > { %s37_s14 = ssub.s32 %s745_s11, %s780_s13  ;;  %s40_s15 = sadd.s32 1, %s741_s10 }
   0x4   : > { %p38_p0 = scmp.eq.s32.totalorder %s37_s14, 0  ;;  %p47_p1 = scmp.ne.s32.totalorder %s741_s10, %s737_s9 }
   0x5   : > { %p48_p2 = scmp.eq.s32.totalorder %s745_s11, 0  ;;  %p651_p4 = scmp.ge.s32.totalorder %s745_s11, 2 }
   0x6   : > { %s789_s16 = scalar_select %p38_p0, %s741_s10, %s40_s15  }
   0x7   : > { %p49_p3 = por %p48_p2, %p47_p1  ;;  %102 = sbr.rel (%p651_p4) target bundleno = 31 (0x1f), region = 20 }
   0xe   : > { %105 = sbr.rel (!%p49_p3) target bundleno = 31 (0x1f), region = 24  ;;  %s107_s17 = sand.u32 (%p49_p3), 1, %s741_s10  }
   0xf   : > { %s691_s18 = sshll.u32 (%p49_p3), %s745_s11, 5  ;;  %s696_s19 = smul.u32 (%p49_p3), 192, %s107_s17 }
  0x10   : > { %s797_s22 = scalar_lea.vmem (%p49_p3), %s911_s1, %s691_s18 }
  0x11   : > { %v125_v0 = vld [vmem:[%s797_s22] sm:$0xff] (%p49_p3)  ;;  %v127_v1 = vld [vmem:[%s797_s22 + $0x8] sm:$0xff] (%p49_p3)  ;;  %v129_v2 = vld [vmem:[%s797_s22 + $0x10] sm:$0xff] (%p49_p3)  ;;  %s805_s23 = scalar_lea.vmem (%p49_p3), [#allocation2], %s696_s19 }
  0x12   : > { %v131_v3 = vld [vmem:[%s797_s22 + $0x18] sm:$0xff] (%p49_p3)  ;;  %v133_v4 = vld [vmem:[%s797_s22 + $0x40] sm:$0xff] (%p49_p3)  ;;  %v135_v5 = vld [vmem:[%s797_s22 + $0x48] sm:$0xff] (%p49_p3)  ;;  %126 = vst [vmem:[%s805_s23] sm:$0xff] (%p49_p3), %v125_v0 }
  0x13   : > { %128 = vst [vmem:[%s805_s23 + $0x8] sm:$0xff] (%p49_p3), %v127_v1  ;;  %130 = vst [vmem:[%s805_s23 + $0x10] sm:$0xff] (%p49_p3), %v129_v2  ;;  %v137_v6 = vld [vmem:[%s797_s22 + $0x50] sm:$0xff] (%p49_p3)  ;;  %v139_v7 = vld [vmem:[%s797_s22 + $0x58] sm:$0xff] (%p49_p3) }
  0x14   : > { %132 = vst [vmem:[%s805_s23 + $0x18] sm:$0xff] (%p49_p3), %v131_v3  ;;  %134 = vst [vmem:[%s805_s23 + $0x20] sm:$0xff] (%p49_p3), %v133_v4  ;;  %v141_v8 = vld [vmem:[%s797_s22 + $0x80] sm:$0xff] (%p49_p3)  ;;  %v143_v9 = vld [vmem:[%s797_s22 + $0x88] sm:$0xff] (%p49_p3) }
  0x15   : > { %136 = vst [vmem:[%s805_s23 + $0x28] sm:$0xff] %v135_v5  ;;  %138 = vst [vmem:[%s805_s23 + $0x30] sm:$0xff] %v137_v6  ;;  %v145_v10 = vld [vmem:[%s797_s22 + $0x90] sm:$0xff]  ;;  %v147_v11 = vld [vmem:[%s797_s22 + $0x98] sm:$0xff] }
  0x16   : > { %140 = vst [vmem:[%s805_s23 + $0x38] sm:$0xff] %v139_v7  ;;  %142 = vst [vmem:[%s805_s23 + $0x40] sm:$0xff] %v141_v8  ;;  %v149_v12 = vld [vmem:[%s797_s22 + $0xc0] sm:$0xff]  ;;  %v151_v13 = vld [vmem:[%s797_s22 + $0xc8] sm:$0xff] }
  0x17   : > { %144 = vst [vmem:[%s805_s23 + $0x48] sm:$0xff] %v143_v9  ;;  %146 = vst [vmem:[%s805_s23 + $0x50] sm:$0xff] %v145_v10  ;;  %v153_v14 = vld [vmem:[%s797_s22 + $0xd0] sm:$0xff]  ;;  %v155_v15 = vld [vmem:[%s797_s22 + $0xd8] sm:$0xff] }
  0x18   : > { %148 = vst [vmem:[%s805_s23 + $0x58] sm:$0xff] %v147_v11  ;;  %150 = vst [vmem:[%s805_s23 + $0x60] sm:$0xff] %v149_v12  ;;  %v157_v16 = vld [vmem:[%s797_s22 + $0x100] sm:$0xff]  ;;  %v159_v17 = vld [vmem:[%s797_s22 + $0x108] sm:$0xff] }
  0x19   : > { %152 = vst [vmem:[%s805_s23 + $0x68] sm:$0xff] %v151_v13  ;;  %154 = vst [vmem:[%s805_s23 + $0x70] sm:$0xff] %v153_v14  ;;  %v161_v18 = vld [vmem:[%s797_s22 + $0x110] sm:$0xff]  ;;  %v163_v19 = vld [vmem:[%s797_s22 + $0x118] sm:$0xff] }
  0x1a   : > { %156 = vst [vmem:[%s805_s23 + $0x78] sm:$0xff] %v155_v15  ;;  %158 = vst [vmem:[%s805_s23 + $0x80] sm:$0xff] %v157_v16  ;;  %v165_v20 = vld [vmem:[%s797_s22 + $0x140] sm:$0xff]  ;;  %v167_v21 = vld [vmem:[%s797_s22 + $0x148] sm:$0xff] }
  0x1b   : > { %160 = vst [vmem:[%s805_s23 + $0x88] sm:$0xff] %v159_v17  ;;  %162 = vst [vmem:[%s805_s23 + $0x90] sm:$0xff] %v161_v18  ;;  %v169_v22 = vld [vmem:[%s797_s22 + $0x150] sm:$0xff]  ;;  %v171_v23 = vld [vmem:[%s797_s22 + $0x158] sm:$0xff] }
  0x1c   : > { %164 = vst [vmem:[%s805_s23 + $0x98] sm:$0xff] %v163_v19  ;;  %166 = vst [vmem:[%s805_s23 + $0xa0] sm:$0xff] %v165_v20 }
  0x1d   : > { %168 = vst [vmem:[%s805_s23 + $0xa8] sm:$0xff] %v167_v21  ;;  %170 = vst [vmem:[%s805_s23 + $0xb0] sm:$0xff] %v169_v22 }
  0x1e   : > { %172 = vst [vmem:[%s805_s23 + $0xb8] sm:$0xff] %v171_v23 }
  0x1f PF: > { %p654_p5 = scmp.ge.s32.totalorder %s745_s11, 1  ;;  %p177_p6 = scmp.lt.s32.totalorder %s745_s11, 3 }
  0x21   : > { %p178_p7 = pnand %p654_p5, %p177_p6 }
  0x22   : > { %s184_s24 = sand.u32 (!%p178_p7), 1, %s737_s9   ;;  %v747_v24 = vmov (!%p178_p7), 0   ;;  %v213_v59 = vld [vmem:[%s910_s0] sm:$0xf] (!%p178_p7)  ;;  %vm358_vm0 = vcmask (!%p178_p7), 392192   ;;  %s655_s29 = sshll.u32 (!%p178_p7), %s648_s12, 3 }
  0x23   : > { %181 = sbr.rel (%p178_p7) target bundleno = 287 (0x11f), region = 47  ;;  %394 = vmatprep.mubr.bf16.mxu0 (!%p178_p7), %v747_v24  ;;  %435 = vmatprep.mubr.bf16.mxu1 (!%p178_p7), %v747_v24  ;;  %p207_p8 = scmp.lt.s32.totalorder (!%p178_p7), %s655_s29, 15 }
  0x24   : > { %s697_s25 = smul.u32 (!%p178_p7), 192, %s184_s24 }
  0x26   : > { %s854_s26 = scalar_lea.vmem (!%p178_p7), [#allocation2], %s697_s25 }
  0x27   : > { %v214_v25 = vld [vmem:[%s854_s26] sm:$0xff] (!%p178_p7)  ;;  %v215_v27 = vld [vmem:[%s854_s26 + $0x8] sm:$0xff] (!%p178_p7)  ;;  %v216_v47 = vld [vmem:[%s854_s26 + $0x10] sm:$0xff] (!%p178_p7) }
  0x28   : > { %v218_v26 = vld [vmem:[%s854_s26 + $0x20] sm:$0xff] (!%p178_p7)  ;;  %v219_v29 = vld [vmem:[%s854_s26 + $0x28] sm:$0xff] (!%p178_p7)  ;;  %v220_v48 = vld [vmem:[%s854_s26 + $0x30] sm:$0xff] (!%p178_p7) }
  0x29   : > { %v658_v28 = vcombine.high (!%p178_p7), %v214_v25, %v218_v26  ;;  %v657_v30 = vcombine.low (!%p178_p7), %v214_v25, %v218_v26  ;;  %v222_v31 = vld [vmem:[%s854_s26 + $0x40] sm:$0xff] (!%p178_p7)  ;;  %v660_v33 = vcombine.high (!%p178_p7), %v215_v27, %v219_v29  ;;  %v659_v34 = vcombine.low (!%p178_p7), %v215_v27, %v219_v29  ;;  %v223_v36 = vld [vmem:[%s854_s26 + $0x48] sm:$0xff] (!%p178_p7)  ;;  %v217_v49 = vld [vmem:[%s854_s26 + $0x18] sm:$0xff] (!%p178_p7) }
  0x2a   : > { %v226_v32 = vld [vmem:[%s854_s26 + $0x60] sm:$0xff]  ;;  %v227_v37 = vld [vmem:[%s854_s26 + $0x68] sm:$0xff]  ;;  %v221_v50 = vld [vmem:[%s854_s26 + $0x38] sm:$0xff]  ;;  %v662_v53 = vcombine.high %v216_v47, %v220_v48  ;;  %v661_v60 = vcombine.low %v216_v47, %v220_v48  ;;  %s917_s29 = smov (!%p207_p8, %s655_s29), 15 }
  0x2b   : > { %v666_v35 = vcombine.high %v222_v31, %v226_v32  ;;  %v230_v38 = vld [vmem:[%s854_s26 + $0x80] sm:$0xff]  ;;  %362 = vmatprep.subr.bf16.mxu0 %v658_v28  ;;  %v668_v39 = vcombine.high %v223_v36, %v227_v37  ;;  %v231_v41 = vld [vmem:[%s854_s26 + $0x88] sm:$0xff]  ;;  %403 = vmatprep.subr.bf16.mxu1 %v660_v33  ;;  %v665_v43 = vcombine.low %v222_v31, %v226_v32  ;;  %v224_v55 = vld [vmem:[%s854_s26 + $0x50] sm:$0xff]  ;;  %s656_s30 = sshll.u32 %s917_s29, 2 }
  0x2c   : > { %v234_v40 = vld [vmem:[%s854_s26 + $0xa0] sm:$0xff]  ;;  %v235_v42 = vld [vmem:[%s854_s26 + $0xa8] sm:$0xff]  ;;  %363 = vmatpush1.bf16.msra.mxu0 %v657_v30  ;;  %404 = vmatpush1.bf16.msra.mxu1 %v659_v34  ;;  %v667_v44 = vcombine.low %v223_v36, %v227_v37  ;;  %v664_v54 = vcombine.high %v217_v49, %v221_v50  ;;  %v228_v56 = vld [vmem:[%s854_s26 + $0x70] sm:$0xff]  ;;  %v663_v61 = vcombine.low %v217_v49, %v221_v50  ;;  %s894_s5 = scalar_lea.vmem %s912_s2, %s656_s30 }
  0x2d   : > { %364 = vmatprep.subr.bf16.mxu0 %v666_v35  ;;  %v674_v45 = vcombine.high %v230_v38, %v234_v40  ;;  %405 = vmatprep.subr.bf16.mxu1 %v668_v39  ;;  %v676_v46 = vcombine.high %v231_v41, %v235_v42  ;;  %v673_v51 = vcombine.low %v230_v38, %v234_v40  ;;  %v225_v57 = vld [vmem:[%s854_s26 + $0x58] sm:$0xff]  ;;  %v232_v0 = vld [vmem:[%s854_s26 + $0x90] sm:$0xff] }
  0x2e   : > { %v675_v52 = vcombine.low %v231_v41, %v235_v42  ;;  %v229_v58 = vld [vmem:[%s854_s26 + $0x78] sm:$0xff]  ;;  %v670_v62 = vcombine.high %v224_v55, %v228_v56  ;;  %v236_v1 = vld [vmem:[%s854_s26 + $0xb0] sm:$0xff]  ;;  %v669_v4 = vcombine.low %v224_v55, %v228_v56 }
  0x2f   : > { %v672_v63 = vcombine.high %v225_v57, %v229_v58  ;;  %v233_v2 = vld [vmem:[%s854_s26 + $0x98] sm:$0xff]  ;;  %v671_v5 = vcombine.low %v225_v57, %v229_v58  ;;  %v678_v6 = vcombine.high %v232_v0, %v236_v1  ;;  %v677_v8 = vcombine.low %v232_v0, %v236_v1 }
  0x30   : > { %365 = vmatpush1.bf16.msra.mxu0 %v665_v43  ;;  %406 = vmatpush1.bf16.msra.mxu1 %v667_v44  ;;  %v237_v3 = vld [vmem:[%s854_s26 + $0xb8] sm:$0xff] }
  0x31   : > { %366 = vmatprep.subr.bf16.mxu0 %v674_v45  ;;  %407 = vmatprep.subr.bf16.mxu1 %v676_v46  ;;  %v680_v7 = vcombine.high %v233_v2, %v237_v3  ;;  %v679_v9 = vcombine.low %v233_v2, %v237_v3 }
  0x34   : > { %367 = vmatpush1.bf16.msra.mxu0 %v673_v51  ;;  %408 = vmatpush1.bf16.msra.mxu1 %v675_v52 }
  0x35   : > { %444 = vmatprep.subr.bf16.mxu0 %v662_v53  ;;  %485 = vmatprep.subr.bf16.mxu1 %v664_v54 }
  0x37   : > { %681 = vmatmul.mubr.msk.bf16.vlgmr.msra.gmra.mrb[0].mxu0 %vm358_vm0, %v213_v59  ;;  %682 = vmatmul.mubr.msk.bf16.vlgmr.msra.gmra.mrb[0].mxu1 %vm358_vm0, %v213_v59 }
  0x38   : > { %445 = vmatpush1.bf16.msra.mxu0 %v661_v60  ;;  %486 = vmatpush1.bf16.msra.mxu1 %v663_v61 }
  0x39   : > { %446 = vmatprep.subr.bf16.mxu0 %v670_v62  ;;  %487 = vmatprep.subr.bf16.mxu1 %v672_v63 }
  0x3a   : > { %476 = vmatprep.mubr.bf16.mxu0 %v747_v24  ;;  %517 = vmatprep.mubr.bf16.mxu1 %v747_v24 }
  0x3c   : > { %447 = vmatpush1.bf16.msra.mxu0 %v669_v4  ;;  %488 = vmatpush1.bf16.msra.mxu1 %v671_v5 }
  0x3d   : > { %448 = vmatprep.subr.bf16.mxu0 %v678_v6  ;;  %489 = vmatprep.subr.bf16.mxu1 %v680_v7 }
  0x40   : > { %449 = vmatpush1.bf16.msra.mxu0 %v677_v8  ;;  %490 = vmatpush1.bf16.msra.mxu1 %v679_v9 }
  0x43   : > { %683 = vmatmul.mubr.msk.bf16.vlgmr.msra.gmra.mrb[4].mxu0 %vm358_vm0, %v213_v59  ;;  %684 = vmatmul.mubr.msk.bf16.vlgmr.msra.gmra.mrb[4].mxu1 %vm358_vm0, %v213_v59 }
 0x10a   : > { %v396_v10 = vpop.f32.mrb[0].mxu0  ;;  %v437_v12 = vpop.f32.mrb[0].mxu1 }
 0x10b   : > { %vm526_vm1 = vcmp.ge.f32.partialorder %v396_v10, 0.0  ;;  %v534_v11 = vmul.f32 0.2, %v396_v10  ;;  %v398_v13 = vpop.f32.mrb[1].mxu0  ;;  %vm528_vm2 = vcmp.ge.f32.partialorder %v437_v12, 0.0  ;;  %v439_v17 = vpop.f32.mrb[1].mxu1 }
 0x10c   : > { %v536_v14 = vmul.f32 0.2, %v437_v12  ;;  %vm527_vm3 = vcmp.ge.f32.partialorder %v398_v13, 0.0  ;;  %v535_v15 = vmul.f32 0.2, %v398_v13  ;;  %v400_v18 = vpop.f32.mrb[2].mxu0 }
 0x10d   : > { %v542_v16 = vsel %vm526_vm1, %v396_v10, %v534_v11  ;;  %vm529_vm4 = vcmp.ge.f32.partialorder %v439_v17, 0.0  ;;  %v537_v21 = vmul.f32 0.2, %v439_v17  ;;  %v441_v22 = vpop.f32.mrb[2].mxu1  ;;  %v401_v23 = vpop.f32.mrb[3].mxu0 }
 0x10e   : > { %v544_v19 = vsel %vm528_vm2, %v437_v12, %v536_v14  ;;  %v543_v20 = vsel %vm527_vm3, %v398_v13, %v535_v15  ;;  %v442_v25 = vpop.f32.mrb[3].mxu1 }
 0x10f   : > { %v692_v24 = vpack.c.bf16 %v543_v20, %v542_v16  ;;  %v545_v26 = vsel %vm529_vm4, %v439_v17, %v537_v21 }
 0x110   : > { %v693_v27 = vpack.c.bf16 %v545_v26, %v544_v19 }
 0x111   : > { %582 = vst [vmem:[%s894_s5] sm:$0xff] %v692_v24 }
 0x112   : > { %583 = vst [vmem:[%s894_s5 + $0x8] sm:$0xff] %v693_v27 }
 0x116   : > { %v478_v28 = vpop.f32.mrb[4].mxu0  ;;  %v519_v30 = vpop.f32.mrb[4].mxu1 }
 0x117   : > { %vm530_vm5 = vcmp.ge.f32.partialorder %v478_v28, 0.0  ;;  %v538_v29 = vmul.f32 0.2, %v478_v28  ;;  %v480_v31 = vpop.f32.mrb[5].mxu0  ;;  %vm532_vm6 = vcmp.ge.f32.partialorder %v519_v30, 0.0  ;;  %v521_v35 = vpop.f32.mrb[5].mxu1 }
 0x118   : > { %v540_v32 = vmul.f32 0.2, %v519_v30  ;;  %vm531_vm7 = vcmp.ge.f32.partialorder %v480_v31, 0.0  ;;  %v539_v33 = vmul.f32 0.2, %v480_v31  ;;  %v482_v36 = vpop.f32.mrb[6].mxu0 }
 0x119   : > { %v546_v34 = vsel %vm530_vm5, %v478_v28, %v538_v29  ;;  %vm533_vm8 = vcmp.ge.f32.partialorder %v521_v35, 0.0  ;;  %v541_v39 = vmul.f32 0.2, %v521_v35  ;;  %v523_v40 = vpop.f32.mrb[6].mxu1  ;;  %v483_v41 = vpop.f32.mrb[7].mxu0 }
 0x11a   : > { %v548_v37 = vsel %vm532_vm6, %v519_v30, %v540_v32  ;;  %v547_v38 = vsel %vm531_vm7, %v480_v31, %v539_v33  ;;  %v524_v43 = vpop.f32.mrb[7].mxu1 }
 0x11b   : > { %v694_v42 = vpack.c.bf16 %v547_v38, %v546_v34  ;;  %v549_v44 = vsel %vm533_vm8, %v521_v35, %v541_v39 }
 0x11c   : > { %v695_v45 = vpack.c.bf16 %v549_v44, %v548_v37 }
 0x11d   : > { %584 = vst [vmem:[%s894_s5 + $0x10] sm:$0xff] %v694_v42 }
 0x11e   : > { %585 = vst [vmem:[%s894_s5 + $0x18] sm:$0xff] %v695_v45 }
 0x11f PF: > { %p9_p9 = scmp.ge.s32.totalorder %s780_s13, 4   ;;  %s913_s9 = smov %s741_s10 }
 0x120   : > { %s914_s10 = smov %s789_s16  ;;  %s915_s11 = smov %s780_s13 }
 0x121   :  { %11 = sbr.rel (!%p9_p9) target bundleno = 2 (0x2), region = 86 }

// kernel: forward.6
= control target key start
LH: loop header
LB: loop body
LE: loop exit
PB: predicated region body
PF: predicated region fallthrough
CT: control target
= control target key end

     0   :  { %s993_s15 = smov 0   ;;  %s995_s16 = smov 0   ;;  %s1149_s0 = inlined_call_operand.vmem [shape: bf16[1,16,128], index: 0, kind: input, shape index: {}]   ;;  %s1150_s1 = inlined_call_operand.vmem [shape: bf16[128,512], index: 1, kind: input, shape index: {}]   ;;  %s1151_s2 = inlined_call_operand.vmem [shape: f32[16,1], index: 2, kind: input, shape index: {}]   ;;  %s1152_s3 = inlined_call_operand.vmem [shape: f32[16,1], index: 3, kind: input, shape index: {}]   ;;  %s1153_s4 = inlined_call_operand.vmem [shape: bf16[1,16,512], index: 4, kind: output, shape index: {}]  }
   0x1   :  { %s997_s17 = smov 0  }
   0x2 LB: > { %s26_s18 = sadd.s32 1, %s959_s16  ;;  %p807_p0 = scmp.ge.s32.totalorder %s963_s17, 1  ;;  %s963_s17 = sphi %s997_s17, %s14_s17   ;;  %s959_s16 = sphi %s995_s16, %s1155_s16   ;;  %s955_s15 = sphi %s993_s15, %s1154_s15  }
   0x3   : > { %p28_p1 = scmp.ge.s32.totalorder %s26_s18, 2  ;;  %p185_p2 = scmp.lt.s32.totalorder %s963_s17, 3 }
   0x5   : > { %s1157_s18 = smov (%p28_p1, %s26_s18), 0  ;;  %p186_p3 = pnand %p807_p0, %p185_p2 }
   0x6   : > { %p234_p4 = scmp.eq.s32.totalorder (!%p186_p3), %s955_s15, 0 }
   0x7   : > { %189 = sbr.rel (%p186_p3) target bundleno = 606 (0x25e), region = 36 }
   0xe   : > { %239 = sbr.rel (!%p234_p4) target bundleno = 21 (0x15), region = 40  ;;  %vm240_vm0 = vcmask (%p234_p4), 7168   ;;  %v965_v0 = vmov (%p234_p4), 0.0  }
   0xf   : > { %241 = vst.msk [vmem:[#allocation3] sm:$0xff] (%p234_p4), %vm240_vm0, %v965_v0  ;;  %242 = vst.msk [vmem:[#allocation3 + $0x8] sm:$0xff] (%p234_p4), %vm240_vm0, %v965_v0 }
  0x10   : > { %243 = vst.msk [vmem:[#allocation4] sm:$0xff] (%p234_p4), %vm240_vm0, %v965_v0  ;;  %244 = vst.msk [vmem:[#allocation4 + $0x8] sm:$0xff] (%p234_p4), %vm240_vm0, %v965_v0 }
  0x15 PF: > { %p809_p5 = scmp.ne.s32.totalorder %s955_s15, 0 }
  0x16   : > { %v886_v1 = vld [vmem:[%s1150_s1 + $0x4] ss:$16 sps:$4 sm:$0xff] (!%p809_p5)   ;;  %v888_v2 = vld [vmem:[%s1150_s1 + $0xc] ss:$16 sps:$4 sm:$0xff] (!%p809_p5)   ;;  %v966_v3 = vmov (!%p809_p5), 0   ;;  %vm548_vm1 = vcmask (!%p809_p5), 7168  }
  0x17   : > { %247 = sbr.rel (%p809_p5) target bundleno = 427 (0x1ab), region = 44  ;;  %480 = vmatprep.mubr.bf16.mxu0 (!%p809_p5), %v966_v3  ;;  %523 = vmatprep.mubr.bf16.mxu1 (!%p809_p5), %v966_v3  ;;  %v890_v4 = vld [vmem:[%s1150_s1] ss:$16 sps:$4 sm:$0xff] (!%p809_p5)   ;;  %v891_v5 = vld [vmem:[%s1150_s1 + $0x8] ss:$16 sps:$4 sm:$0xff] (!%p809_p5)  }
  0x18   : > { %448 = vmatprep.subr.bf16.mxu0 (!%p809_p5), %v886_v1  ;;  %491 = vmatprep.subr.bf16.mxu1 (!%p809_p5), %v888_v2  ;;  %v892_v6 = vld [vmem:[%s1150_s1 + $0x24] ss:$16 sps:$4 sm:$0xff] (!%p809_p5)   ;;  %v894_v7 = vld [vmem:[%s1150_s1 + $0x2c] ss:$16 sps:$4 sm:$0xff] (!%p809_p5)   ;;  %v896_v8 = vld [vmem:[%s1150_s1 + $0x20] ss:$16 sps:$4 sm:$0xff] (!%p809_p5)  }
  0x19   : > { %449 = vmatpush1.bf16.msra.mxu0 (!%p809_p5), %v890_v4  ;;  %492 = vmatpush1.bf16.msra.mxu1 (!%p809_p5), %v891_v5  ;;  %v897_v9 = vld [vmem:[%s1150_s1 + $0x28] ss:$16 sps:$4 sm:$0xff] (!%p809_p5)   ;;  %v898_v10 = vld [vmem:[%s1150_s1 + $0x44] ss:$16 sps:$4 sm:$0xff] (!%p809_p5)   ;;  %v900_v11 = vld [vmem:[%s1150_s1 + $0x4c] ss:$16 sps:$4 sm:$0xff] (!%p809_p5)  }
  0x1a   : > { %450 = vmatprep.subr.bf16.mxu0 (!%p809_p5), %v892_v6  ;;  %493 = vmatprep.subr.bf16.mxu1 (!%p809_p5), %v894_v7  ;;  %v902_v12 = vld [vmem:[%s1150_s1 + $0x40] ss:$16 sps:$4 sm:$0xff] (!%p809_p5)   ;;  %v903_v13 = vld [vmem:[%s1150_s1 + $0x48] ss:$16 sps:$4 sm:$0xff] (!%p809_p5)   ;;  %v904_v14 = vld [vmem:[%s1150_s1 + $0x64] ss:$16 sps:$4 sm:$0xff] (!%p809_p5)  }
  0x1b   : > { %v906_v15 = vld [vmem:[%s1150_s1 + $0x6c] ss:$16 sps:$4 sm:$0xff] (!%p809_p5)   ;;  %v908_v16 = vld [vmem:[%s1150_s1 + $0x60] ss:$16 sps:$4 sm:$0xff] (!%p809_p5)   ;;  %v909_v17 = vld [vmem:[%s1150_s1 + $0x68] ss:$16 sps:$4 sm:$0xff] (!%p809_p5)  }
  0x1c   : > { %v910_v18 = vld [vmem:[%s1150_s1 + $0x84] ss:$16 sps:$4 sm:$0xff] (!%p809_p5)   ;;  %v912_v19 = vld [vmem:[%s1150_s1 + $0x8c] ss:$16 sps:$4 sm:$0xff] (!%p809_p5)   ;;  %v914_v20 = vld [vmem:[%s1150_s1 + $0x80] ss:$16 sps:$4 sm:$0xff] (!%p809_p5)  }
  0x1d   : > { %451 = vmatpush1.bf16.msra.mxu0 (!%p809_p5), %v896_v8  ;;  %494 = vmatpush1.bf16.msra.mxu1 (!%p809_p5), %v897_v9  ;;  %v915_v21 = vld [vmem:[%s1150_s1 + $0x88] ss:$16 sps:$4 sm:$0xff] (!%p809_p5)   ;;  %v916_v22 = vld [vmem:[%s1150_s1 + $0xa4] ss:$16 sps:$4 sm:$0xff] (!%p809_p5)   ;;  %v918_v23 = vld [vmem:[%s1150_s1 + $0xac] ss:$16 sps:$4 sm:$0xff] (!%p809_p5)  }
  0x1e   : > { %452 = vmatprep.subr.bf16.mxu0 %v898_v10  ;;  %495 = vmatprep.subr.bf16.mxu1 %v900_v11  ;;  %v920_v24 = vld [vmem:[%s1150_s1 + $0xa0] ss:$16 sps:$4 sm:$0xff]   ;;  %v921_v25 = vld [vmem:[%s1150_s1 + $0xa8] ss:$16 sps:$4 sm:$0xff]   ;;  %v922_v26 = vld [vmem:[%s1150_s1 + $0xc4] ss:$16 sps:$4 sm:$0xff]  }
  0x1f   : > { %v924_v27 = vld [vmem:[%s1150_s1 + $0xcc] ss:$16 sps:$4 sm:$0xff]   ;;  %v926_v28 = vld [vmem:[%s1150_s1 + $0xc0] ss:$16 sps:$4 sm:$0xff]   ;;  %v927_v29 = vld [vmem:[%s1150_s1 + $0xc8] ss:$16 sps:$4 sm:$0xff]  }
  0x20   : > { %v928_v30 = vld [vmem:[%s1150_s1 + $0xe4] ss:$16 sps:$4 sm:$0xff]   ;;  %v930_v31 = vld [vmem:[%s1150_s1 + $0xec] ss:$16 sps:$4 sm:$0xff]   ;;  %v932_v32 = vld [vmem:[%s1150_s1 + $0xe0] ss:$16 sps:$4 sm:$0xff]  }
  0x21   : > { %453 = vmatpush1.bf16.msra.mxu0 %v902_v12  ;;  %496 = vmatpush1.bf16.msra.mxu1 %v903_v13  ;;  %v933_v33 = vld [vmem:[%s1150_s1 + $0xe8] ss:$16 sps:$4 sm:$0xff]   ;;  %v934_v34 = vld [vmem:[%s1149_s0] sm:$0xff]   ;;  %v551_v2 = vld [vmem:[#allocation4] sm:$0xff] }
  0x22   : > { %454 = vmatprep.subr.bf16.mxu0 %v904_v14  ;;  %497 = vmatprep.subr.bf16.mxu1 %v906_v15  ;;  %v534_v63 = vld [vmem:[#allocation3] sm:$0xff]  ;;  %v535_v3 = vld [vmem:[#allocation3 + $0x8] sm:$0xff]  ;;  %v552_v8 = vld [vmem:[#allocation4 + $0x8] sm:$0xff] }
  0x25   : > { %455 = vmatpush1.bf16.msra.mxu0 %v908_v16  ;;  %498 = vmatpush1.bf16.msra.mxu1 %v909_v17 }
  0x26   : > { %456 = vmatprep.subr.bf16.mxu0 %v910_v18  ;;  %499 = vmatprep.subr.bf16.mxu1 %v912_v19 }
  0x29   : > { %457 = vmatpush1.bf16.msra.mxu0 %v914_v20  ;;  %500 = vmatpush1.bf16.msra.mxu1 %v915_v21 }
  0x2a   : > { %458 = vmatprep.subr.bf16.mxu0 %v916_v22  ;;  %501 = vmatprep.subr.bf16.mxu1 %v918_v23 }
  0x2d   : > { %459 = vmatpush1.bf16.msra.mxu0 %v920_v24  ;;  %502 = vmatpush1.bf16.msra.mxu1 %v921_v25 }
  0x2e   : > { %460 = vmatprep.subr.bf16.mxu0 %v922_v26  ;;  %503 = vmatprep.subr.bf16.mxu1 %v924_v27 }
  0x31   : > { %461 = vmatpush1.bf16.msra.mxu0 %v926_v28  ;;  %504 = vmatpush1.bf16.msra.mxu1 %v927_v29 }
  0x32   : > { %462 = vmatprep.subr.bf16.mxu0 %v928_v30  ;;  %505 = vmatprep.subr.bf16.mxu1 %v930_v31 }
  0x35   : > { %463 = vmatpush1.bf16.msra.mxu0 %v932_v32  ;;  %506 = vmatpush1.bf16.msra.mxu1 %v933_v33 }
  0x38   : > { %481 = vmatmul.mubr.bf16.vlgmr.msra.gmra.mrb[0].mxu0 %v934_v34  ;;  %524 = vmatmul.mubr.bf16.vlgmr.msra.gmra.mrb[0].mxu1 %v934_v34 }
 0x10b   : > { %v482_v35 = vpop.f32.mrb[0].mxu0  ;;  %v525_v36 = vpop.f32.mrb[0].mxu1 }
 0x10c   : > { %v553_v37 = vmul.f32 %v482_v35, %v482_v35  ;;  %579 = vst [vmem:[#allocation2] sm:$0xff] %v482_v35  ;;  %581 = vst [vmem:[#allocation2 + $0x10] sm:$0xff] %v525_v36  ;;  %v484_v38 = vpop.f32.mrb[1].mxu0  ;;  %v527_v39 = vpop.f32.mrb[1].mxu1  ;;  %v555_v44 = vmul.f32 %v525_v36, %v525_v36 }
 0x10d   : > { %v536_v40 = vadd.f32 %v484_v38, %v482_v35  ;;  %v554_v41 = vmul.f32 %v484_v38, %v484_v38  ;;  %580 = vst [vmem:[#allocation2 + $0x8] sm:$0xff] %v484_v38  ;;  %582 = vst [vmem:[#allocation2 + $0x18] sm:$0xff] %v527_v39  ;;  %v486_v42 = vpop.f32.mrb[2].mxu0  ;;  %v529_v43 = vpop.f32.mrb[2].mxu1  ;;  %v556_v56 = vmul.f32 %v527_v39, %v527_v39 }
 0x10e   : > { %v557_v45 = vmul.f32 %v486_v42, %v486_v42  ;;  %583 = vst [vmem:[#allocation2 + $0x20] sm:$0xff] %v486_v42  ;;  %585 = vst [vmem:[#allocation2 + $0x30] sm:$0xff] %v529_v43  ;;  %v488_v46 = vpop.f32.mrb[3].mxu0  ;;  %v531_v47 = vpop.f32.mrb[3].mxu1  ;;  %v559_v52 = vmul.f32 %v529_v43, %v529_v43 }
 0x10f   : > { %v541_v48 = vadd.f32 %v488_v46, %v486_v42  ;;  %v558_v49 = vmul.f32 %v488_v46, %v488_v46  ;;  %584 = vst [vmem:[#allocation2 + $0x28] sm:$0xff] %v488_v46  ;;  %586 = vst [vmem:[#allocation2 + $0x38] sm:$0xff] %v531_v47  ;;  %v537_v50 = vadd.f32 %v536_v40, %v525_v36 }
 0x110   : > { %v561_v51 = vadd.f32 %v554_v41, %v553_v37  ;;  %v560_v58 = vmul.f32 %v531_v47, %v531_v47 }
 0x111   : > { %v566_v53 = vadd.f32 %v558_v49, %v557_v45  ;;  %v538_v54 = vadd.f32 %v537_v50, %v527_v39  ;;  %v542_v55 = vadd.f32 %v541_v48, %v529_v43 }
 0x112   : > { %v562_v57 = vadd.f32 %v561_v51, %v555_v44 }
 0x113   : > { %539 = vadd.xlane.f32.xlu0 %v538_v54  ;;  %v543_v59 = vadd.f32 %v542_v55, %v531_v47  ;;  %v567_v60 = vadd.f32 %v566_v53, %v559_v52 }
 0x114   : > { %v563_v61 = vadd.f32 %v562_v57, %v556_v56 }
 0x115   : > { %v568_v62 = vadd.f32 %v567_v60, %v560_v58 }
 0x116   : > { %564 = vadd.xlane.f32.xlu1 %v563_v61 }
 0x117   : > { %544 = vadd.xlane.f32.xlu0 %v543_v59 }
 0x11a   : > { %569 = vadd.xlane.f32.xlu1 %v568_v62 }
 0x1a0   : > { %v540_v0 = vpop.xlane.xlu0 %539 }
 0x1a1   : > { %v546_v1 = vadd.f32 %v540_v0, %v534_v63 }
 0x1a3   : > { %549 = vst.msk [vmem:[#allocation3] sm:$0xff] %vm548_vm1, %v546_v1  ;;  %v565_v4 = vpop.xlane.xlu1 %564 }
 0x1a4   : > { %v571_v5 = vadd.f32 %v565_v4, %v551_v2  ;;  %v545_v6 = vpop.xlane.xlu0 %544 }
 0x1a5   : > { %v547_v7 = vadd.f32 %v545_v6, %v535_v3 }
 0x1a6   : > { %573 = vst.msk [vmem:[#allocation4] sm:$0xff] %vm548_vm1, %v571_v5 }
 0x1a7   : > { %550 = vst.msk [vmem:[#allocation3 + $0x8] sm:$0xff] %vm548_vm1, %v547_v7  ;;  %v570_v9 = vpop.xlane.xlu1 %569 }
 0x1a8   : > { %v572_v10 = vadd.f32 %v570_v9, %v552_v8 }
 0x1aa   : > { %574 = vst.msk [vmem:[#allocation4 + $0x8] sm:$0xff] %vm548_vm1, %v572_v10 }
 0x1ab PF: > { %p587_p6 = scmp.eq.s32.totalorder %s955_s15, 1 }
 0x1ac   : > { %v592_v11 = vld [vmem:[#allocation3] sm:$0xff] (%p587_p6)  ;;  %v609_v26 = vld [vmem:[%s1151_s2 + $0x8] sm:$0xff] (%p587_p6)  ;;  %vm612_vm2 = vcmask (%p587_p6), 7168  }
 0x1ad   : > { %591 = sbr.rel (!%p587_p6) target bundleno = 458 (0x1ca), region = 48  ;;  %v596_v12 = vld [vmem:[#allocation4] sm:$0xff] (%p587_p6)  ;;  %v594_v13 = vmul.f32 (%p587_p6), 0.0025, %v592_v11  ;;  %v608_v25 = vld [vmem:[%s1151_s2] sm:$0xff] (%p587_p6)  ;;  %v616_v33 = vld [vmem:[%s1152_s3 + $0x8] sm:$0xff] (%p587_p6) }
 0x1ae   : > { %v598_v14 = vmul.f32 (%p587_p6), 0.0025, %v596_v12  ;;  %v593_v15 = vld [vmem:[#allocation3 + $0x8] sm:$0xff] (%p587_p6)  ;;  %v615_v31 = vld [vmem:[%s1152_s3] sm:$0xff] (%p587_p6) }
 0x1af   : > { %v595_v17 = vmul.f32 (%p587_p6), 0.0025, %v593_v15  ;;  %v600_v19 = vmul.f32 (%p587_p6), %v594_v13, %v594_v13 }
 0x1b1   : > { %v597_v16 = vld [vmem:[#allocation4 + $0x8] sm:$0xff] (%p587_p6)  ;;  %v601_v20 = vmul.f32 (%p587_p6), %v595_v17, %v595_v17  ;;  %v602_v21 = vsub.f32 (%p587_p6), %v598_v14, %v600_v19 }
 0x1b2   : > { %v599_v18 = vmul.f32 (%p587_p6), 0.0025, %v597_v16 }
 0x1b3   : > { %v604_v23 = vadd.f32 (%p587_p6), 1e-05, %v602_v21 }
 0x1b4   : > { %v603_v22 = vsub.f32 %v599_v18, %v601_v20 }
 0x1b5   : > { %935 = vrsqrt.f32 %v604_v23 }
 0x1b6   : > { %v605_v24 = vadd.f32 1e-05, %v603_v22 }
 0x1b8   : > { %937 = vrsqrt.f32 %v605_v24 }
 0x1bf   : > { %v936_v27 = vpop.eup %935 }
 0x1c0   : > { %v610_v29 = vmul.f32 %v936_v27, %v608_v25 }
 0x1c2   : > { %v938_v28 = vpop.eup %937  ;;  %613 = vst.msk [vmem:[#allocation5] sm:$0xff] %vm612_vm2, %v610_v29  ;;  %v617_v32 = vmul.f32 %v610_v29, %v594_v13 }
 0x1c3   : > { %v611_v30 = vmul.f32 %v938_v28, %v609_v26 }
 0x1c4   : > { %v619_v35 = vsub.f32 %v615_v31, %v617_v32 }
 0x1c5   : > { %614 = vst.msk [vmem:[#allocation5 + $0x8] sm:$0xff] %vm612_vm2, %v611_v30  ;;  %v618_v34 = vmul.f32 %v611_v30, %v595_v17 }
 0x1c6   : > { %621 = vst.msk [vmem:[#allocation6] sm:$0xff] %vm612_vm2, %v619_v35 }
 0x1c7   : > { %v620_v36 = vsub.f32 %v616_v33, %v618_v34 }
 0x1c9   : > { %622 = vst.msk [vmem:[#allocation6 + $0x8] sm:$0xff] %vm612_vm2, %v620_v36 }
 0x1ca PF: > { %p844_p7 = scmp.ne.s32.totalorder %s955_s15, 1 }
 0x1cb   : > { %v638_v38 = vld [vmem:[#allocation5] sm:$0xff] (!%p844_p7)  ;;  %v967_v39 = vmov (!%p844_p7), 0   ;;  %v631_v43 = vld [vmem:[#allocation2 + $0x8] sm:$0xff] (!%p844_p7)  ;;  %v632_v44 = vld [vmem:[#allocation2 + $0x10] sm:$0xff] (!%p844_p7) }
 0x1cc   : > { %625 = sbr.rel (%p844_p7) target bundleno = 606 (0x25e), region = 52  ;;  %940 = vset.pattern.permute.xlu1 (!%p844_p7), %v967_v39  ;;  %939 = vset.pattern.permute.xlu0 (!%p844_p7), %v967_v39  ;;  %v639_v41 = vld [vmem:[#allocation5 + $0x8] sm:$0xff] (!%p844_p7)  ;;  %v630_v42 = vld [vmem:[#allocation2] sm:$0xff] (!%p844_p7)  ;;  %v633_v45 = vld [vmem:[#allocation2 + $0x18] sm:$0xff] (!%p844_p7) }
 0x1cd   : > { %v658_v37 = vld [vmem:[#allocation6] sm:$0xff] (!%p844_p7)  ;;  %642 = vperm.xlu0 (!%p844_p7), %939, %v638_v38   ;;  %v634_v56 = vld [vmem:[#allocation2 + $0x20] sm:$0xff] (!%p844_p7)  ;;  %v635_v58 = vld [vmem:[#allocation2 + $0x28] sm:$0xff] (!%p844_p7) }
 0x1ce   : > { %662 = vperm.xlu1 (!%p844_p7), %940, %v658_v37   ;;  %v636_v59 = vld [vmem:[#allocation2 + $0x30] sm:$0xff] (!%p844_p7)  ;;  %v637_v60 = vld [vmem:[#allocation2 + $0x38] sm:$0xff] (!%p844_p7) }
 0x1d0   : > { %v659_v40 = vld [vmem:[#allocation6 + $0x8] sm:$0xff] (!%p844_p7) }
 0x1d1   : > { %647 = vperm.xlu0 (!%p844_p7), %939, %v639_v41  }
 0x1d2   : > { %667 = vperm.xlu1 (!%p844_p7), %940, %v659_v40  }
 0x24c   : > { %v643_v46 = vpop.permute.xlu0 %642 }
 0x24d   : > { %v663_v47 = vpop.permute.xlu1 %662  ;;  %v650_v48 = vmul.f32 %v643_v46, %v630_v42  ;;  %v651_v49 = vmul.f32 %v643_v46, %v631_v43  ;;  %v652_v50 = vmul.f32 %v643_v46, %v632_v44  ;;  %v653_v51 = vmul.f32 %v643_v46, %v633_v45 }
 0x24f   : > { %v670_v52 = vadd.f32 %v663_v47, %v650_v48  ;;  %v671_v53 = vadd.f32 %v663_v47, %v651_v49  ;;  %v672_v54 = vadd.f32 %v663_v47, %v652_v50  ;;  %v673_v55 = vadd.f32 %v663_v47, %v653_v51 }
 0x250   : > { %v648_v57 = vpop.permute.xlu0 %647 }
 0x251   : > { %vm678_vm3 = vcmp.ge.f32.partialorder %v670_v52, 0.0  ;;  %vm679_vm4 = vcmp.ge.f32.partialorder %v671_v53, 0.0  ;;  %vm680_vm5 = vcmp.ge.f32.partialorder %v672_v54, 0.0  ;;  %vm681_vm6 = vcmp.ge.f32.partialorder %v673_v55, 0.0  ;;  %v668_v2 = vpop.permute.xlu1 %667 }
 0x252   : > { %v686_v61 = vmul.f32 0.2, %v670_v52  ;;  %v687_v62 = vmul.f32 0.2, %v671_v53  ;;  %v688_v63 = vmul.f32 0.2, %v672_v54  ;;  %v654_v0 = vmul.f32 %v648_v57, %v634_v56 }
 0x253   : > { %v689_v1 = vmul.f32 0.2, %v673_v55  ;;  %v655_v3 = vmul.f32 %v648_v57, %v635_v58  ;;  %v656_v4 = vmul.f32 %v648_v57, %v636_v59  ;;  %v657_v5 = vmul.f32 %v648_v57, %v637_v60 }
 0x254   : > { %v694_v6 = vsel %vm678_vm3, %v670_v52, %v686_v61  ;;  %v695_v7 = vsel %vm679_vm4, %v671_v53, %v687_v62  ;;  %v696_v8 = vsel %vm680_vm5, %v672_v54, %v688_v63  ;;  %v674_v9 = vadd.f32 %v668_v2, %v654_v0 }
 0x255   : > { %v697_v10 = vsel %vm681_vm6, %v673_v55, %v689_v1  ;;  %v855_v11 = vpack.c.bf16 %v695_v7, %v694_v6  ;;  %v675_v12 = vadd.f32 %v668_v2, %v655_v3  ;;  %v676_v13 = vadd.f32 %v668_v2, %v656_v4 }
 0x256   : > { %v856_v14 = vpack.c.bf16 %v697_v10, %v696_v8  ;;  %v677_v15 = vadd.f32 %v668_v2, %v657_v5  ;;  %vm682_vm7 = vcmp.ge.f32.partialorder %v674_v9, 0.0  ;;  %v690_v16 = vmul.f32 0.2, %v674_v9 }
 0x257   : > { %726 = vst [vmem:[%s1153_s4] sm:$0xff] %v855_v11  ;;  %vm683_vm8 = vcmp.ge.f32.partialorder %v675_v12, 0.0  ;;  %vm684_vm9 = vcmp.ge.f32.partialorder %v676_v13, 0.0  ;;  %v691_v17 = vmul.f32 0.2, %v675_v12  ;;  %v692_v18 = vmul.f32 0.2, %v676_v13 }
 0x258   : > { %727 = vst [vmem:[%s1153_s4 + $0x8] sm:$0xff] %v856_v14  ;;  %vm685_vm10 = vcmp.ge.f32.partialorder %v677_v15, 0.0  ;;  %v693_v19 = vmul.f32 0.2, %v677_v15  ;;  %v698_v20 = vsel %vm682_vm7, %v674_v9, %v690_v16 }
 0x259   : > { %v699_v21 = vsel %vm683_vm8, %v675_v12, %v691_v17  ;;  %v700_v22 = vsel %vm684_vm9, %v676_v13, %v692_v18 }
 0x25a   : > { %v701_v23 = vsel %vm685_vm10, %v677_v15, %v693_v19  ;;  %v857_v24 = vpack.c.bf16 %v699_v21, %v698_v20 }
 0x25b   : > { %v858_v25 = vpack.c.bf16 %v701_v23, %v700_v22 }
 0x25c   : > { %728 = vst [vmem:[%s1153_s4 + $0x10] sm:$0xff] %v857_v24 }
 0x25d   : > { %729 = vst [vmem:[%s1153_s4 + $0x18] sm:$0xff] %v858_v25 }
 0x25e PF: > { %s14_s17 = sadd.s32 1, %s963_s17   ;;  %s1154_s15 = smov %s959_s16 }
 0x25f   : > { %p11_p8 = scmp.ge.s32.totalorder %s14_s17, 4   ;;  %s1155_s16 = smov %s1157_s18 }
 0x261   :  { %13 = sbr.rel (!%p11_p8) target bundleno = 2 (0x2), region = 84 }

// kernel: squeeze.1
= control target key start
LH: loop header
LB: loop body
LE: loop exit
PB: predicated region body
PF: predicated region fallthrough
CT: control target
= control target key end

     0   :  { %vm802_vm0 = vcmask 130048   ;;  %s2627_s0 = inlined_call_operand.vmem [shape: bf16[1,16,400], index: 0, kind: input, shape index: {}]   ;;  %s2628_s1 = inlined_call_operand.vmem [shape: bf16[16,4,10,10], index: 1, kind: output, shape index: {}]  }
   0x1   :  { %v2223_v0 = vld [vmem:[%s2627_s0 + $0xc0] sm:$0xff]   ;;  %v2224_v1 = vld [vmem:[%s2627_s0 + $0xb8] sm:$0xff]   ;;  %v2225_v2 = vld [vmem:[%s2627_s0 + $0xb0] sm:$0xff]  }
   0x2   :  { %v1925_v3 = vunpack.c.l.bf16 %v2223_v0  ;;  %v1926_v4 = vunpack.c.h.bf16 %v2223_v0  ;;  %v1929_v5 = vunpack.c.l.bf16 %v2224_v1  ;;  %v1930_v6 = vunpack.c.h.bf16 %v2224_v1  ;;  %v2226_v7 = vld [vmem:[%s2627_s0 + $0xa8] sm:$0xff]   ;;  %v2227_v8 = vld [vmem:[%s2627_s0 + $0xa0] sm:$0xff]   ;;  %v2228_v9 = vld [vmem:[%s2627_s0 + $0x98] sm:$0xff]  }
   0x3   :  { %v1933_v10 = vunpack.c.l.bf16 %v2225_v2  ;;  %v1934_v11 = vunpack.c.h.bf16 %v2225_v2  ;;  %v1937_v12 = vunpack.c.l.bf16 %v2226_v7  ;;  %v1938_v13 = vunpack.c.h.bf16 %v2226_v7  ;;  %v2229_v14 = vld [vmem:[%s2627_s0 + $0x90] sm:$0xff]   ;;  %v2230_v15 = vld [vmem:[%s2627_s0 + $0x88] sm:$0xff]   ;;  %v2323_v16 = vld [vmem:[%s2627_s0 + $0x80] sm:$0xff]  }
   0x4   :  { %v1941_v17 = vunpack.c.l.bf16 %v2227_v8  ;;  %v1942_v18 = vunpack.c.h.bf16 %v2227_v8  ;;  %v1945_v19 = vunpack.c.l.bf16 %v2228_v9  ;;  %v1946_v20 = vunpack.c.h.bf16 %v2228_v9  ;;  %v2232_v21 = vld [vmem:[%s2627_s0 + $0x78] sm:$0xff]   ;;  %v2331_v22 = vld [vmem:[%s2627_s0 + $0x70] sm:$0xff]   ;;  %v2336_v23 = vld [vmem:[%s2627_s0 + $0x68] sm:$0xff]   ;;  %1087 = vst.msk [vmem:[#allocation0 + $0x248] sm:$0x3] %vm802_vm0, %v1929_v5  }
   0x5   :  { %1089 = vst.msk [vmem:[#allocation0 + $0x24e] sm:$0xfc] %vm802_vm0, %v1929_v5   ;;  %1094 = vst.msk [vmem:[#allocation0 + $0x256] sm:$0xf] %vm802_vm0, %v1930_v6   ;;  %v1949_v24 = vunpack.c.l.bf16 %v2229_v14  ;;  %v1950_v25 = vunpack.c.h.bf16 %v2229_v14  ;;  %v1953_v26 = vunpack.c.l.bf16 %v2230_v15  ;;  %v1954_v27 = vunpack.c.h.bf16 %v2230_v15  ;;  %v2348_v28 = vld [vmem:[%s2627_s0 + $0x60] sm:$0xff]   ;;  %v2353_v29 = vld [vmem:[%s2627_s0 + $0x58] sm:$0xff]  }
   0x6   :  { %1096 = vst.msk [vmem:[#allocation0 + $0x25c] sm:$0xf0] %vm802_vm0, %v1930_v6   ;;  %1101 = vst.msk [vmem:[#allocation0 + $0x264] sm:$0x3f] %vm802_vm0, %v1925_v3   ;;  %v1957_v30 = vunpack.c.l.bf16 %v2323_v16  ;;  %v1958_v31 = vunpack.c.h.bf16 %v2323_v16  ;;  %v1961_v32 = vunpack.c.l.bf16 %v2232_v21  ;;  %v1962_v33 = vunpack.c.h.bf16 %v2232_v21  ;;  %v2366_v34 = vld [vmem:[%s2627_s0 + $0x50] sm:$0xff]   ;;  %v2371_v35 = vld [vmem:[%s2627_s0 + $0x48] sm:$0xff]  }
   0x7   :  { %1103 = vst.msk [vmem:[#allocation0 + $0x26a] sm:$0xc0] %vm802_vm0, %v1925_v3   ;;  %1108 = vst.msk [vmem:[#allocation0 + $0x272] sm:$0xff] %vm802_vm0, %v1926_v4   ;;  %v1965_v36 = vunpack.c.l.bf16 %v2331_v22  ;;  %v1966_v37 = vunpack.c.h.bf16 %v2331_v22  ;;  %v1969_v38 = vunpack.c.l.bf16 %v2336_v23  ;;  %v1970_v39 = vunpack.c.h.bf16 %v2336_v23  ;;  %v2386_v40 = vld [vmem:[%s2627_s0 + $0x40] sm:$0xff]   ;;  %v2391_v41 = vld [vmem:[%s2627_s0 + $0x38] sm:$0xff]  }
   0x8   :  { %1063 = vst.msk [vmem:[#allocation0 + $0x216] sm:$0xf] %vm802_vm0, %v1937_v12   ;;  %1065 = vst.msk [vmem:[#allocation0 + $0x21c] sm:$0xf0] %vm802_vm0, %v1937_v12   ;;  %v1973_v42 = vunpack.c.l.bf16 %v2348_v28  ;;  %v1974_v43 = vunpack.c.h.bf16 %v2348_v28  ;;  %v1977_v44 = vunpack.c.l.bf16 %v2353_v29  ;;  %v1978_v45 = vunpack.c.h.bf16 %v2353_v29  ;;  %v2406_v46 = vld [vmem:[%s2627_s0 + $0x30] sm:$0xff]   ;;  %v2411_v47 = vld [vmem:[%s2627_s0 + $0x28] sm:$0xff]  }
   0x9   :  { %1070 = vst.msk [vmem:[#allocation0 + $0x224] sm:$0x3f] %vm802_vm0, %v1938_v13   ;;  %1072 = vst.msk [vmem:[#allocation0 + $0x22a] sm:$0xc0] %vm802_vm0, %v1938_v13   ;;  %v1981_v48 = vunpack.c.l.bf16 %v2366_v34  ;;  %v1982_v49 = vunpack.c.h.bf16 %v2366_v34  ;;  %v1985_v50 = vunpack.c.l.bf16 %v2371_v35  ;;  %v1986_v51 = vunpack.c.h.bf16 %v2371_v35  ;;  %v2427_v52 = vld [vmem:[%s2627_s0 + $0x20] sm:$0xff]   ;;  %v2432_v53 = vld [vmem:[%s2627_s0 + $0x18] sm:$0xff]  }
   0xa   :  { %1077 = vst.msk [vmem:[#allocation0 + $0x232] sm:$0xff] %vm802_vm0, %v1933_v10   ;;  %1082 = vst.msk [vmem:[#allocation0 + $0x240] sm:$0xff] %vm802_vm0, %v1934_v11   ;;  %v1989_v54 = vunpack.c.l.bf16 %v2386_v40  ;;  %v1990_v55 = vunpack.c.h.bf16 %v2386_v40  ;;  %v1993_v56 = vunpack.c.l.bf16 %v2391_v41  ;;  %v1994_v57 = vunpack.c.h.bf16 %v2391_v41  ;;  %v2448_v58 = vld [vmem:[%s2627_s0 + $0x10] sm:$0xff]   ;;  %v2246_v59 = vld [vmem:[%s2627_s0 + $0x8] sm:$0xff]  }
   0xb   :  { %1039 = vst.msk [vmem:[#allocation0 + $0x1e4] sm:$0x3f] %vm802_vm0, %v1945_v19   ;;  %1041 = vst.msk [vmem:[#allocation0 + $0x1ea] sm:$0xc0] %vm802_vm0, %v1945_v19   ;;  %v1997_v60 = vunpack.c.l.bf16 %v2406_v46  ;;  %v1998_v61 = vunpack.c.h.bf16 %v2406_v46  ;;  %v2001_v62 = vunpack.c.l.bf16 %v2411_v47  ;;  %v2002_v63 = vunpack.c.h.bf16 %v2411_v47  ;;  %v2020_v0 = vld [vmem:[%s2627_s0] sm:$0xff]  }
   0xc   :  { %1046 = vst.msk [vmem:[#allocation0 + $0x1f2] sm:$0xff] %vm802_vm0, %v1946_v20   ;;  %1051 = vst.msk [vmem:[#allocation0 + $0x200] sm:$0xff] %vm802_vm0, %v1941_v17   ;;  %v1628_v1 = vld [vmem:[#allocation0 + $0x250] sm:$0xff]  ;;  %v2005_v2 = vunpack.c.l.bf16 %v2427_v52  ;;  %v2006_v3 = vunpack.c.h.bf16 %v2427_v52  ;;  %v2009_v4 = vunpack.c.l.bf16 %v2432_v53  ;;  %v2010_v5 = vunpack.c.h.bf16 %v2432_v53  ;;  %v1635_v8 = vld [vmem:[#allocation0 + $0x258] sm:$0xff] }
   0xd   :  { %1056 = vst.msk [vmem:[#allocation0 + $0x208] sm:$0x3] %vm802_vm0, %v1942_v18   ;;  %1058 = vst.msk [vmem:[#allocation0 + $0x20e] sm:$0xfc] %vm802_vm0, %v1942_v18   ;;  %v2013_v9 = vunpack.c.l.bf16 %v2448_v58  ;;  %v2014_v10 = vunpack.c.h.bf16 %v2448_v58  ;;  %v2017_v11 = vunpack.c.l.bf16 %v2246_v59  ;;  %v2018_v12 = vunpack.c.h.bf16 %v2246_v59 }
   0xe   :  { %1015 = vst.msk [vmem:[#allocation0 + $0x1b2] sm:$0xff] %vm802_vm0, %v1953_v26   ;;  %1020 = vst.msk [vmem:[#allocation0 + $0x1c0] sm:$0xff] %vm802_vm0, %v1954_v27   ;;  %v2021_v15 = vunpack.c.l.bf16 %v2020_v0  ;;  %v2022_v16 = vunpack.c.h.bf16 %v2020_v0 }
   0xf   :  { %1025 = vst.msk [vmem:[#allocation0 + $0x1c8] sm:$0x3] %vm802_vm0, %v1949_v24   ;;  %1027 = vst.msk [vmem:[#allocation0 + $0x1ce] sm:$0xfc] %vm802_vm0, %v1949_v24   ;;  %v2211_v24 = vpack.c.bf16 %v1635_v8, %v1628_v1 }
  0x10   :  { %1032 = vst.msk [vmem:[#allocation0 + $0x1d6] sm:$0xf] %vm802_vm0, %v1950_v25   ;;  %1034 = vst.msk [vmem:[#allocation0 + $0x1dc] sm:$0xf0] %vm802_vm0, %v1950_v25   ;;  %v1586_v6 = vld [vmem:[#allocation0 + $0x220] sm:$0xff]  ;;  %v1593_v7 = vld [vmem:[#allocation0 + $0x228] sm:$0xff] }
  0x11   :  { %989 = vst.msk [vmem:[#allocation0 + $0x180] sm:$0xff] %vm802_vm0, %v1961_v32   ;;  %994 = vst.msk [vmem:[#allocation0 + $0x188] sm:$0x3] %vm802_vm0, %v1962_v33   ;;  %v2196_v20 = vpack.c.bf16 %v1593_v7, %v1586_v6 }
  0x12   :  { %996 = vst.msk [vmem:[#allocation0 + $0x18e] sm:$0xfc] %vm802_vm0, %v1962_v33   ;;  %1001 = vst.msk [vmem:[#allocation0 + $0x196] sm:$0xf] %vm802_vm0, %v1957_v30  }
  0x13   :  { %1003 = vst.msk [vmem:[#allocation0 + $0x19c] sm:$0xf0] %vm802_vm0, %v1957_v30   ;;  %1008 = vst.msk [vmem:[#allocation0 + $0x1a4] sm:$0x3f] %vm802_vm0, %v1958_v31   ;;  %v1544_v13 = vld [vmem:[#allocation0 + $0x1f0] sm:$0xff]  ;;  %v1551_v14 = vld [vmem:[#allocation0 + $0x1f8] sm:$0xff] }
  0x14   :  { %1010 = vst.msk [vmem:[#allocation0 + $0x1aa] sm:$0xc0] %vm802_vm0, %v1958_v31   ;;  %963 = vst.msk [vmem:[#allocation0 + $0x148] sm:$0x3] %vm802_vm0, %v1969_v38   ;;  %v2181_v19 = vpack.c.bf16 %v1551_v14, %v1544_v13 }
  0x15   :  { %965 = vst.msk [vmem:[#allocation0 + $0x14e] sm:$0xfc] %vm802_vm0, %v1969_v38   ;;  %970 = vst.msk [vmem:[#allocation0 + $0x156] sm:$0xf] %vm802_vm0, %v1970_v39   ;;  %v1502_v17 = vld [vmem:[#allocation0 + $0x1c0] sm:$0xff] }
  0x16   :  { %972 = vst.msk [vmem:[#allocation0 + $0x15c] sm:$0xf0] %vm802_vm0, %v1970_v39   ;;  %977 = vst.msk [vmem:[#allocation0 + $0x164] sm:$0x3f] %vm802_vm0, %v1965_v36   ;;  %v1509_v18 = vld [vmem:[#allocation0 + $0x1c8] sm:$0xff] }
  0x17   :  { %979 = vst.msk [vmem:[#allocation0 + $0x16a] sm:$0xc0] %vm802_vm0, %v1965_v36   ;;  %984 = vst.msk [vmem:[#allocation0 + $0x172] sm:$0xff] %vm802_vm0, %v1966_v37   ;;  %v2166_v23 = vpack.c.bf16 %v1509_v18, %v1502_v17 }
  0x18   :  { %939 = vst.msk [vmem:[#allocation0 + $0x116] sm:$0xf] %vm802_vm0, %v1977_v44   ;;  %941 = vst.msk [vmem:[#allocation0 + $0x11c] sm:$0xf0] %vm802_vm0, %v1977_v44   ;;  %v1446_v21 = vld [vmem:[#allocation0 + $0x180] sm:$0xff]  ;;  %v1453_v22 = vld [vmem:[#allocation0 + $0x188] sm:$0xff] }
  0x19   :  { %946 = vst.msk [vmem:[#allocation0 + $0x124] sm:$0x3f] %vm802_vm0, %v1978_v45   ;;  %948 = vst.msk [vmem:[#allocation0 + $0x12a] sm:$0xc0] %vm802_vm0, %v1978_v45   ;;  %v2146_v27 = vpack.c.bf16 %v1453_v22, %v1446_v21  ;;  %v1460_v17 = vld [vmem:[#allocation0 + $0x190] sm:$0xff] }
  0x1a   :  { %953 = vst.msk [vmem:[#allocation0 + $0x132] sm:$0xff] %vm802_vm0, %v1973_v42   ;;  %958 = vst.msk [vmem:[#allocation0 + $0x140] sm:$0xff] %vm802_vm0, %v1974_v43  }
  0x1b   :  { %915 = vst.msk [vmem:[#allocation0 + $0xe4] sm:$0x3f] %vm802_vm0, %v1985_v50   ;;  %917 = vst.msk [vmem:[#allocation0 + $0xea] sm:$0xc0] %vm802_vm0, %v1985_v50   ;;  %v1397_v6 = vld [vmem:[#allocation0 + $0x148] sm:$0xff] }
  0x1c   :  { %922 = vst.msk [vmem:[#allocation0 + $0xf2] sm:$0xff] %vm802_vm0, %v1986_v51   ;;  %927 = vst.msk [vmem:[#allocation0 + $0x100] sm:$0xff] %vm802_vm0, %v1981_v48   ;;  %v1404_v25 = vld [vmem:[#allocation0 + $0x150] sm:$0xff]  ;;  %v1411_v26 = vld [vmem:[#allocation0 + $0x158] sm:$0xff] }
  0x1d   :  { %932 = vst.msk [vmem:[#allocation0 + $0x108] sm:$0x3] %vm802_vm0, %v1982_v49   ;;  %934 = vst.msk [vmem:[#allocation0 + $0x10e] sm:$0xfc] %vm802_vm0, %v1982_v49   ;;  %v2131_v30 = vpack.c.bf16 %v1411_v26, %v1404_v25 }
  0x1e   :  { %891 = vst.msk [vmem:[#allocation0 + $0xb2] sm:$0xff] %vm802_vm0, %v1993_v56   ;;  %896 = vst.msk [vmem:[#allocation0 + $0xc0] sm:$0xff] %vm802_vm0, %v1994_v57  }
  0x1f   :  { %901 = vst.msk [vmem:[#allocation0 + $0xc8] sm:$0x3] %vm802_vm0, %v1989_v54   ;;  %903 = vst.msk [vmem:[#allocation0 + $0xce] sm:$0xfc] %vm802_vm0, %v1989_v54   ;;  %v1355_v1 = vld [vmem:[#allocation0 + $0x118] sm:$0xff] }
  0x20   :  { %908 = vst.msk [vmem:[#allocation0 + $0xd6] sm:$0xf] %vm802_vm0, %v1990_v55   ;;  %910 = vst.msk [vmem:[#allocation0 + $0xdc] sm:$0xf0] %vm802_vm0, %v1990_v55   ;;  %v1362_v28 = vld [vmem:[#allocation0 + $0x120] sm:$0xff]  ;;  %v1369_v29 = vld [vmem:[#allocation0 + $0x128] sm:$0xff] }
  0x21   :  { %865 = vst.msk [vmem:[#allocation0 + $0x80] sm:$0xff] %vm802_vm0, %v2001_v62   ;;  %870 = vst.msk [vmem:[#allocation0 + $0x88] sm:$0x3] %vm802_vm0, %v2002_v63   ;;  %v2116_v33 = vpack.c.bf16 %v1369_v29, %v1362_v28  ;;  %v1376_v22 = vld [vmem:[#allocation0 + $0x130] sm:$0xff]  ;;  %v1383_v26 = vld [vmem:[#allocation0 + $0x138] sm:$0xff] }
  0x22   :  { %872 = vst.msk [vmem:[#allocation0 + $0x8e] sm:$0xfc] %vm802_vm0, %v2002_v63   ;;  %877 = vst.msk [vmem:[#allocation0 + $0x96] sm:$0xf] %vm802_vm0, %v1997_v60   ;;  %v1313_v59 = vld [vmem:[#allocation0 + $0xe8] sm:$0xff]  ;;  %v1418_v28 = vld [vmem:[#allocation0 + $0x160] sm:$0xff] }
  0x23   :  { %879 = vst.msk [vmem:[#allocation0 + $0x9c] sm:$0xf0] %vm802_vm0, %v1997_v60   ;;  %884 = vst.msk [vmem:[#allocation0 + $0xa4] sm:$0x3f] %vm802_vm0, %v1998_v61   ;;  %v1320_v31 = vld [vmem:[#allocation0 + $0xf0] sm:$0xff]  ;;  %v1327_v32 = vld [vmem:[#allocation0 + $0xf8] sm:$0xff] }
  0x24   :  { %886 = vst.msk [vmem:[#allocation0 + $0xaa] sm:$0xc0] %vm802_vm0, %v1998_v61   ;;  %839 = vst.msk [vmem:[#allocation0 + $0x48] sm:$0x3] %vm802_vm0, %v2009_v4   ;;  %v2101_v36 = vpack.c.bf16 %v1327_v32, %v1320_v31  ;;  %v1348_v21 = vld [vmem:[#allocation0 + $0x110] sm:$0xff]  ;;  %v1537_v29 = vld [vmem:[#allocation0 + $0x1e8] sm:$0xff] }
  0x25   :  { %841 = vst.msk [vmem:[#allocation0 + $0x4e] sm:$0xfc] %vm802_vm0, %v2009_v4   ;;  %846 = vst.msk [vmem:[#allocation0 + $0x56] sm:$0xf] %vm802_vm0, %v2010_v5   ;;  %v1278_v34 = vld [vmem:[#allocation0 + $0xc0] sm:$0xff]  ;;  %v1271_v53 = vld [vmem:[#allocation0 + $0xb8] sm:$0xff]  ;;  %v2111_v25 = vpack.c.bf16 %v1355_v1, %v1348_v21 }
  0x26   :  { %848 = vst.msk [vmem:[#allocation0 + $0x5c] sm:$0xf0] %vm802_vm0, %v2010_v5   ;;  %853 = vst.msk [vmem:[#allocation0 + $0x64] sm:$0x3f] %vm802_vm0, %v2005_v2   ;;  %v1285_v35 = vld [vmem:[#allocation0 + $0xc8] sm:$0xff]  ;;  %v1663_v1 = vld [vmem:[#allocation0 + $0x278] sm:$0xff] }
  0x27   :  { %855 = vst.msk [vmem:[#allocation0 + $0x6a] sm:$0xc0] %vm802_vm0, %v2005_v2   ;;  %860 = vst.msk [vmem:[#allocation0 + $0x72] sm:$0xff] %vm802_vm0, %v2006_v3   ;;  %v2086_v39 = vpack.c.bf16 %v1285_v35, %v1278_v34  ;;  %v1299_v14 = vld [vmem:[#allocation0 + $0xd8] sm:$0xff]  ;;  %v1425_v32 = vld [vmem:[#allocation0 + $0x168] sm:$0xff] }
  0x28   :  { %815 = vst.msk [vmem:[#allocation0 + $0x16] sm:$0xf] %vm802_vm0, %v2017_v11   ;;  %817 = vst.msk [vmem:[#allocation0 + $0x1c] sm:$0xf0] %vm802_vm0, %v2017_v11   ;;  %v1222_v37 = vld [vmem:[#allocation0 + $0x80] sm:$0xff]  ;;  %v1229_v38 = vld [vmem:[#allocation0 + $0x88] sm:$0xff] }
  0x29   :  { %822 = vst.msk [vmem:[#allocation0 + $0x24] sm:$0x3f] %vm802_vm0, %v2018_v12   ;;  %824 = vst.msk [vmem:[#allocation0 + $0x2a] sm:$0xc0] %vm802_vm0, %v2018_v12   ;;  %v2066_v43 = vpack.c.bf16 %v1229_v38, %v1222_v37  ;;  %v1236_v48 = vld [vmem:[#allocation0 + $0x90] sm:$0xff]  ;;  %v1243_v4 = vld [vmem:[#allocation0 + $0x98] sm:$0xff] }
  0x2a   :  { %829 = vst.msk [vmem:[#allocation0 + $0x32] sm:$0xff] %vm802_vm0, %v2013_v9   ;;  %834 = vst.msk [vmem:[#allocation0 + $0x40] sm:$0xff] %vm802_vm0, %v2014_v10   ;;  %v1250_v5 = vld [vmem:[#allocation0 + $0xa0] sm:$0xff]  ;;  %v2071_v8 = vpack.c.bf16 %v1243_v4, %v1236_v48  ;;  %v1257_v9 = vld [vmem:[#allocation0 + $0xa8] sm:$0xff] }
  0x2b   :  { %803 = vst.msk [vmem:[#allocation0] sm:$0xff] %vm802_vm0, %v2021_v15   ;;  %808 = vst.msk [vmem:[#allocation0 + $0x8] sm:$0x3] %vm802_vm0, %v2022_v16   ;;  %v1173_v40 = vld [vmem:[#allocation0 + $0x48] sm:$0xff]  ;;  %v1264_v10 = vld [vmem:[#allocation0 + $0xb0] sm:$0xff]  ;;  %v2076_v12 = vpack.c.bf16 %v1257_v9, %v1250_v5 }
  0x2c   :  { %810 = vst.msk [vmem:[#allocation0 + $0xe] sm:$0xfc] %vm802_vm0, %v2022_v16   ;;  %2277 = vst [vmem:[%s2628_s1 + $0xf8] sm:$0xff] %v2181_v19   ;;  %v1180_v41 = vld [vmem:[#allocation0 + $0x50] sm:$0xff]  ;;  %v1187_v42 = vld [vmem:[#allocation0 + $0x58] sm:$0xff]  ;;  %v2081_v13 = vpack.c.bf16 %v1271_v53, %v1264_v10 }
  0x2d   :  { %2280 = vst [vmem:[%s2628_s1 + $0x110] sm:$0xff] %v2196_v20   ;;  %2274 = vst [vmem:[%s2628_s1 + $0xe0] sm:$0xff] %v2166_v23   ;;  %v2051_v47 = vpack.c.bf16 %v1187_v42, %v1180_v41  ;;  %v1194_v62 = vld [vmem:[#allocation0 + $0x60] sm:$0xff]  ;;  %v1201_v63 = vld [vmem:[#allocation0 + $0x68] sm:$0xff] }
  0x2e   :  { %2283 = vst [vmem:[%s2628_s1 + $0x128] sm:$0xff] %v2211_v24   ;;  %2270 = vst [vmem:[%s2628_s1 + $0xc0] sm:$0xff] %v2146_v27   ;;  %v1208_v0 = vld [vmem:[#allocation0 + $0x70] sm:$0xff]  ;;  %v2056_v2 = vpack.c.bf16 %v1201_v63, %v1194_v62  ;;  %v1215_v3 = vld [vmem:[#allocation0 + $0x78] sm:$0xff] }
  0x2f   :  { %2267 = vst [vmem:[%s2628_s1 + $0xa8] sm:$0xff] %v2131_v30   ;;  %2264 = vst [vmem:[%s2628_s1 + $0x90] sm:$0xff] %v2116_v33   ;;  %v1131_v44 = vld [vmem:[#allocation0 + $0x18] sm:$0xff]  ;;  %v2061_v7 = vpack.c.bf16 %v1215_v3, %v1208_v0  ;;  %v1292_v11 = vld [vmem:[#allocation0 + $0xd0] sm:$0xff]  ;;  %v2121_v30 = vpack.c.bf16 %v1383_v26, %v1376_v22 }
  0x30   :  { %2261 = vst [vmem:[%s2628_s1 + $0x78] sm:$0xff] %v2101_v36   ;;  %v1138_v45 = vld [vmem:[#allocation0 + $0x20] sm:$0xff]  ;;  %v1145_v46 = vld [vmem:[#allocation0 + $0x28] sm:$0xff]  ;;  %2258 = vst [vmem:[%s2628_s1 + $0x60] sm:$0xff] %v2086_v39   ;;  %v2091_v18 = vpack.c.bf16 %v1299_v14, %v1292_v11  ;;  %v2136_v36 = vpack.c.bf16 %v1425_v32, %v1418_v28 }
  0x31   :  { %v2036_v52 = vpack.c.bf16 %v1145_v46, %v1138_v45  ;;  %2254 = vst [vmem:[%s2628_s1 + $0x40] sm:$0xff] %v2066_v43   ;;  %v1152_v56 = vld [vmem:[#allocation0 + $0x30] sm:$0xff]  ;;  %v1159_v57 = vld [vmem:[#allocation0 + $0x38] sm:$0xff]  ;;  %v1166_v58 = vld [vmem:[#allocation0 + $0x40] sm:$0xff] }
  0x32   :  { %v1113_v49 = vld [vmem:[#allocation0] sm:$0xff]  ;;  %v1118_v50 = vld [vmem:[#allocation0 + $0x8] sm:$0xff]  ;;  %2251 = vst [vmem:[%s2628_s1 + $0x28] sm:$0xff] %v2051_v47   ;;  %v2041_v60 = vpack.c.bf16 %v1159_v57, %v1152_v56  ;;  %v2046_v61 = vpack.c.bf16 %v1173_v40, %v1166_v58  ;;  %2252 = vst [vmem:[%s2628_s1 + $0x30] sm:$0xff] %v2056_v2  }
  0x33   :  { %v1124_v51 = vld [vmem:[#allocation0 + $0x10] sm:$0xff]  ;;  %v2026_v54 = vpack.c.bf16 %v1118_v50, %v1113_v49  ;;  %2248 = vst [vmem:[%s2628_s1 + $0x10] sm:$0xff] %v2036_v52   ;;  %v1306_v15 = vld [vmem:[#allocation0 + $0xe0] sm:$0xff]  ;;  %2253 = vst [vmem:[%s2628_s1 + $0x38] sm:$0xff] %v2061_v7  }
  0x34   :  { %v2031_v55 = vpack.c.bf16 %v1131_v44, %v1124_v51  ;;  %2249 = vst [vmem:[%s2628_s1 + $0x18] sm:$0xff] %v2041_v60   ;;  %2250 = vst [vmem:[%s2628_s1 + $0x20] sm:$0xff] %v2046_v61   ;;  %v1334_v16 = vld [vmem:[#allocation0 + $0x100] sm:$0xff]  ;;  %v2096_v19 = vpack.c.bf16 %v1313_v59, %v1306_v15  ;;  %v1341_v20 = vld [vmem:[#allocation0 + $0x108] sm:$0xff] }
  0x35   :  { %2027 = vst [vmem:[%s2628_s1] sm:$0xff] %v2026_v54   ;;  %2255 = vst [vmem:[%s2628_s1 + $0x48] sm:$0xff] %v2071_v8   ;;  %v1495_v23 = vld [vmem:[#allocation0 + $0x1b8] sm:$0xff]  ;;  %v2106_v24 = vpack.c.bf16 %v1341_v20, %v1334_v16  ;;  %v1390_v27 = vld [vmem:[#allocation0 + $0x140] sm:$0xff] }
  0x36   :  { %2247 = vst [vmem:[%s2628_s1 + $0x8] sm:$0xff] %v2031_v55   ;;  %2256 = vst [vmem:[%s2628_s1 + $0x50] sm:$0xff] %v2076_v12   ;;  %v2126_v31 = vpack.c.bf16 %v1397_v6, %v1390_v27  ;;  %v1432_v33 = vld [vmem:[#allocation0 + $0x170] sm:$0xff]  ;;  %v1439_v34 = vld [vmem:[#allocation0 + $0x178] sm:$0xff] }
  0x37   :  { %2257 = vst [vmem:[%s2628_s1 + $0x58] sm:$0xff] %v2081_v13   ;;  %2259 = vst [vmem:[%s2628_s1 + $0x68] sm:$0xff] %v2091_v18   ;;  %v1579_v35 = vld [vmem:[#allocation0 + $0x218] sm:$0xff]  ;;  %v2141_v37 = vpack.c.bf16 %v1439_v34, %v1432_v33  ;;  %v1474_v39 = vld [vmem:[#allocation0 + $0x1a0] sm:$0xff] }
  0x38   :  { %2260 = vst [vmem:[%s2628_s1 + $0x70] sm:$0xff] %v2096_v19   ;;  %2262 = vst [vmem:[%s2628_s1 + $0x80] sm:$0xff] %v2106_v24   ;;  %v1467_v38 = vld [vmem:[#allocation0 + $0x198] sm:$0xff]  ;;  %v1481_v40 = vld [vmem:[#allocation0 + $0x1a8] sm:$0xff] }
  0x39   :  { %2263 = vst [vmem:[%s2628_s1 + $0x88] sm:$0xff] %v2111_v25   ;;  %v1621_v41 = vld [vmem:[#allocation0 + $0x248] sm:$0xff]  ;;  %2265 = vst [vmem:[%s2628_s1 + $0x98] sm:$0xff] %v2121_v30   ;;  %v2151_v42 = vpack.c.bf16 %v1467_v38, %v1460_v17  ;;  %v2156_v43 = vpack.c.bf16 %v1481_v40, %v1474_v39  ;;  %v1488_v44 = vld [vmem:[#allocation0 + $0x1b0] sm:$0xff] }
  0x3a   :  { %2266 = vst [vmem:[%s2628_s1 + $0xa0] sm:$0xff] %v2126_v31   ;;  %v1516_v45 = vld [vmem:[#allocation0 + $0x1d0] sm:$0xff]  ;;  %v1523_v46 = vld [vmem:[#allocation0 + $0x1d8] sm:$0xff]  ;;  %2268 = vst [vmem:[%s2628_s1 + $0xb0] sm:$0xff] %v2136_v36   ;;  %v2161_v47 = vpack.c.bf16 %v1495_v23, %v1488_v44 }
  0x3b   :  { %2269 = vst [vmem:[%s2628_s1 + $0xb8] sm:$0xff] %v2141_v37   ;;  %v2171_v48 = vpack.c.bf16 %v1523_v46, %v1516_v45  ;;  %v1530_v49 = vld [vmem:[#allocation0 + $0x1e0] sm:$0xff]  ;;  %v1565_v51 = vld [vmem:[#allocation0 + $0x208] sm:$0xff]  ;;  %2271 = vst [vmem:[%s2628_s1 + $0xc8] sm:$0xff] %v2151_v42  }
  0x3c   :  { %v1558_v50 = vld [vmem:[#allocation0 + $0x200] sm:$0xff]  ;;  %2272 = vst [vmem:[%s2628_s1 + $0xd0] sm:$0xff] %v2156_v43   ;;  %v2176_v52 = vpack.c.bf16 %v1537_v29, %v1530_v49  ;;  %v1572_v54 = vld [vmem:[#allocation0 + $0x210] sm:$0xff]  ;;  %v1607_v56 = vld [vmem:[#allocation0 + $0x238] sm:$0xff] }
  0x3d   :  { %v2186_v53 = vpack.c.bf16 %v1565_v51, %v1558_v50  ;;  %v1600_v55 = vld [vmem:[#allocation0 + $0x230] sm:$0xff]  ;;  %2273 = vst [vmem:[%s2628_s1 + $0xd8] sm:$0xff] %v2161_v47   ;;  %2275 = vst [vmem:[%s2628_s1 + $0xe8] sm:$0xff] %v2171_v48   ;;  %v2191_v57 = vpack.c.bf16 %v1579_v35, %v1572_v54  ;;  %v1614_v59 = vld [vmem:[#allocation0 + $0x240] sm:$0xff] }
  0x3e   :  { %v2201_v58 = vpack.c.bf16 %v1607_v56, %v1600_v55  ;;  %v1642_v60 = vld [vmem:[#allocation0 + $0x260] sm:$0xff]  ;;  %v1649_v61 = vld [vmem:[#allocation0 + $0x268] sm:$0xff]  ;;  %2276 = vst [vmem:[%s2628_s1 + $0xf0] sm:$0xff] %v2176_v52   ;;  %v2206_v62 = vpack.c.bf16 %v1621_v41, %v1614_v59  ;;  %v1656_v0 = vld [vmem:[#allocation0 + $0x270] sm:$0xff] }
  0x3f   :  { %2278 = vst [vmem:[%s2628_s1 + $0x100] sm:$0xff] %v2186_v53   ;;  %v2216_v63 = vpack.c.bf16 %v1649_v61, %v1642_v60  ;;  %2279 = vst [vmem:[%s2628_s1 + $0x108] sm:$0xff] %v2191_v57   ;;  %v2221_v2 = vpack.c.bf16 %v1663_v1, %v1656_v0 }
  0x40   :  { %2281 = vst [vmem:[%s2628_s1 + $0x118] sm:$0xff] %v2201_v58   ;;  %2282 = vst [vmem:[%s2628_s1 + $0x120] sm:$0xff] %v2206_v62  }
  0x41   :  { %2284 = vst [vmem:[%s2628_s1 + $0x130] sm:$0xff] %v2216_v63   ;;  %2285 = vst [vmem:[%s2628_s1 + $0x138] sm:$0xff] %v2221_v2  }

// kernel: forward.7
= control target key start
LH: loop header
LB: loop body
LE: loop exit
PB: predicated region body
PF: predicated region fallthrough
CT: control target
= control target key end

     0   :  { %v2293_v21 = vmov 1983009808   ;;  %v240_v23 = vlaneseq  ;;  %vm2295_vm0 = vmmov 0   ;;  %vm906_vm1 = vcmask 523264   ;;  %s2825_s1 = inlined_call_operand.vmem [shape: bf16[1600,32], index: 1, kind: input, shape index: {}]   ;;  %s2826_s0 = inlined_call_operand.vmem [shape: bf16[4,1600], index: 0, kind: input, shape index: {}]   ;;  %s2827_s3 = inlined_call_operand.vmem [shape: bf16[32,1600], index: 3, kind: input, shape index: {}]   ;;  %s2828_s2 = inlined_call_operand.vmem [shape: f32[1,32], index: 2, kind: input, shape index: {}]   ;;  %s2829_s4 = inlined_call_operand.vmem [shape: f32[1,1600], index: 4, kind: input, shape index: {}]   ;;  %s2830_s5 = inlined_call_operand.vmem [shape: bf16[4,1600], index: 5, kind: output, shape index: {}]  }
   0x1   :  { %v2152_v0 = vld [vmem:[%s2825_s1 + $0x40] sm:$0xff]   ;;  %v2156_v4 = vld [vmem:[%s2825_s1 + $0x48] sm:$0xff]   ;;  %v2160_v8 = vld [vmem:[%s2825_s1 + $0x50] sm:$0xff]   ;;  %v238_v22 = vunpack.c.l.s4 %v2293_v21  ;;  %vm1420_vm2 = vcmask 261120   ;;  %vm1840_vm14 = vcmask 517120  }
   0x2   :  { %v2153_v1 = vld [vmem:[%s2825_s1] sm:$0xff]   ;;  %1988 = vmatprep.subr.bf16.mxu0 %v2152_v0  ;;  %v2157_v5 = vld [vmem:[%s2825_s1 + $0x8] sm:$0xff]   ;;  %v2161_v9 = vld [vmem:[%s2825_s1 + $0x10] sm:$0xff]   ;;  %v2402_v29 = vshrl.u32 %v240_v23, 7 }
   0x3   :  { %v2154_v2 = vld [vmem:[%s2825_s1 + $0xc0] sm:$0xff]   ;;  %1989 = vmatpush3.bf16.msra.mxu0 %v2153_v1  ;;  %v2158_v6 = vld [vmem:[%s2825_s1 + $0xc8] sm:$0xff]   ;;  %v2162_v10 = vld [vmem:[%s2825_s1 + $0xd0] sm:$0xff]   ;;  %v239_v28 = vunpack.c.0.s8 %v238_v22 }
   0x4   :  { %v2155_v3 = vld [vmem:[%s2825_s1 + $0x80] sm:$0xff]   ;;  %2010 = vmatprep.subr.bf16.mxu1 %v2154_v2  ;;  %1990 = vmatprep.subr.bf16.mxu0 %v2156_v4  ;;  %v2159_v7 = vld [vmem:[%s2825_s1 + $0x88] sm:$0xff]   ;;  %v2163_v11 = vld [vmem:[%s2825_s1 + $0x90] sm:$0xff]  }
   0x5   :  { %2011 = vmatpush3.bf16.msra.mxu1 %v2155_v3  ;;  %v2164_v12 = vld [vmem:[%s2825_s1 + $0x58] sm:$0xff]   ;;  %v2168_v16 = vld [vmem:[%s2825_s1 + $0x60] sm:$0xff]   ;;  %v2172_v20 = vld [vmem:[%s2825_s1 + $0x68] sm:$0xff]   ;;  %v2417_v34 = vsub.s32 %v239_v28, %v2402_v29 }
   0x6   :  { %2012 = vmatprep.subr.bf16.mxu1 %v2158_v6  ;;  %v2165_v13 = vld [vmem:[%s2825_s1 + $0x18] sm:$0xff]   ;;  %v2169_v17 = vld [vmem:[%s2825_s1 + $0x20] sm:$0xff]   ;;  %v2173_v24 = vld [vmem:[%s2825_s1 + $0x28] sm:$0xff]  }
   0x7   :  { %1991 = vmatpush3.bf16.msra.mxu0 %v2157_v5  ;;  %v2166_v14 = vld [vmem:[%s2825_s1 + $0xd8] sm:$0xff]   ;;  %v2170_v18 = vld [vmem:[%s2825_s1 + $0xe0] sm:$0xff]   ;;  %v2174_v25 = vld [vmem:[%s2825_s1 + $0xe8] sm:$0xff]  }
   0x8   :  { %1992 = vmatprep.subr.bf16.mxu0 %v2160_v8  ;;  %v2167_v15 = vld [vmem:[%s2825_s1 + $0x98] sm:$0xff]   ;;  %v2171_v19 = vld [vmem:[%s2825_s1 + $0xa0] sm:$0xff]   ;;  %v2175_v26 = vld [vmem:[%s2825_s1 + $0xa8] sm:$0xff]  }
   0x9   :  { %2013 = vmatpush3.bf16.msra.mxu1 %v2159_v7  ;;  %v2176_v27 = vld [vmem:[%s2825_s1 + $0x70] sm:$0xff]   ;;  %v2180_v33 = vld [vmem:[%s2825_s1 + $0x78] sm:$0xff]   ;;  %v21_v37 = vld [vmem:[%s2826_s0] sm:$0xff] }
   0xa   :  { %2014 = vmatprep.subr.bf16.mxu1 %v2162_v10  ;;  %v2177_v30 = vld [vmem:[%s2825_s1 + $0x30] sm:$0xff]   ;;  %v2181_v35 = vld [vmem:[%s2825_s1 + $0x38] sm:$0xff]   ;;  %v243_v38 = vrot.slane %v21_v37, %v2417_v34  ;;  %v236_v40 = vcombine.high %v21_v37, %v21_v37  ;;  %v2184_v41 = vld [vmem:[%s2825_s1 + $0x140] sm:$0xff]  }
   0xb   :  { %1993 = vmatpush3.bf16.msra.mxu0 %v2161_v9  ;;  %v2178_v31 = vld [vmem:[%s2825_s1 + $0xf0] sm:$0xff]   ;;  %v2182_v36 = vld [vmem:[%s2825_s1 + $0xf8] sm:$0xff]   ;;  %v2186_v44 = vld [vmem:[%s2825_s1 + $0x100] sm:$0xff]  }
   0xc   :  { %1994 = vmatprep.subr.bf16.mxu0 %v2164_v12  ;;  %v2179_v32 = vld [vmem:[%s2825_s1 + $0xb0] sm:$0xff]   ;;  %v2183_v39 = vld [vmem:[%s2825_s1 + $0xb8] sm:$0xff]   ;;  %v251_v42 = vcombine.high %v243_v38, %v243_v38  ;;  %v250_v43 = vrot.slane %v236_v40, %v2417_v34  ;;  %v2187_v45 = vld [vmem:[%s2825_s1 + $0x1c0] sm:$0xff]  }
   0xd   :  { %2015 = vmatpush3.bf16.msra.mxu1 %v2163_v11  ;;  %v2188_v47 = vld [vmem:[%s2825_s1 + $0x180] sm:$0xff]   ;;  %v2189_v48 = vld [vmem:[%s2825_s1 + $0x148] sm:$0xff]   ;;  %v2193_v52 = vld [vmem:[%s2825_s1 + $0x150] sm:$0xff]  }
   0xe   :  { %2016 = vmatprep.subr.bf16.mxu1 %v2166_v14  ;;  %942 = vmatprep.mubr.bf16.mxu0 %v251_v42  ;;  %v252_v46 = vcombine.high %v250_v43, %v250_v43  ;;  %v2190_v49 = vld [vmem:[%s2825_s1 + $0x108] sm:$0xff]   ;;  %v2194_v53 = vld [vmem:[%s2825_s1 + $0x110] sm:$0xff]   ;;  %v2197_v56 = vld [vmem:[%s2825_s1 + $0x158] sm:$0xff]  }
   0xf   :  { %1995 = vmatpush3.bf16.msra.mxu0 %v2165_v13  ;;  %v2191_v50 = vld [vmem:[%s2825_s1 + $0x1c8] sm:$0xff]   ;;  %v2195_v54 = vld [vmem:[%s2825_s1 + $0x1d0] sm:$0xff]   ;;  %v2198_v57 = vld [vmem:[%s2825_s1 + $0x118] sm:$0xff]  }
  0x10   :  { %1996 = vmatprep.subr.bf16.mxu0 %v2168_v16  ;;  %982 = vmatprep.mubr.bf16.mxu1 %v252_v46  ;;  %v2192_v51 = vld [vmem:[%s2825_s1 + $0x188] sm:$0xff]   ;;  %v2196_v55 = vld [vmem:[%s2825_s1 + $0x190] sm:$0xff]   ;;  %v2199_v58 = vld [vmem:[%s2825_s1 + $0x1d8] sm:$0xff]  }
  0x11   :  { %2017 = vmatpush3.bf16.msra.mxu1 %v2167_v15  ;;  %v2200_v59 = vld [vmem:[%s2825_s1 + $0x198] sm:$0xff]   ;;  %v2201_v60 = vld [vmem:[%s2825_s1 + $0x160] sm:$0xff]   ;;  %v2205_v0 = vld [vmem:[%s2825_s1 + $0x168] sm:$0xff]  }
  0x12   :  { %2018 = vmatprep.subr.bf16.mxu1 %v2170_v18  ;;  %v2202_v61 = vld [vmem:[%s2825_s1 + $0x120] sm:$0xff]   ;;  %v2206_v1 = vld [vmem:[%s2825_s1 + $0x128] sm:$0xff]   ;;  %v2209_v4 = vld [vmem:[%s2825_s1 + $0x170] sm:$0xff]  }
  0x13   :  { %1997 = vmatpush3.bf16.msra.mxu0 %v2169_v17  ;;  %v2203_v62 = vld [vmem:[%s2825_s1 + $0x1e0] sm:$0xff]   ;;  %v2207_v2 = vld [vmem:[%s2825_s1 + $0x1e8] sm:$0xff]   ;;  %v2210_v5 = vld [vmem:[%s2825_s1 + $0x130] sm:$0xff]  }
  0x14   :  { %1998 = vmatprep.subr.bf16.mxu0 %v2172_v20  ;;  %v2204_v63 = vld [vmem:[%s2825_s1 + $0x1a0] sm:$0xff]   ;;  %v2208_v3 = vld [vmem:[%s2825_s1 + $0x1a8] sm:$0xff]   ;;  %v2211_v6 = vld [vmem:[%s2825_s1 + $0x1f0] sm:$0xff]  }
  0x15   :  { %2019 = vmatpush3.bf16.msra.mxu1 %v2171_v19  ;;  %v2212_v7 = vld [vmem:[%s2825_s1 + $0x1b0] sm:$0xff]   ;;  %v2213_v8 = vld [vmem:[%s2825_s1 + $0x178] sm:$0xff]   ;;  %v22_v11 = vld [vmem:[%s2826_s0 + $0x8] sm:$0xff] }
  0x16   :  { %2020 = vmatprep.subr.bf16.mxu1 %v2174_v25  ;;  %v2214_v9 = vld [vmem:[%s2825_s1 + $0x138] sm:$0xff]   ;;  %v260_v12 = vrot.slane %v22_v11, %v2417_v34  ;;  %v253_v14 = vcombine.high %v22_v11, %v22_v11  ;;  %v2217_v15 = vld [vmem:[%s2825_s1 + $0x240] sm:$0xff]   ;;  %v2222_v22 = vld [vmem:[%s2825_s1 + $0x248] sm:$0xff]  }
  0x17   :  { %1999 = vmatpush3.bf16.msra.mxu0 %v2173_v24  ;;  %v2215_v10 = vld [vmem:[%s2825_s1 + $0x1f8] sm:$0xff]   ;;  %v2219_v18 = vld [vmem:[%s2825_s1 + $0x200] sm:$0xff]   ;;  %v2223_v23 = vld [vmem:[%s2825_s1 + $0x208] sm:$0xff]  }
  0x18   :  { %2000 = vmatprep.subr.bf16.mxu0 %v2176_v27  ;;  %v2216_v13 = vld [vmem:[%s2825_s1 + $0x1b8] sm:$0xff]   ;;  %v268_v16 = vcombine.high %v260_v12, %v260_v12  ;;  %v267_v17 = vrot.slane %v253_v14, %v2417_v34  ;;  %v2220_v19 = vld [vmem:[%s2825_s1 + $0x2c0] sm:$0xff]   ;;  %v2224_v24 = vld [vmem:[%s2825_s1 + $0x2c8] sm:$0xff]  }
  0x19   :  { %2021 = vmatpush3.bf16.msra.mxu1 %v2175_v26  ;;  %v2221_v21 = vld [vmem:[%s2825_s1 + $0x280] sm:$0xff]   ;;  %v2225_v25 = vld [vmem:[%s2825_s1 + $0x288] sm:$0xff]   ;;  %v2226_v26 = vld [vmem:[%s2825_s1 + $0x250] sm:$0xff]  }
  0x1a   :  { %2022 = vmatprep.subr.bf16.mxu1 %v2178_v31  ;;  %v269_v20 = vcombine.high %v267_v17, %v267_v17  ;;  %v2227_v27 = vld [vmem:[%s2825_s1 + $0x210] sm:$0xff]   ;;  %v2230_v31 = vld [vmem:[%s2825_s1 + $0x258] sm:$0xff]   ;;  %v2235_v37 = vld [vmem:[%s2825_s1 + $0x220] sm:$0xff]  }
  0x1b   :  { %2001 = vmatpush3.bf16.msra.mxu0 %v2177_v30  ;;  %v2228_v28 = vld [vmem:[%s2825_s1 + $0x2d0] sm:$0xff]   ;;  %v2238_v40 = vld [vmem:[%s2825_s1 + $0x268] sm:$0xff]  }
  0x1c   :  { %2002 = vmatprep.subr.bf16.mxu0 %v2180_v33  ;;  %v2229_v30 = vld [vmem:[%s2825_s1 + $0x290] sm:$0xff]   ;;  %v2232_v33 = vld [vmem:[%s2825_s1 + $0x2d8] sm:$0xff]   ;;  %v2240_v42 = vld [vmem:[%s2825_s1 + $0x2e8] sm:$0xff]  }
  0x1d   :  { %2023 = vmatpush3.bf16.msra.mxu1 %v2179_v32  ;;  %v2231_v32 = vld [vmem:[%s2825_s1 + $0x218] sm:$0xff]   ;;  %v2244_v46 = vld [vmem:[%s2825_s1 + $0x2f0] sm:$0xff]  }
  0x1e   :  { %2024 = vmatprep.subr.bf16.mxu1 %v2182_v36  ;;  %v2234_v36 = vld [vmem:[%s2825_s1 + $0x260] sm:$0xff]  }
  0x1f   :  { %2003 = vmatpush3.bf16.msra.mxu0 %v2181_v35  ;;  %v2233_v35 = vld [vmem:[%s2825_s1 + $0x298] sm:$0xff]  }
  0x20   :  { %2032 = vmatprep.subr.bf16.mxu0 %v2184_v41  ;;  %v2239_v41 = vld [vmem:[%s2825_s1 + $0x228] sm:$0xff]  }
  0x21   :  { %2025 = vmatpush3.bf16.msra.mxu1 %v2183_v39  ;;  %v2237_v39 = vld [vmem:[%s2825_s1 + $0x2a0] sm:$0xff]  }
  0x22   :  { %943 = vmatmul.mubr.bf16.vlgmr.msra.gmra.mrb[0].mxu0 %v243_v38  ;;  %2054 = vmatprep.subr.bf16.mxu1 %v2187_v45  ;;  %v2236_v38 = vld [vmem:[%s2825_s1 + $0x2e0] sm:$0xff]   ;;  %v2243_v45 = vld [vmem:[%s2825_s1 + $0x230] sm:$0xff]  }
  0x23   :  { %2033 = vmatpush3.bf16.msra.mxu0 %v2186_v44  ;;  %1022 = vmatprep.mubr.bf16.mxu0 %v268_v16  ;;  %v2242_v44 = vld [vmem:[%s2825_s1 + $0x270] sm:$0xff]  }
  0x24   :  { %983 = vmatmul.mubr.bf16.vlgmr.msra.gmra.mrb[0].mxu1 %v250_v43  ;;  %2034 = vmatprep.subr.bf16.mxu0 %v2189_v48  ;;  %v2241_v43 = vld [vmem:[%s2825_s1 + $0x2a8] sm:$0xff]   ;;  %v2246_v48 = vld [vmem:[%s2825_s1 + $0x278] sm:$0xff]  }
  0x25   :  { %2055 = vmatpush3.bf16.msra.mxu1 %v2188_v47  ;;  %1062 = vmatprep.mubr.bf16.mxu1 %v269_v20  ;;  %v2245_v47 = vld [vmem:[%s2825_s1 + $0x2b0] sm:$0xff]  }
  0x26   :  { %2056 = vmatprep.subr.bf16.mxu1 %v2191_v50  ;;  %v2248_v50 = vld [vmem:[%s2825_s1 + $0x2f8] sm:$0xff]  }
  0x27   :  { %2035 = vmatpush3.bf16.msra.mxu0 %v2190_v49  ;;  %v2247_v49 = vld [vmem:[%s2825_s1 + $0x238] sm:$0xff]  }
  0x28   :  { %2036 = vmatprep.subr.bf16.mxu0 %v2193_v52 }
  0x29   :  { %2057 = vmatpush3.bf16.msra.mxu1 %v2192_v51  ;;  %v23_v51 = vld [vmem:[%s2826_s0 + $0x10] sm:$0xff] }
  0x2a   :  { %2058 = vmatprep.subr.bf16.mxu1 %v2195_v54  ;;  %v277_v52 = vrot.slane %v23_v51, %v2417_v34  ;;  %v270_v54 = vcombine.high %v23_v51, %v23_v51 }
  0x2b   :  { %2037 = vmatpush3.bf16.msra.mxu0 %v2194_v53  ;;  %v2249_v53 = vld [vmem:[%s2825_s1 + $0x2b8] sm:$0xff]  }
  0x2c   :  { %2038 = vmatprep.subr.bf16.mxu0 %v2197_v56  ;;  %v284_v56 = vrot.slane %v270_v54, %v2417_v34  ;;  %v2267_v54 = vld [vmem:[%s2827_s3 + $0x8] ss:$52 sps:$4 sm:$0xff]  }
  0x2d   :  { %2059 = vmatpush3.bf16.msra.mxu1 %v2196_v55  ;;  %v285_v55 = vcombine.high %v277_v52, %v277_v52 }
  0x2e   :  { %2060 = vmatprep.subr.bf16.mxu1 %v2199_v58  ;;  %v2294_v58 = vmov 0.0  }
  0x2f   :  { %2039 = vmatpush3.bf16.msra.mxu0 %v2198_v57  ;;  %v2251_v57 = vld [vmem:[%s2825_s1 + $0x300] sm:$0xff]  }
  0x30   :  { %2040 = vmatprep.subr.bf16.mxu0 %v2201_v60  ;;  %v2252_v60 = vld [vmem:[%s2825_s1 + $0x308] sm:$0xff]  }
  0x31   :  { %2061 = vmatpush3.bf16.msra.mxu1 %v2200_v59  ;;  %v286_v59 = vcombine.high %v284_v56, %v284_v56 }
  0x32   :  { %2062 = vmatprep.subr.bf16.mxu1 %v2203_v62  ;;  %v2254_v62 = vld [vmem:[%s2825_s1 + $0x318] sm:$0xff]  }
  0x33   :  { %2041 = vmatpush3.bf16.msra.mxu0 %v2202_v61  ;;  %v2253_v61 = vld [vmem:[%s2825_s1 + $0x310] sm:$0xff]  }
  0x34   :  { %2042 = vmatprep.subr.bf16.mxu0 %v2205_v0  ;;  %v2255_v0 = vld [vmem:[%s2827_s3] ss:$52 sps:$4 sm:$0xff]  }
  0x35   :  { %2063 = vmatpush3.bf16.msra.mxu1 %v2204_v63  ;;  %v1847_v63 = vld.sshfl [vmem:[%s2826_s0 + $0x18] sm:$0x3 pattern:$0x76325410] }
  0x36   :  { %2064 = vmatprep.subr.bf16.mxu1 %v2207_v2  ;;  %v2258_v2 = vld [vmem:[%s2827_s3 + $0x10] ss:$52 sps:$4 sm:$0xff]  }
  0x37   :  { %2043 = vmatpush3.bf16.msra.mxu0 %v2206_v1  ;;  %v2257_v1 = vld [vmem:[%s2827_s3 + $0x4] ss:$52 sps:$4 sm:$0xff]  }
  0x38   :  { %2044 = vmatprep.subr.bf16.mxu0 %v2209_v4  ;;  %v2263_v4 = vld [vmem:[%s2827_s3 + $0x6c] ss:$52 sps:$4 sm:$0xff]  }
  0x39   :  { %2065 = vmatpush3.bf16.msra.mxu1 %v2208_v3  ;;  %v2260_v3 = vld [vmem:[%s2827_s3 + $0x14] ss:$52 sps:$4 sm:$0xff]  }
  0x3a   :  { %2066 = vmatprep.subr.bf16.mxu1 %v2211_v6  ;;  %v2261_v6 = vld [vmem:[%s2827_s3 + $0x68] ss:$52 sps:$4 sm:$0xff]  }
  0x3b   :  { %2045 = vmatpush3.bf16.msra.mxu0 %v2210_v5  ;;  %v2266_v5 = vld [vmem:[%s2827_s3 + $0x7c] ss:$52 sps:$4 sm:$0xff]  }
  0x3c   :  { %2046 = vmatprep.subr.bf16.mxu0 %v2213_v8  ;;  %v2269_v8 = vld [vmem:[%s2827_s3 + $0xc] ss:$52 sps:$4 sm:$0xff]  }
  0x3d   :  { %2067 = vmatpush3.bf16.msra.mxu1 %v2212_v7  ;;  %v2264_v7 = vld [vmem:[%s2827_s3 + $0x78] ss:$52 sps:$4 sm:$0xff]  }
  0x3e   :  { %2068 = vmatprep.subr.bf16.mxu1 %v2215_v10  ;;  %v2272_v10 = vld [vmem:[%s2827_s3 + $0x24] ss:$52 sps:$4 sm:$0xff]  }
  0x3f   :  { %2047 = vmatpush3.bf16.msra.mxu0 %v2214_v9  ;;  %v2296_v9 = vmov 0  }
  0x40   :  { %2076 = vmatprep.subr.bf16.mxu0 %v2217_v15 }
  0x41   :  { %2069 = vmatpush3.bf16.msra.mxu1 %v2216_v13 }
  0x42   :  { %1023 = vmatmul.mubr.bf16.vlgmr.msra.gmra.mrb[4].mxu0 %v260_v12  ;;  %2098 = vmatprep.subr.bf16.mxu1 %v2220_v19  ;;  %v1846_v12 = vld [vmem:[%s2828_s2] ss:$0 sm:$0xff] }
  0x43   :  { %2077 = vmatpush3.bf16.msra.mxu0 %v2219_v18  ;;  %1102 = vmatprep.mubr.bf16.mxu0 %v285_v55  ;;  %v2270_v55 = vld [vmem:[%s2827_s3 + $0x20] ss:$52 sps:$4 sm:$0xff]  }
  0x44   :  { %1063 = vmatmul.mubr.bf16.vlgmr.msra.gmra.mrb[4].mxu1 %v267_v17  ;;  %2078 = vmatprep.subr.bf16.mxu0 %v2222_v22 }
  0x45   :  { %2099 = vmatpush3.bf16.msra.mxu1 %v2221_v21  ;;  %1142 = vmatprep.mubr.bf16.mxu1 %v286_v59  ;;  %v2275_v59 = vld [vmem:[%s2827_s3 + $0x74] ss:$52 sps:$4 sm:$0xff]  }
  0x46   :  { %2100 = vmatprep.subr.bf16.mxu1 %v2224_v24 }
  0x47   :  { %2079 = vmatpush3.bf16.msra.mxu0 %v2223_v23 }
  0x48   :  { %2080 = vmatprep.subr.bf16.mxu0 %v2226_v26 }
  0x49   :  { %2101 = vmatpush3.bf16.msra.mxu1 %v2225_v25 }
  0x4a   :  { %2102 = vmatprep.subr.bf16.mxu1 %v2228_v28 }
  0x4b   :  { %2081 = vmatpush3.bf16.msra.mxu0 %v2227_v27 }
  0x4c   :  { %2082 = vmatprep.subr.bf16.mxu0 %v2230_v31 }
  0x4d   :  { %2103 = vmatpush3.bf16.msra.mxu1 %v2229_v30 }
  0x4e   :  { %2104 = vmatprep.subr.bf16.mxu1 %v2232_v33 }
  0x4f   :  { %2083 = vmatpush3.bf16.msra.mxu0 %v2231_v32 }
  0x50   :  { %2084 = vmatprep.subr.bf16.mxu0 %v2234_v36 }
  0x51   :  { %2105 = vmatpush3.bf16.msra.mxu1 %v2233_v35 }
  0x52   :  { %2106 = vmatprep.subr.bf16.mxu1 %v2236_v38 }
  0x53   :  { %2085 = vmatpush3.bf16.msra.mxu0 %v2235_v37 }
  0x54   :  { %2086 = vmatprep.subr.bf16.mxu0 %v2238_v40 }
  0x55   :  { %2107 = vmatpush3.bf16.msra.mxu1 %v2237_v39 }
  0x56   :  { %2108 = vmatprep.subr.bf16.mxu1 %v2240_v42 }
  0x57   :  { %2087 = vmatpush3.bf16.msra.mxu0 %v2239_v41 }
  0x58   :  { %2088 = vmatprep.subr.bf16.mxu0 %v2242_v44 }
  0x59   :  { %2109 = vmatpush3.bf16.msra.mxu1 %v2241_v43 }
  0x5a   :  { %2110 = vmatprep.subr.bf16.mxu1 %v2244_v46 }
  0x5b   :  { %2089 = vmatpush3.bf16.msra.mxu0 %v2243_v45 }
  0x5c   :  { %2090 = vmatprep.subr.bf16.mxu0 %v2246_v48 }
  0x5d   :  { %2111 = vmatpush3.bf16.msra.mxu1 %v2245_v47 }
  0x5e   :  { %2112 = vmatprep.subr.bf16.mxu1 %v2248_v50 }
  0x5f   :  { %2091 = vmatpush3.bf16.msra.mxu0 %v2247_v49 }
  0x60   :  { %2128 = vmatprep.subr.bf16.mxu0 %v2294_v58 }
  0x61   :  { %2113 = vmatpush3.bf16.msra.mxu1 %v2249_v53 }
  0x62   :  { %1103 = vmatmul.mubr.bf16.vlgmr.msra.gmra.mrb[8].mxu0 %v277_v52  ;;  %1424 = vmatprep.subr.bf16.mxu1 %v2257_v1  ;;  %v2282_v1 = vld [vmem:[%s2827_s3 + $0x30] ss:$52 sps:$4 sm:$0xff]  }
  0x63   :  { %2129 = vmatpush3.bf16.msra.mxu0 %v2251_v57  ;;  %2136 = vmatprep.mubr.msk.bf16.mxu0 %vm2295_vm0, %v2294_v58 }
  0x64   :  { %1143 = vmatmul.mubr.bf16.vlgmr.msra.gmra.mrb[8].mxu1 %v284_v56  ;;  %2130 = vmatprep.subr.bf16.mxu0 %v2294_v58 }
  0x65   :  { %1425 = vmatpush1.bf16.msra.mxu1 %v2255_v0  ;;  %1456 = vmatprep.mubr.bf16.mxu1 %v2296_v9  ;;  %v2279_v0 = vld [vmem:[%s2827_s3 + $0x18] ss:$52 sps:$4 sm:$0xff]  }
  0x66   :  { %1426 = vmatprep.subr.bf16.mxu1 %v2263_v4  ;;  %v2286_v4 = vld [vmem:[%s2827_s3 + $0x98] ss:$52 sps:$4 sm:$0xff]  }
  0x67   :  { %2131 = vmatpush3.bf16.msra.mxu0 %v2252_v60  ;;  %v2278_v60 = vld [vmem:[%s2827_s3 + $0x8c] ss:$52 sps:$4 sm:$0xff]  }
  0x68   :  { %2132 = vmatprep.subr.bf16.mxu0 %v2294_v58 }
  0x69   :  { %1427 = vmatpush1.bf16.msra.mxu1 %v2261_v6  ;;  %v2287_v6 = vld [vmem:[%s2827_s3 + $0x28] ss:$52 sps:$4 sm:$0xff]  }
  0x6a   :  { %1465 = vmatprep.subr.bf16.mxu1 %v2269_v8  ;;  %v1225_v8 = vsub.s32 0, %v2402_v29 }
  0x6b   :  { %2133 = vmatpush3.bf16.msra.mxu0 %v2253_v61  ;;  %v2273_v61 = vld [vmem:[%s2827_s3 + $0x70] ss:$52 sps:$4 sm:$0xff]  }
  0x6c   :  { %2134 = vmatprep.subr.bf16.mxu0 %v2294_v58 }
  0x6f   :  { %2135 = vmatpush3.bf16.msra.mxu0 %v2254_v62  ;;  %v2276_v62 = vld [vmem:[%s2827_s3 + $0x88] ss:$52 sps:$4 sm:$0xff]  }
  0x70   :  { %1506 = vmatprep.subr.bf16.mxu0 %v2260_v3  ;;  %v2283_v3 = vld [vmem:[%s2827_s3 + $0x80] ss:$52 sps:$4 sm:$0xff]  }
  0x72   :  { %2137 = vmatmul.mubr.msk.bf16.vlgmr.msra.gmra.mrb[12].mxu0 %vm906_vm1, %v1847_v63  ;;  %v2281_v63 = vld [vmem:[%s2827_s3 + $0x1c] ss:$52 sps:$4 sm:$0xff]  }
  0x73   :  { %1507 = vmatpush1.bf16.msra.mxu0 %v2258_v2  ;;  %1538 = vmatprep.mubr.bf16.mxu0 %v2296_v9  ;;  %v2285_v2 = vld [vmem:[%s2827_s3 + $0x84] ss:$52 sps:$4 sm:$0xff]  }
  0x74   :  { %1508 = vmatprep.subr.bf16.mxu0 %v2266_v5  ;;  %v2289_v5 = vld [vmem:[%s2827_s3 + $0x2c] ss:$52 sps:$4 sm:$0xff]  }
  0x77   :  { %1509 = vmatpush1.bf16.msra.mxu0 %v2264_v7  ;;  %v2292_v7 = vld [vmem:[%s2827_s3 + $0x94] ss:$52 sps:$4 sm:$0xff]  }
  0x78   :  { %1588 = vmatprep.subr.bf16.mxu0 %v2272_v10  ;;  %v1241_v10 = vsub.s32 4, %v2402_v29 }
  0xf5   :  { %v2004_v11 = vpop.f32.mrb[0].mxu0 }
  0xf6   :  { %v2005_v13 = vpop.f32.mrb[1].mxu0 }
  0xf7   :  { %v2006_v14 = vadd.f32 %v2005_v13, %v2004_v11  ;;  %v2007_v15 = vpop.f32.mrb[2].mxu0  ;;  %v2026_v16 = vpop.f32.mrb[0].mxu1  ;;  %v2759_v11 = vld [vmem:[%s2829_s4] sm:$0xff]  ;;  %v1245_v13 = vsub.s32 5, %v2402_v29 }
  0xf8   :  { %v2008_v17 = vpop.f32.mrb[3].mxu0  ;;  %v2027_v18 = vpop.f32.mrb[1].mxu1 }
  0xf9   :  { %v945_v19 = vadd.f32 %v2006_v14, %v1846_v12  ;;  %v2028_v20 = vadd.f32 %v2027_v18, %v2026_v16  ;;  %v2029_v21 = vpop.f32.mrb[2].mxu1  ;;  %v1229_v12 = vsub.s32 1, %v2402_v29  ;;  %v1226_v14 = vrot.slane %v2759_v11, %v1225_v8 }
  0xfa   :  { %v2030_v22 = vpop.f32.mrb[3].mxu1  ;;  %v1246_v16 = vrot.slane %v2759_v11, %v1245_v13 }
  0xfb   :  { %v985_v23 = vadd.f32 %v2028_v20, %v945_v19  ;;  %v1230_v15 = vrot.slane %v2759_v11, %v1229_v12 }
 0x115   :  { %v2048_v24 = vpop.f32.mrb[4].mxu0 }
 0x116   :  { %v2049_v25 = vpop.f32.mrb[5].mxu0 }
 0x117   :  { %v2050_v26 = vadd.f32 %v2049_v25, %v2048_v24  ;;  %v2051_v27 = vpop.f32.mrb[6].mxu0  ;;  %v2070_v28 = vpop.f32.mrb[4].mxu1 }
 0x118   :  { %v2052_v30 = vpop.f32.mrb[7].mxu0  ;;  %v2071_v31 = vpop.f32.mrb[5].mxu1 }
 0x119   :  { %v1025_v32 = vadd.f32 %v2050_v26, %v985_v23  ;;  %v2072_v33 = vadd.f32 %v2071_v31, %v2070_v28  ;;  %v2073_v35 = vpop.f32.mrb[6].mxu1  ;;  %v1233_v23 = vsub.s32 2, %v2402_v29  ;;  %v2773_v28 = vld [vmem:[%s2829_s4 + $0x8] sm:$0x1f]  ;;  %v1237_v30 = vsub.s32 3, %v2402_v29 }
 0x11a   :  { %v2074_v36 = vpop.f32.mrb[7].mxu1 }
 0x11b   :  { %v1065_v37 = vadd.f32 %v2072_v33, %v1025_v32 }
 0x135   :  { %v2092_v38 = vpop.f32.mrb[8].mxu0 }
 0x136   :  { %v2093_v39 = vpop.f32.mrb[9].mxu0 }
 0x137   :  { %v2094_v40 = vadd.f32 %v2093_v39, %v2092_v38  ;;  %v2095_v41 = vpop.f32.mrb[10].mxu0  ;;  %v2114_v42 = vpop.f32.mrb[8].mxu1 }
 0x138   :  { %v2096_v43 = vpop.f32.mrb[11].mxu0  ;;  %v2115_v44 = vpop.f32.mrb[9].mxu1  ;;  %v1258_v41 = vrot.slane %v2773_v28, %v1225_v8 }
 0x139   :  { %v1105_v45 = vadd.f32 %v2094_v40, %v1065_v37  ;;  %v2116_v46 = vadd.f32 %v2115_v44, %v2114_v42  ;;  %v2117_v47 = vpop.f32.mrb[10].mxu1  ;;  %v1234_v40 = vrot.slane %v2759_v11, %v1233_v23  ;;  %v1238_v44 = vrot.slane %v2759_v11, %v1237_v30 }
 0x13a   :  { %v2118_v48 = vpop.f32.mrb[11].mxu1 }
 0x13b   :  { %v1145_v49 = vadd.f32 %v2116_v46, %v1105_v45  ;;  %v1262_v45 = vrot.slane %v2773_v28, %v1229_v12 }
 0x145   :  { %v1184_v50 = vpop.f32.mrb[12].mxu0 }
 0x146   :  { %v1185_v51 = vadd.f32 %v1184_v50, %v1145_v49  ;;  %v2138_v52 = vpop.f32.mrb[13].mxu0 }
 0x147   :  { %v1187_v53 = vpop.f32.mrb[14].mxu0 }
 0x148   :  { %v1190_v56 = vpack.c.bf16 %v1185_v51, %v1185_v51  ;;  %v2139_v57 = vpop.f32.mrb[15].mxu0 }
 0x14a   :  { %1975 = vmatmul.mubr.msk.bf16.vlgmr.msra.gmra.mrb[12].mxu1 %vm1420_vm2, %v1190_v56  ;;  %1977 = vmatmul.mubr.msk.bf16.vlgmr.msra.gmra.mrb[16].mxu0 %vm1420_vm2, %v1190_v56 }
 0x14b   :  { %1466 = vmatpush1.bf16.msra.mxu1 %v2267_v54  ;;  %1589 = vmatpush1.bf16.msra.mxu0 %v2270_v55  ;;  %v1249_v54 = vsub.s32 6, %v2402_v29 }
 0x14c   :  { %1467 = vmatprep.subr.bf16.mxu1 %v2275_v59  ;;  %1590 = vmatprep.subr.bf16.mxu0 %v2278_v60  ;;  %v1253_v60 = vsub.s32 7, %v2402_v29 }
 0x14d   :  { %1497 = vmatprep.mubr.bf16.mxu1 %v2296_v9  ;;  %1620 = vmatprep.mubr.bf16.mxu0 %v2296_v9 }
 0x14e   :  { %v1254_v8 = vrot.slane %v2759_v11, %v1253_v60 }
 0x14f   :  { %1468 = vmatpush1.bf16.msra.mxu1 %v2273_v61  ;;  %1591 = vmatpush1.bf16.msra.mxu0 %v2276_v62 }
 0x150   :  { %1547 = vmatprep.subr.bf16.mxu1 %v2281_v63  ;;  %2140 = vmatprep.subr.bf16.mxu0 %v2294_v58 }
 0x152   :  { %1976 = vmatmul.mubr.msk.bf16.vlgmr.msra.gmra.mrb[16].mxu1 %vm1420_vm2, %v1190_v56  ;;  %1979 = vmatmul.mubr.msk.bf16.vlgmr.msra.gmra.mrb[20].mxu0 %vm1420_vm2, %v1190_v56 }
 0x153   :  { %1548 = vmatpush1.bf16.msra.mxu1 %v2279_v0  ;;  %2141 = vmatpush3.bf16.msra.mxu0 %v2282_v1 }
 0x154   :  { %1549 = vmatprep.subr.bf16.mxu1 %v2285_v2  ;;  %2142 = vmatprep.subr.bf16.mxu0 %v2294_v58 }
 0x155   :  { %1579 = vmatprep.mubr.bf16.mxu1 %v2296_v9  ;;  %2144 = vmatprep.mubr.msk.bf16.mxu0 %vm2295_vm0, %v2294_v58  ;;  %v2290_v58 = vld [vmem:[%s2827_s3 + $0x90] ss:$52 sps:$4 sm:$0xff]  }
 0x157   :  { %1550 = vmatpush1.bf16.msra.mxu1 %v2283_v3  ;;  %2143 = vmatpush3.bf16.msra.mxu0 %v2286_v4 }
 0x158   :  { %1629 = vmatprep.subr.bf16.mxu1 %v2289_v5  ;;  %v1250_v5 = vrot.slane %v2759_v11, %v1249_v54 }
 0x15a   :  { %1978 = vmatmul.mubr.msk.bf16.vlgmr.msra.gmra.mrb[20].mxu1 %vm1420_vm2, %v1190_v56  ;;  %2145 = vmatmul.mubr.msk.bf16.vlgmr.msra.gmra.mrb[24].mxu0 %vm1420_vm2, %v1190_v56 }
 0x15b   :  { %1630 = vmatpush1.bf16.msra.mxu1 %v2287_v6  ;;  %1661 = vmatprep.mubr.bf16.mxu1 %v2296_v9  ;;  %v1242_v9 = vrot.slane %v2759_v11, %v1241_v10  ;;  %v1274_v6 = vrot.slane %v2773_v28, %v1241_v10 }
 0x15c   :  { %1631 = vmatprep.subr.bf16.mxu1 %v2292_v7 }
 0x15f   :  { %1632 = vmatpush1.bf16.msra.mxu1 %v2290_v58 }
 0x162   :  { %1980 = vmatmul.mubr.msk.bf16.vlgmr.msra.gmra.mrb[24].mxu1 %vm1420_vm2, %v1190_v56 }
 0x21d   :  { %v1458_v17 = vpop.f32.mrb[12].mxu1  ;;  %v1540_v18 = vpop.f32.mrb[16].mxu0 }
 0x21e   :  { %v1459_v19 = vadd.f32 %v1458_v17, %v1226_v14  ;;  %v1541_v20 = vadd.f32 %v1540_v18, %v1242_v9  ;;  %v1460_v21 = vpop.f32.mrb[13].mxu1  ;;  %v1542_v22 = vpop.f32.mrb[17].mxu0 }
 0x21f   :  { %v1461_v24 = vadd.f32 %v1460_v21, %v1230_v15  ;;  %v1543_v25 = vadd.f32 %v1542_v22, %v1246_v16  ;;  %v1462_v26 = vpop.f32.mrb[14].mxu1  ;;  %v1544_v27 = vpop.f32.mrb[18].mxu0 }
 0x220   :  { %vm1710_vm3 = vcmp.ge.f32.partialorder %v1459_v19, 0.0  ;;  %v1723_v31 = vmul.f32 0.2, %v1459_v19  ;;  %vm1714_vm4 = vcmp.ge.f32.partialorder %v1541_v20, 0.0  ;;  %v1727_v32 = vmul.f32 0.2, %v1541_v20 }
 0x221   :  { %vm1711_vm5 = vcmp.ge.f32.partialorder %v1461_v24, 0.0  ;;  %v1724_v33 = vmul.f32 0.2, %v1461_v24  ;;  %vm1715_vm6 = vcmp.ge.f32.partialorder %v1543_v25, 0.0  ;;  %v1728_v35 = vmul.f32 0.2, %v1543_v25 }
 0x222   :  { %v1736_v36 = vsel %vm1710_vm3, %v1459_v19, %v1723_v31  ;;  %v2776_v37 = vsel %vm1714_vm4, %v1541_v20, %v1727_v32  ;;  %v1463_v38 = vpop.f32.mrb[15].mxu1  ;;  %v1545_v39 = vpop.f32.mrb[19].mxu0 }
 0x223   :  { %v1737_v42 = vsel %vm1711_vm5, %v1461_v24, %v1724_v33  ;;  %v2782_v43 = vsel %vm1715_vm6, %v1543_v25, %v1728_v35  ;;  %v1266_v33 = vrot.slane %v2773_v28, %v1233_v23  ;;  %v1270_v38 = vrot.slane %v2773_v28, %v1237_v30 }
 0x224   :  { %v1982_v46 = vpack.c.bf16 %v1737_v42, %v1736_v36  ;;  %v1984_v47 = vpack.c.bf16 %v2782_v43, %v2776_v37 }
 0x225   :  { %v1499_v48 = vpop.f32.mrb[16].mxu1  ;;  %v1622_v49 = vpop.f32.mrb[20].mxu0 }
 0x226   :  { %v1500_v50 = vadd.f32 %v1499_v48, %v1234_v40  ;;  %v1623_v51 = vadd.f32 %v1622_v49, %v1258_v41  ;;  %v1501_v52 = vpop.f32.mrb[17].mxu1  ;;  %v1624_v53 = vpop.f32.mrb[21].mxu0  ;;  %v1783_v15 = vrot.slane %v1982_v46, %v2417_v34  ;;  %v1800_v42 = vrot.slane %v1984_v47, %v2417_v34 }
 0x227   :  { %v1502_v55 = vadd.f32 %v1501_v52, %v1238_v44  ;;  %v1625_v56 = vadd.f32 %v1624_v53, %v1262_v45  ;;  %v1503_v57 = vpop.f32.mrb[18].mxu1  ;;  %v1626_v59 = vpop.f32.mrb[22].mxu0 }
 0x228   :  { %vm1712_vm7 = vcmp.ge.f32.partialorder %v1500_v50, 0.0  ;;  %v1725_v61 = vmul.f32 0.2, %v1500_v50  ;;  %vm1718_vm8 = vcmp.ge.f32.partialorder %v1623_v51, 0.0  ;;  %v1731_v62 = vmul.f32 0.2, %v1623_v51 }
 0x229   :  { %vm1713_vm9 = vcmp.ge.f32.partialorder %v1502_v55, 0.0  ;;  %v1726_v63 = vmul.f32 0.2, %v1502_v55  ;;  %vm1719_vm10 = vcmp.ge.f32.partialorder %v1625_v56, 0.0  ;;  %v1732_v0 = vmul.f32 0.2, %v1625_v56 }
 0x22a   :  { %v1738_v1 = vsel %vm1712_vm7, %v1500_v50, %v1725_v61  ;;  %v1744_v2 = vsel %vm1718_vm8, %v1623_v51, %v1731_v62  ;;  %v1504_v3 = vpop.f32.mrb[19].mxu1  ;;  %v1627_v4 = vpop.f32.mrb[23].mxu0 }
 0x22b   :  { %v1739_v7 = vsel %vm1713_vm9, %v1502_v55, %v1726_v63  ;;  %v1745_v58 = vsel %vm1719_vm10, %v1625_v56, %v1732_v0 }
 0x22c   :  { %v1983_v12 = vpack.c.bf16 %v1739_v7, %v1738_v1  ;;  %v1986_v13 = vpack.c.bf16 %v1745_v58, %v1744_v2 }
 0x22d   :  { %v1581_v14 = vpop.f32.mrb[20].mxu1  ;;  %v1704_v9 = vpop.f32.mrb[24].mxu0 }
 0x22e   :  { %v1790_v16 = vrot.slane %v1983_v12, %v2417_v34  ;;  %v1582_v17 = vadd.f32 %v1581_v14, %v1250_v5  ;;  %v1705_v18 = vadd.f32 %v1704_v9, %v1274_v6  ;;  %v1583_v19 = vpop.f32.mrb[21].mxu1  ;;  %v2146_v20 = vpop.f32.mrb[25].mxu0  ;;  %v1817_v51 = vrot.slane %v1986_v13, %v2417_v34 }
 0x22f   :  { %v1584_v21 = vadd.f32 %v1583_v19, %v1254_v8  ;;  %v1585_v22 = vpop.f32.mrb[22].mxu1  ;;  %v1707_v24 = vpop.f32.mrb[26].mxu0 }
 0x230   :  { %v1791_v10 = vcombine.low %v1783_v15, %v1790_v16  ;;  %vm1716_vm11 = vcmp.ge.f32.partialorder %v1582_v17, 0.0  ;;  %v1729_v25 = vmul.f32 0.2, %v1582_v17  ;;  %vm1722_vm12 = vcmp.ge.f32.partialorder %v1705_v18, 0.0  ;;  %v1586_v11 = vpop.f32.mrb[23].mxu1  ;;  %v2147_v26 = vpop.f32.mrb[27].mxu0 }
 0x231   :  { %v1735_v27 = vmul.f32 0.2, %v1705_v18  ;;  %vm1717_vm13 = vcmp.ge.f32.partialorder %v1584_v21, 0.0  ;;  %v1730_v31 = vmul.f32 0.2, %v1584_v21 }
 0x232   :  { %1837 = vst [vmem:[%s2830_s5] sm:$0xff] %v1791_v10  ;;  %v1742_v32 = vsel %vm1716_vm11, %v1582_v17, %v1729_v25 }
 0x233   :  { %v1748_v35 = vsel %vm1722_vm12, %v1705_v18, %v1735_v27  ;;  %v1743_v36 = vsel %vm1717_vm13, %v1584_v21, %v1730_v31 }
 0x234   :  { %v1761_v39 = vpack.c.bf16 %v1748_v35, %v1748_v35  ;;  %v1985_v40 = vpack.c.bf16 %v1743_v36, %v1742_v32 }
 0x235   :  { %v1663_v41 = vpop.f32.mrb[24].mxu1 }
 0x236   :  { %v1832_v44 = vrot.slane %v1761_v39, %v2417_v34  ;;  %v1807_v45 = vrot.slane %v1985_v40, %v2417_v34  ;;  %v1664_v23 = vadd.f32 %v1663_v41, %v1266_v33  ;;  %v1665_v46 = vpop.f32.mrb[25].mxu1 }
 0x237   :  { %v1666_v48 = vadd.f32 %v1665_v46, %v1270_v38  ;;  %v1667_v49 = vpop.f32.mrb[26].mxu1 }
 0x238   :  { %1841 = vst.msk [vmem:[%s2830_s5 + $0x18] sm:$0x3] %vm1840_vm14, %v1832_v44  ;;  %v1808_v29 = vcombine.low %v1800_v42, %v1807_v45  ;;  %vm1720_vm15 = vcmp.ge.f32.partialorder %v1664_v23, 0.0  ;;  %v1733_v28 = vmul.f32 0.2, %v1664_v23  ;;  %v1668_v30 = vpop.f32.mrb[27].mxu1 }
 0x239   :  { %vm1721_vm0 = vcmp.ge.f32.partialorder %v1666_v48, 0.0  ;;  %v1734_v50 = vmul.f32 0.2, %v1666_v48 }
 0x23a   :  { %1838 = vst [vmem:[%s2830_s5 + $0x8] sm:$0xff] %v1808_v29  ;;  %v1746_v37 = vsel %vm1720_vm15, %v1664_v23, %v1733_v28 }
 0x23b   :  { %v1747_v43 = vsel %vm1721_vm0, %v1666_v48, %v1734_v50 }
 0x23c   :  { %v1987_v47 = vpack.c.bf16 %v1747_v43, %v1746_v37 }
 0x23e   :  { %v1824_v52 = vrot.slane %v1987_v47, %v2417_v34 }
 0x240   :  { %v1825_v53 = vcombine.low %v1817_v51, %v1824_v52 }
 0x242   :  { %1839 = vst [vmem:[%s2830_s5 + $0x10] sm:$0xff] %v1825_v53 }

// kernel: forward.8
= control target key start
LH: loop header
LB: loop body
LE: loop exit
PB: predicated region body
PF: predicated region fallthrough
CT: control target
= control target key end

     0   :  { %s1442_s15 = smov 0   ;;  %s1444_s16 = smov 0   ;;  %s1857_s0 = inlined_call_operand.vmem [shape: bf16[4,8,144], index: 0, kind: input, shape index: {}]   ;;  %s1858_s1 = inlined_call_operand.vmem [shape: bf16[144,512], index: 1, kind: input, shape index: {}]   ;;  %s1859_s2 = inlined_call_operand.vmem [shape: f32[8,1], index: 2, kind: input, shape index: {}]   ;;  %s1860_s3 = inlined_call_operand.vmem [shape: f32[8,1], index: 3, kind: input, shape index: {}]   ;;  %s1861_s4 = inlined_call_operand.vmem [shape: bf16[4,8,512], index: 4, kind: output, shape index: {}]  }
   0x1   :  { %s1446_s17 = smov 0  }
   0x2 LB: > { %s26_s18 = sadd.s32 1, %s1409_s16  ;;  %p1206_p0 = scmp.ge.s32.totalorder %s1413_s17, 1  ;;  %s1413_s17 = sphi %s1446_s17, %s14_s17   ;;  %s1409_s16 = sphi %s1444_s16, %s1863_s16   ;;  %s1405_s15 = sphi %s1442_s15, %s1862_s15  }
   0x3   : > { %p28_p1 = scmp.ge.s32.totalorder %s26_s18, 2  ;;  %p185_p2 = scmp.lt.s32.totalorder %s1413_s17, 3 }
   0x5   : > { %s1865_s18 = smov (%p28_p1, %s26_s18), 0  ;;  %p186_p3 = pnand %p1206_p0, %p185_p2 }
   0x6   : > { %p234_p4 = scmp.eq.s32.totalorder (!%p186_p3), %s1405_s15, 0 }
   0x7   : > { %189 = sbr.rel (%p186_p3) target bundleno = 713 (0x2c9), region = 36 }
   0xe   : > { %239 = sbr.rel (!%p234_p4) target bundleno = 21 (0x15), region = 40  ;;  %vm240_vm0 = vcmask (%p234_p4), 7168   ;;  %v1415_v0 = vmov (%p234_p4), 0.0  }
   0xf   : > { %241 = vst.msk [vmem:[#allocation3] sm:$0xff] (%p234_p4), %vm240_vm0, %v1415_v0  ;;  %242 = vst.msk [vmem:[#allocation4] sm:$0xff] (%p234_p4), %vm240_vm0, %v1415_v0 }
  0x15 PF: > { %p1208_p5 = scmp.ne.s32.totalorder %s1405_s15, 0 }
  0x16   : > { %v1467_v1 = vld [vmem:[%s1858_s1 + $0x4] ss:$16 sps:$4 sm:$0xff] (!%p1208_p5)   ;;  %v1472_v2 = vld [vmem:[%s1858_s1 + $0xc] ss:$16 sps:$4 sm:$0xff] (!%p1208_p5)   ;;  %v1478_v3 = vld [vmem:[%s1858_s1] ss:$16 sps:$4 sm:$0xff] (!%p1208_p5)  }
  0x17   : > { %245 = sbr.rel (%p1208_p5) target bundleno = 533 (0x215), region = 44  ;;  %473 = vmatprep.subr.bf16.mxu0 (!%p1208_p5), %v1467_v1  ;;  %v1483_v4 = vld [vmem:[%s1858_s1 + $0x8] ss:$16 sps:$4 sm:$0xff] (!%p1208_p5)   ;;  %514 = vmatprep.subr.bf16.mxu1 (!%p1208_p5), %v1472_v2  ;;  %v1489_v5 = vld [vmem:[%s1858_s1 + $0x24] ss:$16 sps:$4 sm:$0xff] (!%p1208_p5)   ;;  %vm469_vm1 = vcmask (!%p1208_p5), 130048  }
  0x18   : > { %474 = vmatpush1.bf16.msra.mxu0 (!%p1208_p5), %v1478_v3  ;;  %515 = vmatpush1.bf16.msra.mxu1 (!%p1208_p5), %v1483_v4  ;;  %v1496_v6 = vld [vmem:[%s1858_s1 + $0x2c] ss:$16 sps:$4 sm:$0xff] (!%p1208_p5)   ;;  %v1501_v7 = vld [vmem:[%s1858_s1 + $0x20] ss:$16 sps:$4 sm:$0xff] (!%p1208_p5)   ;;  %v1507_v8 = vld [vmem:[%s1858_s1 + $0x28] ss:$16 sps:$4 sm:$0xff] (!%p1208_p5)  }
  0x19   : > { %475 = vmatprep.subr.bf16.mxu0 (!%p1208_p5), %v1489_v5  ;;  %516 = vmatprep.subr.bf16.mxu1 (!%p1208_p5), %v1496_v6  ;;  %v1513_v9 = vld [vmem:[%s1858_s1 + $0x44] ss:$16 sps:$4 sm:$0xff] (!%p1208_p5)   ;;  %v1518_v10 = vld [vmem:[%s1858_s1 + $0x4c] ss:$16 sps:$4 sm:$0xff] (!%p1208_p5)   ;;  %v1523_v11 = vld [vmem:[%s1858_s1 + $0x40] ss:$16 sps:$4 sm:$0xff] (!%p1208_p5)  }
  0x1a   : > { %v1528_v12 = vld [vmem:[%s1858_s1 + $0x48] ss:$16 sps:$4 sm:$0xff] (!%p1208_p5)   ;;  %v1535_v13 = vld [vmem:[%s1858_s1 + $0x64] ss:$16 sps:$4 sm:$0xff] (!%p1208_p5)   ;;  %v1542_v14 = vld [vmem:[%s1858_s1 + $0x6c] ss:$16 sps:$4 sm:$0xff] (!%p1208_p5)  }
  0x1b   : > { %v1547_v15 = vld [vmem:[%s1858_s1 + $0x60] ss:$16 sps:$4 sm:$0xff] (!%p1208_p5)   ;;  %v1554_v16 = vld [vmem:[%s1858_s1 + $0x68] ss:$16 sps:$4 sm:$0xff] (!%p1208_p5)   ;;  %v1559_v17 = vld [vmem:[%s1858_s1 + $0x84] ss:$16 sps:$4 sm:$0xff] (!%p1208_p5)  }
  0x1c   : > { %476 = vmatpush1.bf16.msra.mxu0 (!%p1208_p5), %v1501_v7  ;;  %517 = vmatpush1.bf16.msra.mxu1 (!%p1208_p5), %v1507_v8  ;;  %v1566_v18 = vld [vmem:[%s1858_s1 + $0x8c] ss:$16 sps:$4 sm:$0xff] (!%p1208_p5)   ;;  %v1571_v19 = vld [vmem:[%s1858_s1 + $0x80] ss:$16 sps:$4 sm:$0xff] (!%p1208_p5)   ;;  %v1576_v20 = vld [vmem:[%s1858_s1 + $0x88] ss:$16 sps:$4 sm:$0xff] (!%p1208_p5)  }
  0x1d   : > { %477 = vmatprep.subr.bf16.mxu0 (!%p1208_p5), %v1513_v9  ;;  %518 = vmatprep.subr.bf16.mxu1 (!%p1208_p5), %v1518_v10  ;;  %v1583_v21 = vld [vmem:[%s1858_s1 + $0xa4] ss:$16 sps:$4 sm:$0xff] (!%p1208_p5)   ;;  %v1590_v22 = vld [vmem:[%s1858_s1 + $0xac] ss:$16 sps:$4 sm:$0xff] (!%p1208_p5)   ;;  %v1595_v23 = vld [vmem:[%s1858_s1 + $0xa0] ss:$16 sps:$4 sm:$0xff] (!%p1208_p5)  }
  0x1e   : > { %v1602_v24 = vld [vmem:[%s1858_s1 + $0xa8] ss:$16 sps:$4 sm:$0xff]   ;;  %v1607_v25 = vld [vmem:[%s1858_s1 + $0xc4] ss:$16 sps:$4 sm:$0xff]   ;;  %v1614_v26 = vld [vmem:[%s1858_s1 + $0xcc] ss:$16 sps:$4 sm:$0xff]  }
  0x1f   : > { %v1621_v27 = vld [vmem:[%s1858_s1 + $0xc0] ss:$16 sps:$4 sm:$0xff]   ;;  %v1626_v28 = vld [vmem:[%s1858_s1 + $0xc8] ss:$16 sps:$4 sm:$0xff]   ;;  %v1636_v30 = vld [vmem:[%s1858_s1 + $0xe4] ss:$16 sps:$4 sm:$0xff]  }
  0x20   : > { %478 = vmatpush1.bf16.msra.mxu0 %v1523_v11  ;;  %519 = vmatpush1.bf16.msra.mxu1 %v1528_v12  ;;  %v282_v29 = vld [vmem:[%s1857_s0] sm:$0xff]  ;;  %v1641_v31 = vld [vmem:[%s1858_s1 + $0xec] ss:$16 sps:$4 sm:$0xff]   ;;  %v1655_v34 = vld [vmem:[%s1858_s1 + $0xe8] ss:$16 sps:$4 sm:$0xff]   ;;  %vm562_vm2 = vcmask 7168  }
  0x21   : > { %479 = vmatprep.subr.bf16.mxu0 %v1535_v13  ;;  %520 = vmatprep.subr.bf16.mxu1 %v1542_v14  ;;  %v1210_v32 = vcombine.high %v282_v29, %v282_v29  ;;  %v1650_v33 = vld [vmem:[%s1858_s1 + $0xe0] ss:$16 sps:$4 sm:$0xff]   ;;  %v1662_v35 = vld [vmem:[%s1858_s1 + $0x104] ss:$16 sps:$4 sm:$0xff]   ;;  %v1667_v36 = vld [vmem:[%s1858_s1 + $0x10c] ss:$16 sps:$4 sm:$0xff]   ;;  %v1209_v39 = vcombine.low %v282_v29, %v282_v29 }
  0x22   : > { %v1674_v37 = vld [vmem:[%s1858_s1 + $0x100] ss:$16 sps:$4 sm:$0xff]   ;;  %v1679_v38 = vld [vmem:[%s1858_s1 + $0x108] ss:$16 sps:$4 sm:$0xff]  }
  0x23   : > { %1247 = vmatprep.mubr.msk.bf16.mxu0 %vm469_vm1, %v1210_v32  ;;  %1248 = vmatprep.mubr.msk.bf16.mxu1 %vm469_vm1, %v1210_v32  ;;  %v1249_v40 = vld [vmem:[%s1857_s0 + $0x8] sm:$0xff]  ;;  %v1258_v43 = vld [vmem:[%s1857_s0 + $0x10] sm:$0xff]  ;;  %v1267_v46 = vld [vmem:[%s1857_s0 + $0x18] sm:$0xff] }
  0x24   : > { %480 = vmatpush1.bf16.msra.mxu0 %v1547_v15  ;;  %521 = vmatpush1.bf16.msra.mxu1 %v1554_v16  ;;  %v1251_v41 = vcombine.high %v1249_v40, %v1249_v40  ;;  %v1250_v42 = vcombine.low %v1249_v40, %v1249_v40  ;;  %v1260_v44 = vcombine.high %v1258_v43, %v1258_v43 }
  0x25   : > { %481 = vmatprep.subr.bf16.mxu0 %v1559_v17  ;;  %522 = vmatprep.subr.bf16.mxu1 %v1566_v18  ;;  %v1259_v45 = vcombine.low %v1258_v43, %v1258_v43  ;;  %v1269_v47 = vcombine.high %v1267_v46, %v1267_v46  ;;  %v1268_v48 = vcombine.low %v1267_v46, %v1267_v46 }
  0x28   : > { %482 = vmatpush1.bf16.msra.mxu0 %v1571_v19  ;;  %523 = vmatpush1.bf16.msra.mxu1 %v1576_v20 }
  0x29   : > { %483 = vmatprep.subr.bf16.mxu0 %v1583_v21  ;;  %524 = vmatprep.subr.bf16.mxu1 %v1590_v22 }
  0x2c   : > { %484 = vmatpush1.bf16.msra.mxu0 %v1595_v23  ;;  %525 = vmatpush1.bf16.msra.mxu1 %v1602_v24 }
  0x2d   : > { %485 = vmatprep.subr.bf16.mxu0 %v1607_v25  ;;  %526 = vmatprep.subr.bf16.mxu1 %v1614_v26 }
  0x30   : > { %486 = vmatpush1.bf16.msra.mxu0 %v1621_v27  ;;  %527 = vmatpush1.bf16.msra.mxu1 %v1626_v28 }
  0x31   : > { %487 = vmatprep.subr.bf16.mxu0 %v1636_v30  ;;  %528 = vmatprep.subr.bf16.mxu1 %v1641_v31 }
  0x34   : > { %488 = vmatpush1.bf16.msra.mxu0 %v1650_v33  ;;  %529 = vmatpush1.bf16.msra.mxu1 %v1655_v34 }
  0x35   : > { %489 = vmatprep.subr.bf16.mxu0 %v1662_v35  ;;  %530 = vmatprep.subr.bf16.mxu1 %v1667_v36 }
  0x38   : > { %490 = vmatpush1.bf16.msra.mxu0 %v1674_v37  ;;  %531 = vmatpush1.bf16.msra.mxu1 %v1679_v38 }
  0x39   : > { %595 = vmatprep.subr.bf16.mxu0 %v1467_v1  ;;  %636 = vmatprep.subr.bf16.mxu1 %v1472_v2 }
  0x3b   : > { %506 = vmatmul.mubr.bf16.vlgmr.msra.gmra.mrb[0].mxu0 %v1209_v39  ;;  %547 = vmatmul.mubr.bf16.vlgmr.msra.gmra.mrb[0].mxu1 %v1209_v39 }
  0x3c   : > { %596 = vmatpush1.bf16.msra.mxu0 %v1478_v3  ;;  %637 = vmatpush1.bf16.msra.mxu1 %v1483_v4 }
  0x3d   : > { %597 = vmatprep.subr.bf16.mxu0 %v1489_v5  ;;  %638 = vmatprep.subr.bf16.mxu1 %v1496_v6 }
  0x3e   : > { %1252 = vmatprep.mubr.msk.bf16.mxu0 %vm469_vm1, %v1251_v41  ;;  %1253 = vmatprep.mubr.msk.bf16.mxu1 %vm469_vm1, %v1251_v41 }
  0x40   : > { %598 = vmatpush1.bf16.msra.mxu0 %v1501_v7  ;;  %639 = vmatpush1.bf16.msra.mxu1 %v1507_v8 }
  0x41   : > { %599 = vmatprep.subr.bf16.mxu0 %v1513_v9  ;;  %640 = vmatprep.subr.bf16.mxu1 %v1518_v10 }
  0x44   : > { %600 = vmatpush1.bf16.msra.mxu0 %v1523_v11  ;;  %641 = vmatpush1.bf16.msra.mxu1 %v1528_v12 }
  0x45   : > { %601 = vmatprep.subr.bf16.mxu0 %v1535_v13  ;;  %642 = vmatprep.subr.bf16.mxu1 %v1542_v14 }
  0x48   : > { %602 = vmatpush1.bf16.msra.mxu0 %v1547_v15  ;;  %643 = vmatpush1.bf16.msra.mxu1 %v1554_v16 }
  0x49   : > { %603 = vmatprep.subr.bf16.mxu0 %v1559_v17  ;;  %644 = vmatprep.subr.bf16.mxu1 %v1566_v18 }
  0x4c   : > { %604 = vmatpush1.bf16.msra.mxu0 %v1571_v19  ;;  %645 = vmatpush1.bf16.msra.mxu1 %v1576_v20 }
  0x4d   : > { %605 = vmatprep.subr.bf16.mxu0 %v1583_v21  ;;  %646 = vmatprep.subr.bf16.mxu1 %v1590_v22 }
  0x50   : > { %606 = vmatpush1.bf16.msra.mxu0 %v1595_v23  ;;  %647 = vmatpush1.bf16.msra.mxu1 %v1602_v24 }
  0x51   : > { %607 = vmatprep.subr.bf16.mxu0 %v1607_v25  ;;  %648 = vmatprep.subr.bf16.mxu1 %v1614_v26 }
  0x54   : > { %608 = vmatpush1.bf16.msra.mxu0 %v1621_v27  ;;  %649 = vmatpush1.bf16.msra.mxu1 %v1626_v28 }
  0x55   : > { %609 = vmatprep.subr.bf16.mxu0 %v1636_v30  ;;  %650 = vmatprep.subr.bf16.mxu1 %v1641_v31 }
  0x58   : > { %610 = vmatpush1.bf16.msra.mxu0 %v1650_v33  ;;  %651 = vmatpush1.bf16.msra.mxu1 %v1655_v34 }
  0x59   : > { %611 = vmatprep.subr.bf16.mxu0 %v1662_v35  ;;  %652 = vmatprep.subr.bf16.mxu1 %v1667_v36 }
  0x5c   : > { %612 = vmatpush1.bf16.msra.mxu0 %v1674_v37  ;;  %653 = vmatpush1.bf16.msra.mxu1 %v1679_v38 }
  0x5d   : > { %715 = vmatprep.subr.bf16.mxu0 %v1467_v1  ;;  %756 = vmatprep.subr.bf16.mxu1 %v1472_v2 }
  0x5f   : > { %628 = vmatmul.mubr.bf16.vlgmr.msra.gmra.mrb[4].mxu0 %v1250_v42  ;;  %669 = vmatmul.mubr.bf16.vlgmr.msra.gmra.mrb[4].mxu1 %v1250_v42 }
  0x60   : > { %716 = vmatpush1.bf16.msra.mxu0 %v1478_v3  ;;  %757 = vmatpush1.bf16.msra.mxu1 %v1483_v4 }
  0x61   : > { %717 = vmatprep.subr.bf16.mxu0 %v1489_v5  ;;  %758 = vmatprep.subr.bf16.mxu1 %v1496_v6 }
  0x62   : > { %1261 = vmatprep.mubr.msk.bf16.mxu0 %vm469_vm1, %v1260_v44  ;;  %1262 = vmatprep.mubr.msk.bf16.mxu1 %vm469_vm1, %v1260_v44 }
  0x64   : > { %718 = vmatpush1.bf16.msra.mxu0 %v1501_v7  ;;  %759 = vmatpush1.bf16.msra.mxu1 %v1507_v8 }
  0x65   : > { %719 = vmatprep.subr.bf16.mxu0 %v1513_v9  ;;  %760 = vmatprep.subr.bf16.mxu1 %v1518_v10 }
  0x68   : > { %720 = vmatpush1.bf16.msra.mxu0 %v1523_v11  ;;  %761 = vmatpush1.bf16.msra.mxu1 %v1528_v12 }
  0x69   : > { %721 = vmatprep.subr.bf16.mxu0 %v1535_v13  ;;  %762 = vmatprep.subr.bf16.mxu1 %v1542_v14 }
  0x6c   : > { %722 = vmatpush1.bf16.msra.mxu0 %v1547_v15  ;;  %763 = vmatpush1.bf16.msra.mxu1 %v1554_v16 }
  0x6d   : > { %723 = vmatprep.subr.bf16.mxu0 %v1559_v17  ;;  %764 = vmatprep.subr.bf16.mxu1 %v1566_v18 }
  0x70   : > { %724 = vmatpush1.bf16.msra.mxu0 %v1571_v19  ;;  %765 = vmatpush1.bf16.msra.mxu1 %v1576_v20 }
  0x71   : > { %725 = vmatprep.subr.bf16.mxu0 %v1583_v21  ;;  %766 = vmatprep.subr.bf16.mxu1 %v1590_v22 }
  0x74   : > { %726 = vmatpush1.bf16.msra.mxu0 %v1595_v23  ;;  %767 = vmatpush1.bf16.msra.mxu1 %v1602_v24 }
  0x75   : > { %727 = vmatprep.subr.bf16.mxu0 %v1607_v25  ;;  %768 = vmatprep.subr.bf16.mxu1 %v1614_v26 }
  0x78   : > { %728 = vmatpush1.bf16.msra.mxu0 %v1621_v27  ;;  %769 = vmatpush1.bf16.msra.mxu1 %v1626_v28 }
  0x79   : > { %729 = vmatprep.subr.bf16.mxu0 %v1636_v30  ;;  %770 = vmatprep.subr.bf16.mxu1 %v1641_v31 }
  0x7c   : > { %730 = vmatpush1.bf16.msra.mxu0 %v1650_v33  ;;  %771 = vmatpush1.bf16.msra.mxu1 %v1655_v34 }
  0x7d   : > { %731 = vmatprep.subr.bf16.mxu0 %v1662_v35  ;;  %772 = vmatprep.subr.bf16.mxu1 %v1667_v36 }
  0x80   : > { %732 = vmatpush1.bf16.msra.mxu0 %v1674_v37  ;;  %773 = vmatpush1.bf16.msra.mxu1 %v1679_v38 }
  0x81   : > { %835 = vmatprep.subr.bf16.mxu0 %v1467_v1  ;;  %876 = vmatprep.subr.bf16.mxu1 %v1472_v2 }
  0x83   : > { %748 = vmatmul.mubr.bf16.vlgmr.msra.gmra.mrb[8].mxu0 %v1259_v45  ;;  %789 = vmatmul.mubr.bf16.vlgmr.msra.gmra.mrb[8].mxu1 %v1259_v45 }
  0x84   : > { %836 = vmatpush1.bf16.msra.mxu0 %v1478_v3  ;;  %877 = vmatpush1.bf16.msra.mxu1 %v1483_v4 }
  0x85   : > { %837 = vmatprep.subr.bf16.mxu0 %v1489_v5  ;;  %878 = vmatprep.subr.bf16.mxu1 %v1496_v6 }
  0x86   : > { %1270 = vmatprep.mubr.msk.bf16.mxu0 %vm469_vm1, %v1269_v47  ;;  %1271 = vmatprep.mubr.msk.bf16.mxu1 %vm469_vm1, %v1269_v47 }
  0x88   : > { %838 = vmatpush1.bf16.msra.mxu0 %v1501_v7  ;;  %879 = vmatpush1.bf16.msra.mxu1 %v1507_v8 }
  0x89   : > { %839 = vmatprep.subr.bf16.mxu0 %v1513_v9  ;;  %880 = vmatprep.subr.bf16.mxu1 %v1518_v10 }
  0x8c   : > { %840 = vmatpush1.bf16.msra.mxu0 %v1523_v11  ;;  %881 = vmatpush1.bf16.msra.mxu1 %v1528_v12 }
  0x8d   : > { %841 = vmatprep.subr.bf16.mxu0 %v1535_v13  ;;  %882 = vmatprep.subr.bf16.mxu1 %v1542_v14 }
  0x90   : > { %842 = vmatpush1.bf16.msra.mxu0 %v1547_v15  ;;  %883 = vmatpush1.bf16.msra.mxu1 %v1554_v16 }
  0x91   : > { %843 = vmatprep.subr.bf16.mxu0 %v1559_v17  ;;  %884 = vmatprep.subr.bf16.mxu1 %v1566_v18 }
  0x94   : > { %844 = vmatpush1.bf16.msra.mxu0 %v1571_v19  ;;  %885 = vmatpush1.bf16.msra.mxu1 %v1576_v20 }
  0x95   : > { %845 = vmatprep.subr.bf16.mxu0 %v1583_v21  ;;  %886 = vmatprep.subr.bf16.mxu1 %v1590_v22 }
  0x98   : > { %846 = vmatpush1.bf16.msra.mxu0 %v1595_v23  ;;  %887 = vmatpush1.bf16.msra.mxu1 %v1602_v24 }
  0x99   : > { %847 = vmatprep.subr.bf16.mxu0 %v1607_v25  ;;  %888 = vmatprep.subr.bf16.mxu1 %v1614_v26 }
  0x9c   : > { %848 = vmatpush1.bf16.msra.mxu0 %v1621_v27  ;;  %889 = vmatpush1.bf16.msra.mxu1 %v1626_v28 }
  0x9d   : > { %849 = vmatprep.subr.bf16.mxu0 %v1636_v30  ;;  %890 = vmatprep.subr.bf16.mxu1 %v1641_v31 }
  0xa0   : > { %850 = vmatpush1.bf16.msra.mxu0 %v1650_v33  ;;  %891 = vmatpush1.bf16.msra.mxu1 %v1655_v34 }
  0xa1   : > { %851 = vmatprep.subr.bf16.mxu0 %v1662_v35  ;;  %892 = vmatprep.subr.bf16.mxu1 %v1667_v36 }
  0xa4   : > { %852 = vmatpush1.bf16.msra.mxu0 %v1674_v37  ;;  %893 = vmatpush1.bf16.msra.mxu1 %v1679_v38 }
  0xa7   : > { %868 = vmatmul.mubr.bf16.vlgmr.msra.gmra.mrb[12].mxu0 %v1268_v48  ;;  %909 = vmatmul.mubr.bf16.vlgmr.msra.gmra.mrb[12].mxu1 %v1268_v48 }
 0x10e   : > { %v507_v49 = vpop.f32.mrb[0].mxu0  ;;  %v548_v50 = vpop.f32.mrb[0].mxu1 }
 0x10f   : > { %v565_v51 = vmul.f32 %v507_v49, %v507_v49  ;;  %580 = vst [vmem:[#allocation2] sm:$0xff] %v507_v49  ;;  %v509_v52 = vpop.f32.mrb[1].mxu0  ;;  %582 = vst [vmem:[#allocation2 + $0x10] sm:$0xff] %v548_v50  ;;  %v550_v53 = vpop.f32.mrb[1].mxu1  ;;  %v567_v56 = vmul.f32 %v548_v50, %v548_v50 }
 0x110   : > { %v556_v54 = vadd.f32 %v509_v52, %v507_v49  ;;  %v566_v55 = vmul.f32 %v509_v52, %v509_v52  ;;  %581 = vst [vmem:[#allocation2 + $0x8] sm:$0xff] %v509_v52  ;;  %v511_v57 = vpop.f32.mrb[2].mxu0  ;;  %583 = vst [vmem:[#allocation2 + $0x18] sm:$0xff] %v550_v53  ;;  %v552_v58 = vpop.f32.mrb[2].mxu1  ;;  %v568_v62 = vmul.f32 %v550_v53, %v550_v53 }
 0x111   : > { %v512_v59 = vpop.f32.mrb[3].mxu0  ;;  %v553_v60 = vpop.f32.mrb[3].mxu1  ;;  %v555_v57 = vld [vmem:[#allocation3] sm:$0xff] }
 0x112   : > { %v557_v61 = vadd.f32 %v556_v54, %v548_v50  ;;  %v569_v63 = vadd.f32 %v566_v55, %v565_v51  ;;  %v564_v60 = vld [vmem:[#allocation4] sm:$0xff] }
 0x114   : > { %v558_v0 = vadd.f32 %v557_v61, %v550_v53  ;;  %v570_v1 = vadd.f32 %v569_v63, %v567_v56 }
 0x116   : > { %559 = vadd.xlane.f32.xlu0 %v558_v0  ;;  %v571_v2 = vadd.f32 %v570_v1, %v568_v62 }
 0x11a   : > { %572 = vadd.xlane.f32.xlu0 %v571_v2 }
 0x132   : > { %v629_v3 = vpop.f32.mrb[4].mxu0  ;;  %v670_v4 = vpop.f32.mrb[4].mxu1 }
 0x133   : > { %v686_v5 = vmul.f32 %v629_v3, %v629_v3  ;;  %1254 = vst [vmem:[#allocation2 + $0x20] sm:$0xff] %v629_v3  ;;  %v631_v6 = vpop.f32.mrb[5].mxu0  ;;  %1256 = vst [vmem:[#allocation2 + $0x30] sm:$0xff] %v670_v4  ;;  %v672_v7 = vpop.f32.mrb[5].mxu1  ;;  %v688_v10 = vmul.f32 %v670_v4, %v670_v4 }
 0x134   : > { %v678_v8 = vadd.f32 %v631_v6, %v629_v3  ;;  %v687_v9 = vmul.f32 %v631_v6, %v631_v6  ;;  %1255 = vst [vmem:[#allocation2 + $0x28] sm:$0xff] %v631_v6  ;;  %v633_v11 = vpop.f32.mrb[6].mxu0  ;;  %1257 = vst [vmem:[#allocation2 + $0x38] sm:$0xff] %v672_v7  ;;  %v674_v12 = vpop.f32.mrb[6].mxu1  ;;  %v689_v16 = vmul.f32 %v672_v7, %v672_v7 }
 0x135   : > { %v634_v13 = vpop.f32.mrb[7].mxu0  ;;  %v675_v14 = vpop.f32.mrb[7].mxu1 }
 0x136   : > { %v679_v15 = vadd.f32 %v678_v8, %v670_v4  ;;  %v690_v17 = vadd.f32 %v687_v9, %v686_v5 }
 0x138   : > { %v680_v18 = vadd.f32 %v679_v15, %v672_v7  ;;  %v691_v19 = vadd.f32 %v690_v17, %v688_v10 }
 0x13a   : > { %681 = vadd.xlane.f32.xlu1 %v680_v18  ;;  %v692_v20 = vadd.f32 %v691_v19, %v689_v16 }
 0x13e   : > { %693 = vadd.xlane.f32.xlu1 %v692_v20 }
 0x156   : > { %v749_v21 = vpop.f32.mrb[8].mxu0  ;;  %v790_v22 = vpop.f32.mrb[8].mxu1 }
 0x157   : > { %v806_v23 = vmul.f32 %v749_v21, %v749_v21  ;;  %1263 = vst [vmem:[#allocation2 + $0x40] sm:$0xff] %v749_v21  ;;  %v751_v24 = vpop.f32.mrb[9].mxu0  ;;  %1265 = vst [vmem:[#allocation2 + $0x50] sm:$0xff] %v790_v22  ;;  %v792_v25 = vpop.f32.mrb[9].mxu1  ;;  %v808_v28 = vmul.f32 %v790_v22, %v790_v22 }
 0x158   : > { %v798_v26 = vadd.f32 %v751_v24, %v749_v21  ;;  %v807_v27 = vmul.f32 %v751_v24, %v751_v24  ;;  %1264 = vst [vmem:[#allocation2 + $0x48] sm:$0xff] %v751_v24  ;;  %v753_v29 = vpop.f32.mrb[10].mxu0  ;;  %1266 = vst [vmem:[#allocation2 + $0x58] sm:$0xff] %v792_v25  ;;  %v794_v30 = vpop.f32.mrb[10].mxu1  ;;  %v809_v34 = vmul.f32 %v792_v25, %v792_v25 }
 0x159   : > { %v754_v31 = vpop.f32.mrb[11].mxu0  ;;  %v795_v32 = vpop.f32.mrb[11].mxu1 }
 0x15a   : > { %v799_v33 = vadd.f32 %v798_v26, %v790_v22  ;;  %v810_v35 = vadd.f32 %v807_v27, %v806_v23 }
 0x15c   : > { %v800_v36 = vadd.f32 %v799_v33, %v792_v25  ;;  %v811_v37 = vadd.f32 %v810_v35, %v808_v28 }
 0x15e   : > { %801 = vadd.xlane.f32.xlu0 %v800_v36  ;;  %v812_v38 = vadd.f32 %v811_v37, %v809_v34 }
 0x160   : > { %813 = vadd.xlane.f32.xlu1 %v812_v38 }
 0x17a   : > { %v869_v39 = vpop.f32.mrb[12].mxu0  ;;  %v910_v40 = vpop.f32.mrb[12].mxu1 }
 0x17b   : > { %v926_v41 = vmul.f32 %v869_v39, %v869_v39  ;;  %1272 = vst [vmem:[#allocation2 + $0x60] sm:$0xff] %v869_v39  ;;  %1274 = vst [vmem:[#allocation2 + $0x70] sm:$0xff] %v910_v40  ;;  %v871_v42 = vpop.f32.mrb[13].mxu0  ;;  %v912_v43 = vpop.f32.mrb[13].mxu1  ;;  %v928_v44 = vmul.f32 %v910_v40, %v910_v40 }
 0x17c   : > { %v918_v45 = vadd.f32 %v871_v42, %v869_v39  ;;  %v927_v46 = vmul.f32 %v871_v42, %v871_v42  ;;  %1273 = vst [vmem:[#allocation2 + $0x68] sm:$0xff] %v871_v42  ;;  %1275 = vst [vmem:[#allocation2 + $0x78] sm:$0xff] %v912_v43  ;;  %v873_v47 = vpop.f32.mrb[14].mxu0  ;;  %v914_v48 = vpop.f32.mrb[14].mxu1  ;;  %v929_v54 = vmul.f32 %v912_v43, %v912_v43 }
 0x17d   : > { %v874_v49 = vpop.f32.mrb[15].mxu0  ;;  %v915_v50 = vpop.f32.mrb[15].mxu1 }
 0x17e   : > { %v919_v51 = vadd.f32 %v918_v45, %v910_v40  ;;  %v930_v52 = vadd.f32 %v927_v46, %v926_v41 }
 0x180   : > { %v920_v53 = vadd.f32 %v919_v51, %v912_v43  ;;  %v931_v55 = vadd.f32 %v930_v52, %v928_v44 }
 0x182   : > { %921 = vadd.xlane.f32.xlu0 %v920_v53  ;;  %v932_v56 = vadd.f32 %v931_v55, %v929_v54 }
 0x184   : > { %933 = vadd.xlane.f32.xlu1 %v932_v56 }
 0x1a3   : > { %v560_v58 = vpop.xlane.xlu0 %559 }
 0x1a4   : > { %v561_v59 = vadd.f32 %v560_v58, %v555_v57 }
 0x1a6   : > { %563 = vst.msk [vmem:[#allocation3] sm:$0xff] %vm562_vm2, %v561_v59 }
 0x1a7   : > { %v573_v61 = vpop.xlane.xlu0 %572 }
 0x1a8   : > { %v574_v62 = vadd.f32 %v573_v61, %v564_v60 }
 0x1aa   : > { %575 = vst.msk [vmem:[#allocation4] sm:$0xff] %vm562_vm2, %v574_v62 }
 0x1ad   : > { %v677_v63 = vld [vmem:[#allocation3] sm:$0xff] }
 0x1b1   : > { %v685_v2 = vld [vmem:[#allocation4] sm:$0xff] }
 0x1c7   : > { %v682_v0 = vpop.xlane.xlu1 %681 }
 0x1c8   : > { %v683_v1 = vadd.f32 %v682_v0, %v677_v63 }
 0x1ca   : > { %684 = vst.msk [vmem:[#allocation3] sm:$0xff] %vm562_vm2, %v683_v1 }
 0x1cb   : > { %v694_v3 = vpop.xlane.xlu1 %693 }
 0x1cc   : > { %v695_v4 = vadd.f32 %v694_v3, %v685_v2 }
 0x1ce   : > { %696 = vst.msk [vmem:[#allocation4] sm:$0xff] %vm562_vm2, %v695_v4 }
 0x1d1   : > { %v797_v5 = vld [vmem:[#allocation3] sm:$0xff] }
 0x1d5   : > { %v805_v8 = vld [vmem:[#allocation4] sm:$0xff] }
 0x1eb   : > { %v802_v6 = vpop.xlane.xlu0 %801 }
 0x1ec   : > { %v803_v7 = vadd.f32 %v802_v6, %v797_v5 }
 0x1ed   : > { %v814_v9 = vpop.xlane.xlu1 %813 }
 0x1ee   : > { %804 = vst.msk [vmem:[#allocation3] sm:$0xff] %vm562_vm2, %v803_v7  ;;  %v815_v10 = vadd.f32 %v814_v9, %v805_v8 }
 0x1f0   : > { %816 = vst.msk [vmem:[#allocation4] sm:$0xff] %vm562_vm2, %v815_v10 }
 0x1f5   : > { %v917_v11 = vld [vmem:[#allocation3] sm:$0xff] }
 0x1f7   : > { %v925_v14 = vld [vmem:[#allocation4] sm:$0xff] }
 0x20f   : > { %v922_v12 = vpop.xlane.xlu0 %921 }
 0x210   : > { %v923_v13 = vadd.f32 %v922_v12, %v917_v11 }
 0x211   : > { %v934_v15 = vpop.xlane.xlu1 %933 }
 0x212   : > { %924 = vst.msk [vmem:[#allocation3] sm:$0xff] %vm562_vm2, %v923_v13  ;;  %v935_v16 = vadd.f32 %v934_v15, %v925_v14 }
 0x214   : > { %936 = vst.msk [vmem:[#allocation4] sm:$0xff] %vm562_vm2, %v935_v16 }
 0x215 PF: > { %p944_p6 = scmp.eq.s32.totalorder %s1405_s15, 1 }
 0x216   : > { %v957_v24 = vld [vmem:[%s1859_s2] sm:$0xff] (%p944_p6)  ;;  %vm959_vm3 = vcmask (%p944_p6), 7168  }
 0x217   : > { %948 = sbr.rel (!%p944_p6) target bundleno = 564 (0x234), region = 48  ;;  %v961_v27 = vld [vmem:[%s1860_s3] sm:$0xff] (%p944_p6) }
 0x219   : > { %v949_v17 = vld [vmem:[#allocation3] sm:$0xff] (%p944_p6) }
 0x21a   : > { %v950_v19 = vmul.f32 (%p944_p6), 0.000625, %v949_v17 }
 0x21b   : > { %v951_v18 = vld [vmem:[#allocation4] sm:$0xff] (%p944_p6) }
 0x21c   : > { %v952_v20 = vmul.f32 (%p944_p6), 0.000625, %v951_v18  ;;  %v953_v21 = vmul.f32 (%p944_p6), %v950_v19, %v950_v19 }
 0x21e   : > { %v954_v22 = vsub.f32 %v952_v20, %v953_v21 }
 0x220   : > { %v955_v23 = vadd.f32 1e-05, %v954_v22 }
 0x222   : > { %1388 = vrsqrt.f32 %v955_v23 }
 0x22c   : > { %v1389_v25 = vpop.eup %1388 }
 0x22d   : > { %v958_v26 = vmul.f32 %v1389_v25, %v957_v24 }
 0x22f   : > { %960 = vst.msk [vmem:[#allocation5] sm:$0xff] %vm959_vm3, %v958_v26  ;;  %v962_v28 = vmul.f32 %v958_v26, %v950_v19 }
 0x231   : > { %v963_v29 = vsub.f32 %v961_v27, %v962_v28 }
 0x233   : > { %964 = vst.msk [vmem:[#allocation6] sm:$0xff] %vm959_vm3, %v963_v29 }
 0x234 PF: > { %p1277_p7 = scmp.ne.s32.totalorder %s1405_s15, 1 }
 0x235   : > { %v1416_v31 = vmov (!%p1277_p7), 0   ;;  %v972_v33 = vld [vmem:[#allocation2] sm:$0xff] (!%p1277_p7)  ;;  %v973_v34 = vld [vmem:[#allocation2 + $0x8] sm:$0xff] (!%p1277_p7)  ;;  %v974_v35 = vld [vmem:[#allocation2 + $0x10] sm:$0xff] (!%p1277_p7) }
 0x236   : > { %967 = sbr.rel (%p1277_p7) target bundleno = 713 (0x2c9), region = 52  ;;  %v988_v30 = vld [vmem:[#allocation5] sm:$0xff] (!%p1277_p7)  ;;  %1390 = vset.pattern.permute.xlu0 (!%p1277_p7), %v1416_v31  ;;  %v975_v36 = vld [vmem:[#allocation2 + $0x18] sm:$0xff] (!%p1277_p7)  ;;  %v976_v37 = vld [vmem:[#allocation2 + $0x20] sm:$0xff] (!%p1277_p7) }
 0x237   : > { %991 = vperm.xlu0 (!%p1277_p7), %1390, %v988_v30   ;;  %v977_v38 = vld [vmem:[#allocation2 + $0x28] sm:$0xff] (!%p1277_p7)  ;;  %v978_v39 = vld [vmem:[#allocation2 + $0x30] sm:$0xff] (!%p1277_p7)  ;;  %v979_v40 = vld [vmem:[#allocation2 + $0x38] sm:$0xff] (!%p1277_p7) }
 0x238   : > { %v980_v41 = vld [vmem:[#allocation2 + $0x40] sm:$0xff] (!%p1277_p7)  ;;  %v981_v42 = vld [vmem:[#allocation2 + $0x48] sm:$0xff] (!%p1277_p7)  ;;  %v982_v44 = vld [vmem:[#allocation2 + $0x50] sm:$0xff] (!%p1277_p7) }
 0x239   : > { %v983_v45 = vld [vmem:[#allocation2 + $0x58] sm:$0xff] (!%p1277_p7)  ;;  %v984_v46 = vld [vmem:[#allocation2 + $0x60] sm:$0xff] (!%p1277_p7)  ;;  %v985_v47 = vld [vmem:[#allocation2 + $0x68] sm:$0xff] (!%p1277_p7) }
 0x23a   : > { %v1010_v32 = vld [vmem:[#allocation6] sm:$0xff] (!%p1277_p7)  ;;  %v986_v48 = vld [vmem:[#allocation2 + $0x70] sm:$0xff] (!%p1277_p7) }
 0x23b   : > { %1013 = vperm.xlu0 (!%p1277_p7), %1390, %v1010_v32   ;;  %v987_v49 = vld [vmem:[#allocation2 + $0x78] sm:$0xff] (!%p1277_p7) }
 0x2b6   : > { %v992_v43 = vpop.permute.xlu0 %991 }
 0x2b7   : > { %v994_v50 = vmul.f32 %v992_v43, %v972_v33  ;;  %v995_v51 = vmul.f32 %v992_v43, %v973_v34  ;;  %v996_v52 = vmul.f32 %v992_v43, %v974_v35  ;;  %v997_v53 = vmul.f32 %v992_v43, %v975_v36 }
 0x2b8   : > { %v998_v54 = vmul.f32 %v992_v43, %v976_v37  ;;  %v999_v55 = vmul.f32 %v992_v43, %v977_v38  ;;  %v1000_v56 = vmul.f32 %v992_v43, %v978_v39  ;;  %v1001_v57 = vmul.f32 %v992_v43, %v979_v40 }
 0x2b9   : > { %v1002_v58 = vmul.f32 %v992_v43, %v980_v41  ;;  %v1003_v59 = vmul.f32 %v992_v43, %v981_v42  ;;  %v1004_v60 = vmul.f32 %v992_v43, %v982_v44  ;;  %v1005_v61 = vmul.f32 %v992_v43, %v983_v45 }
 0x2ba   : > { %v1014_v62 = vpop.permute.xlu0 %1013  ;;  %v1006_v63 = vmul.f32 %v992_v43, %v984_v46  ;;  %v1007_v0 = vmul.f32 %v992_v43, %v985_v47  ;;  %v1008_v1 = vmul.f32 %v992_v43, %v986_v48  ;;  %v1009_v2 = vmul.f32 %v992_v43, %v987_v49 }
 0x2bb   : > { %v1016_v3 = vadd.f32 %v1014_v62, %v994_v50  ;;  %v1017_v4 = vadd.f32 %v1014_v62, %v995_v51  ;;  %v1018_v5 = vadd.f32 %v1014_v62, %v996_v52  ;;  %v1019_v6 = vadd.f32 %v1014_v62, %v997_v53 }
 0x2bc   : > { %v1020_v7 = vadd.f32 %v1014_v62, %v998_v54  ;;  %v1021_v8 = vadd.f32 %v1014_v62, %v999_v55  ;;  %v1022_v9 = vadd.f32 %v1014_v62, %v1000_v56  ;;  %v1023_v10 = vadd.f32 %v1014_v62, %v1001_v57 }
 0x2bd   : > { %v1024_v11 = vadd.f32 %v1014_v62, %v1002_v58  ;;  %v1025_v12 = vadd.f32 %v1014_v62, %v1003_v59  ;;  %v1026_v13 = vadd.f32 %v1014_v62, %v1004_v60  ;;  %v1027_v14 = vadd.f32 %v1014_v62, %v1005_v61 }
 0x2be   : > { %v1028_v15 = vadd.f32 %v1014_v62, %v1006_v63  ;;  %v1029_v16 = vadd.f32 %v1014_v62, %v1007_v0  ;;  %v1030_v17 = vadd.f32 %v1014_v62, %v1008_v1  ;;  %v1031_v18 = vadd.f32 %v1014_v62, %v1009_v2 }
 0x2bf   : > { %v1032_v19 = vmax.f32 %v1016_v3, 0.0  ;;  %v1033_v20 = vmax.f32 %v1017_v4, 0.0  ;;  %v1034_v21 = vmax.f32 %v1018_v5, 0.0  ;;  %v1035_v22 = vmax.f32 %v1019_v6, 0.0 }
 0x2c0   : > { %v1036_v23 = vmax.f32 %v1020_v7, 0.0  ;;  %v1037_v24 = vmax.f32 %v1021_v8, 0.0  ;;  %v1038_v25 = vmax.f32 %v1022_v9, 0.0  ;;  %v1039_v26 = vmax.f32 %v1023_v10, 0.0 }
 0x2c1   : > { %v1040_v27 = vmax.f32 %v1024_v11, 0.0  ;;  %v1041_v28 = vmax.f32 %v1025_v12, 0.0  ;;  %v1042_v29 = vmax.f32 %v1026_v13, 0.0  ;;  %v1043_v30 = vmax.f32 %v1027_v14, 0.0 }
 0x2c2   : > { %v1044_v31 = vmax.f32 %v1028_v15, 0.0  ;;  %v1045_v32 = vmax.f32 %v1029_v16, 0.0  ;;  %v1046_v33 = vmax.f32 %v1030_v17, 0.0  ;;  %v1047_v34 = vmax.f32 %v1031_v18, 0.0 }
 0x2c3   : > { %v1292_v35 = vpack.c.bf16 %v1033_v20, %v1032_v19  ;;  %v1293_v36 = vpack.c.bf16 %v1035_v22, %v1034_v21  ;;  %v1294_v37 = vpack.c.bf16 %v1037_v24, %v1036_v23  ;;  %v1295_v38 = vpack.c.bf16 %v1039_v26, %v1038_v25 }
 0x2c4   : > { %v1296_v39 = vpack.c.bf16 %v1041_v28, %v1040_v27  ;;  %v1297_v40 = vpack.c.bf16 %v1043_v30, %v1042_v29  ;;  %v1298_v41 = vpack.c.bf16 %v1045_v32, %v1044_v31  ;;  %v1299_v42 = vpack.c.bf16 %v1047_v34, %v1046_v33 }
 0x2c5   : > { %1112 = vst [vmem:[%s1861_s4] sm:$0xff] %v1292_v35  ;;  %1113 = vst [vmem:[%s1861_s4 + $0x8] sm:$0xff] %v1293_v36 }
 0x2c6   : > { %1114 = vst [vmem:[%s1861_s4 + $0x10] sm:$0xff] %v1294_v37  ;;  %1115 = vst [vmem:[%s1861_s4 + $0x18] sm:$0xff] %v1295_v38 }
 0x2c7   : > { %1116 = vst [vmem:[%s1861_s4 + $0x20] sm:$0xff] %v1296_v39  ;;  %1117 = vst [vmem:[%s1861_s4 + $0x28] sm:$0xff] %v1297_v40 }
 0x2c8   : > { %1118 = vst [vmem:[%s1861_s4 + $0x30] sm:$0xff] %v1298_v41  ;;  %1119 = vst [vmem:[%s1861_s4 + $0x38] sm:$0xff] %v1299_v42 }
 0x2c9 PF: > { %s14_s17 = sadd.s32 1, %s1413_s17   ;;  %s1862_s15 = smov %s1409_s16 }
 0x2ca   : > { %p11_p8 = scmp.ge.s32.totalorder %s14_s17, 4   ;;  %s1863_s16 = smov %s1865_s18 }
 0x2cc   :  { %13 = sbr.rel (!%p11_p8) target bundleno = 2 (0x2), region = 90 }

// kernel: forward.9
= control target key start
LH: loop header
LB: loop body
LE: loop exit
PB: predicated region body
PF: predicated region fallthrough
CT: control target
= control target key end

     0   :  { %s2544_s15 = smov 0   ;;  %s2546_s16 = smov 0   ;;  %s3310_s0 = inlined_call_operand.vmem [shape: bf16[4,3,72], index: 0, kind: input, shape index: {}]   ;;  %s3311_s1 = inlined_call_operand.vmem [shape: bf16[72,2048], index: 1, kind: input, shape index: {}]   ;;  %s3312_s2 = inlined_call_operand.vmem [shape: f32[3,1], index: 2, kind: input, shape index: {}]   ;;  %s3313_s3 = inlined_call_operand.vmem [shape: f32[3,1], index: 3, kind: input, shape index: {}]   ;;  %s3314_s4 = inlined_call_operand.vmem [shape: bf16[4,3,2048], index: 4, kind: output, shape index: {}]  }
   0x1   :  { %s2548_s17 = smov 0   ;;  %s2550_s18 = smov 0  }
   0x2   :  { %s2552_s19 = smov 0   ;;  %s2554_s20 = smov 0  }
   0x3   :  { %s2556_s21 = smov 0   ;;  %s2558_s22 = smov 0  }
   0x4   :  { %s2560_s23 = smov 0  }
   0x5 LB: > { %s2146_s24 = sadd.s32 4294967295, %s2512_s23   ;;  %s23_s25 = sadd.s32 1, %s2504_s21  ;;  %s2512_s23 = sphi %s2560_s23, %s14_s23   ;;  %s2508_s22 = sphi %s2558_s22, %s3332_s22   ;;  %s2504_s21 = sphi %s2556_s21, %s3331_s21   ;;  %s2500_s20 = sphi %s2554_s20, %s3330_s20   ;;  %s2496_s19 = sphi %s2552_s19, %s3329_s19   ;;  %s2492_s18 = sphi %s2550_s18, %s3328_s18   ;;  %s2488_s17 = sphi %s2548_s17, %s3327_s17   ;;  %s2484_s16 = sphi %s2546_s16, %s3326_s16   ;;  %s2480_s15 = sphi %s2544_s15, %s3325_s15  }
   0x6   : > { %p24_p0 = scmp.ge.s32.totalorder %s23_s25, 2  ;;  %s26_s26 = sadd.s32 1, %s2508_s22 }
   0x7   : > { %s51_s27 = ssub.s32 1, %s2508_s22  ;;  %s60_s28 = sadd.s32 1, %s2492_s18 }
   0x8   : > { %s3334_s25 = smov (%p24_p0, %s23_s25), 0  ;;  %s3336_s26 = smov (!%p24_p0, %s26_s26), %s2508_s22 }
   0x9   : > { %s52_s29 = smul.u32 %s2504_s21, %s51_s27  ;;  %p67_p1 = scmp.ne.s32.totalorder %s2492_s18, %s2488_s17 }
   0xa   : > { %p28_p2 = scmp.ge.s32.totalorder %s3336_s26, 2  ;;  %p68_p3 = scmp.eq.s32.totalorder %s2512_s23, 0 }
   0xb   : > { %s53_s30 = sadd.s32 %s2508_s22, %s52_s29  ;;  %s125_s5 = smul.u32 %s2504_s21, %s2508_s22 }
   0xc   : > { %s3338_s26 = smov (%p28_p2, %s3336_s26), 0  ;;  %p2606_p4 = por %p68_p3, %p67_p1 }
   0xd   : > { %s130_s7 = sadd.s32 1, %s2484_s16  ;;  %s54_s8 = ssub.s32 1, %s3338_s26 }
   0xe   : > { %s126_s9 = smul.u32 %s3338_s26, %s3334_s25  ;;  %p140_p5 = scmp.ne.s32.totalorder %s2484_s16, %s2480_s15 }
   0xf   : > { %s55_s10 = smul.u32 %s54_s8, %s3334_s25  ;;  %p141_p6 = scmp.eq.s32.totalorder %s2146_s24, 3 }
  0x10   : > { %s127_s11 = ssub.s32 %s125_s5, %s126_s9  ;;  %p2149_p10 = scmp.ge.s32.totalorder %s2512_s23, 4 }
  0x11   : > { %s56_s12 = sadd.s32 %s55_s10, %s3338_s26  ;;  %p128_p7 = scmp.eq.s32.totalorder %s127_s11, 0 }
  0x12   : > { %s57_s13 = ssub.s32 %s53_s30, %s56_s12  ;;  %p2618_p8 = por %p141_p6, %p140_p5 }
  0x13   : > { %p58_p9 = scmp.eq.s32.totalorder %s57_s13, 0  ;;  %172 = sbr.rel (%p2149_p10) target bundleno = 49 (0x31), region = 28 }
  0x14   : > { %s2623_s27 = scalar_select %p128_p7, %s2484_s16, %s130_s7  }
  0x15   : > { %s2626_s29 = scalar_select %p58_p9, %s2492_s18, %s60_s28  }
  0x1a   : > { %175 = sbr.rel (!%p2606_p4) target bundleno = 49 (0x31), region = 32  ;;  %s177_s24 = sand.u32 (%p2606_p4), 1, %s2492_s18  }
  0x1b   : > { %s2286_s5 = sshll.u32 (%p2606_p4), %s53_s30, 5  ;;  %s2288_s8 = smul.u32 (%p2606_p4), 288, %s177_s24 }
  0x1c   : > { %s2635_s11 = scalar_lea.vmem (%p2606_p4), %s3311_s1, %s2286_s5 }
  0x1d   : > { %v198_v0 = vld [vmem:[%s2635_s11] sm:$0xff] (%p2606_p4)  ;;  %v200_v1 = vld [vmem:[%s2635_s11 + $0x8] sm:$0xff] (%p2606_p4)  ;;  %v202_v2 = vld [vmem:[%s2635_s11 + $0x10] sm:$0xff] (%p2606_p4)  ;;  %s2643_s28 = scalar_lea.vmem (%p2606_p4), [#allocation7], %s2288_s8 }
  0x1e   : > { %v204_v3 = vld [vmem:[%s2635_s11 + $0x18] sm:$0xff] (%p2606_p4)  ;;  %v206_v4 = vld [vmem:[%s2635_s11 + $0x40] sm:$0xff] (%p2606_p4)  ;;  %v208_v5 = vld [vmem:[%s2635_s11 + $0x48] sm:$0xff] (%p2606_p4)  ;;  %199 = vst [vmem:[%s2643_s28] sm:$0xff] (%p2606_p4), %v198_v0 }
  0x1f   : > { %201 = vst [vmem:[%s2643_s28 + $0x8] sm:$0xff] (%p2606_p4), %v200_v1  ;;  %203 = vst [vmem:[%s2643_s28 + $0x10] sm:$0xff] (%p2606_p4), %v202_v2  ;;  %v210_v6 = vld [vmem:[%s2635_s11 + $0x50] sm:$0xff] (%p2606_p4)  ;;  %v212_v7 = vld [vmem:[%s2635_s11 + $0x58] sm:$0xff] (%p2606_p4) }
  0x20   : > { %205 = vst [vmem:[%s2643_s28 + $0x18] sm:$0xff] (%p2606_p4), %v204_v3  ;;  %207 = vst [vmem:[%s2643_s28 + $0x20] sm:$0xff] (%p2606_p4), %v206_v4  ;;  %v214_v8 = vld [vmem:[%s2635_s11 + $0x80] sm:$0xff] (%p2606_p4)  ;;  %v216_v9 = vld [vmem:[%s2635_s11 + $0x88] sm:$0xff] (%p2606_p4) }
  0x21   : > { %209 = vst [vmem:[%s2643_s28 + $0x28] sm:$0xff] %v208_v5  ;;  %211 = vst [vmem:[%s2643_s28 + $0x30] sm:$0xff] %v210_v6  ;;  %v218_v10 = vld [vmem:[%s2635_s11 + $0x90] sm:$0xff]  ;;  %v220_v11 = vld [vmem:[%s2635_s11 + $0x98] sm:$0xff] }
  0x22   : > { %213 = vst [vmem:[%s2643_s28 + $0x38] sm:$0xff] %v212_v7  ;;  %215 = vst [vmem:[%s2643_s28 + $0x40] sm:$0xff] %v214_v8  ;;  %v222_v12 = vld [vmem:[%s2635_s11 + $0xc0] sm:$0xff]  ;;  %v224_v13 = vld [vmem:[%s2635_s11 + $0xc8] sm:$0xff] }
  0x23   : > { %217 = vst [vmem:[%s2643_s28 + $0x48] sm:$0xff] %v216_v9  ;;  %219 = vst [vmem:[%s2643_s28 + $0x50] sm:$0xff] %v218_v10  ;;  %v226_v14 = vld [vmem:[%s2635_s11 + $0xd0] sm:$0xff]  ;;  %v228_v15 = vld [vmem:[%s2635_s11 + $0xd8] sm:$0xff] }
  0x24   : > { %221 = vst [vmem:[%s2643_s28 + $0x58] sm:$0xff] %v220_v11  ;;  %223 = vst [vmem:[%s2643_s28 + $0x60] sm:$0xff] %v222_v12  ;;  %v230_v16 = vld [vmem:[%s2635_s11 + $0x100] sm:$0xff]  ;;  %v232_v17 = vld [vmem:[%s2635_s11 + $0x108] sm:$0xff] }
  0x25   : > { %225 = vst [vmem:[%s2643_s28 + $0x68] sm:$0xff] %v224_v13  ;;  %227 = vst [vmem:[%s2643_s28 + $0x70] sm:$0xff] %v226_v14  ;;  %v234_v18 = vld [vmem:[%s2635_s11 + $0x110] sm:$0xff]  ;;  %v236_v19 = vld [vmem:[%s2635_s11 + $0x118] sm:$0xff] }
  0x26   : > { %229 = vst [vmem:[%s2643_s28 + $0x78] sm:$0xff] %v228_v15  ;;  %231 = vst [vmem:[%s2643_s28 + $0x80] sm:$0xff] %v230_v16  ;;  %v238_v20 = vld [vmem:[%s2635_s11 + $0x140] sm:$0xff]  ;;  %v240_v21 = vld [vmem:[%s2635_s11 + $0x148] sm:$0xff] }
  0x27   : > { %233 = vst [vmem:[%s2643_s28 + $0x88] sm:$0xff] %v232_v17  ;;  %235 = vst [vmem:[%s2643_s28 + $0x90] sm:$0xff] %v234_v18  ;;  %v242_v22 = vld [vmem:[%s2635_s11 + $0x150] sm:$0xff]  ;;  %v244_v23 = vld [vmem:[%s2635_s11 + $0x158] sm:$0xff] }
  0x28   : > { %237 = vst [vmem:[%s2643_s28 + $0x98] sm:$0xff] %v236_v19  ;;  %239 = vst [vmem:[%s2643_s28 + $0xa0] sm:$0xff] %v238_v20  ;;  %v246_v24 = vld [vmem:[%s2635_s11 + $0x180] sm:$0xff]  ;;  %v248_v25 = vld [vmem:[%s2635_s11 + $0x188] sm:$0xff] }
  0x29   : > { %241 = vst [vmem:[%s2643_s28 + $0xa8] sm:$0xff] %v240_v21  ;;  %243 = vst [vmem:[%s2643_s28 + $0xb0] sm:$0xff] %v242_v22  ;;  %v250_v26 = vld [vmem:[%s2635_s11 + $0x190] sm:$0xff]  ;;  %v252_v27 = vld [vmem:[%s2635_s11 + $0x198] sm:$0xff] }
  0x2a   : > { %245 = vst [vmem:[%s2643_s28 + $0xb8] sm:$0xff] %v244_v23  ;;  %247 = vst [vmem:[%s2643_s28 + $0xc0] sm:$0xff] %v246_v24  ;;  %v254_v28 = vld [vmem:[%s2635_s11 + $0x1c0] sm:$0xff]  ;;  %v256_v29 = vld [vmem:[%s2635_s11 + $0x1c8] sm:$0xff] }
  0x2b   : > { %249 = vst [vmem:[%s2643_s28 + $0xc8] sm:$0xff] %v248_v25  ;;  %251 = vst [vmem:[%s2643_s28 + $0xd0] sm:$0xff] %v250_v26  ;;  %v258_v30 = vld [vmem:[%s2635_s11 + $0x1d0] sm:$0xff]  ;;  %v260_v31 = vld [vmem:[%s2635_s11 + $0x1d8] sm:$0xff] }
  0x2c   : > { %253 = vst [vmem:[%s2643_s28 + $0xd8] sm:$0xff] %v252_v27  ;;  %255 = vst [vmem:[%s2643_s28 + $0xe0] sm:$0xff] %v254_v28  ;;  %v262_v32 = vld [vmem:[%s2635_s11 + $0x200] sm:$0xff]  ;;  %v264_v33 = vld [vmem:[%s2635_s11 + $0x208] sm:$0xff] }
  0x2d   : > { %257 = vst [vmem:[%s2643_s28 + $0xe8] sm:$0xff] %v256_v29  ;;  %259 = vst [vmem:[%s2643_s28 + $0xf0] sm:$0xff] %v258_v30  ;;  %v266_v34 = vld [vmem:[%s2635_s11 + $0x210] sm:$0xff]  ;;  %v268_v35 = vld [vmem:[%s2635_s11 + $0x218] sm:$0xff] }
  0x2e   : > { %261 = vst [vmem:[%s2643_s28 + $0xf8] sm:$0xff] %v260_v31  ;;  %263 = vst [vmem:[%s2643_s28 + $0x100] sm:$0xff] %v262_v32 }
  0x2f   : > { %265 = vst [vmem:[%s2643_s28 + $0x108] sm:$0xff] %v264_v33  ;;  %267 = vst [vmem:[%s2643_s28 + $0x110] sm:$0xff] %v266_v34 }
  0x30   : > { %269 = vst [vmem:[%s2643_s28 + $0x118] sm:$0xff] %v268_v35 }
  0x31 PF: > { %p2152_p11 = scmp.ge.s32.totalorder %s2512_s23, 1  ;;  %p274_p12 = scmp.lt.s32.totalorder %s2512_s23, 5 }
  0x33   : > { %p275_p13 = pnand %p2152_p11, %p274_p12 }
  0x34   : > { %s281_s30 = sand.u32 (!%p275_p13), 1, %s2488_s17   ;;  %s302_s6 = sand.u32 (!%p275_p13), 1, %s2480_s15  }
  0x35   : > { %278 = sbr.rel (%p275_p13) target bundleno = 833 (0x341), region = 55  ;;  %s2153_s12 = sshll.u32 (!%p275_p13), %s302_s6, 6 }
  0x36   : > { %s2289_s7 = smul.u32 (!%p275_p13), 288, %s281_s30  ;;  %s2154_s13 = sshll.u32 (!%p275_p13), %s2496_s19, 10 }
  0x37   : > { %p313_p0 = scmp.eq.s32.totalorder (!%p275_p13), %s2500_s20, 0  ;;  %p314_p1 = scmp.eq.s32.totalorder (!%p275_p13), %s2496_s19, 0 }
  0x38   : > { %s2720_s24 = scalar_lea.vmem (!%p275_p13), [#allocation7], %s2289_s7  ;;  %s2722_s5 = scalar_lea.vmem (!%p275_p13), [#allocation8], %s2153_s12 }
  0x39   : > { %p315_p2 = pnand (!%p275_p13), %p314_p1, %p313_p0 }
  0x3c   : > { %318 = sbr.rel (%p315_p2) target bundleno = 67 (0x43), region = 63  ;;  %vm319_vm0 = vcmask (!%p315_p2), 2048   ;;  %v2514_v36 = vmov (!%p315_p2), 0.0  }
  0x3d   : > { %320 = vst.msk [vmem:[#allocation3] sm:$0x7] (!%p315_p2), %vm319_vm0, %v2514_v36  ;;  %321 = vst.msk [vmem:[#allocation4] sm:$0x7] (!%p315_p2), %vm319_vm0, %v2514_v36 }
  0x43 PF: > { %p2155_p3 = scmp.ne.s32.totalorder %s2500_s20, 0 }
  0x44   : > { %v325_v37 = vld [vmem:[%s2720_s24] sm:$0xff] (!%p2155_p3)  ;;  %v326_v39 = vld [vmem:[%s2720_s24 + $0x8] sm:$0xff] (!%p2155_p3)  ;;  %v2515_v45 = vmov (!%p2155_p3), 0   ;;  %vm546_vm1 = vcmask (!%p2155_p3), 1043456   ;;  %v327_v12 = vld [vmem:[%s2720_s24 + $0x10] sm:$0xff] (!%p2155_p3)  ;;  %vm542_vm2 = vcmask (!%p2155_p3), 588800  }
  0x45   : > { %324 = sbr.rel (%p2155_p3) target bundleno = 600 (0x258), region = 67  ;;  %v329_v38 = vld [vmem:[%s2720_s24 + $0x20] sm:$0xff] (!%p2155_p3)  ;;  %v330_v42 = vld [vmem:[%s2720_s24 + $0x28] sm:$0xff] (!%p2155_p3)  ;;  %603 = vmatprep.mubr.bf16.mxu0 (!%p2155_p3), %v2515_v45  ;;  %644 = vmatprep.mubr.bf16.mxu1 (!%p2155_p3), %v2515_v45  ;;  %v331_v13 = vld [vmem:[%s2720_s24 + $0x30] sm:$0xff] (!%p2155_p3)  ;;  %s801_s6 = sshra.s32 (!%p2155_p3), %s2154_s13, 7  ;;  %vm736_vm3 = vcmask (!%p2155_p3), 1042432  }
  0x46   : > { %v2728_v40 = vcombine.high (!%p2155_p3), %v325_v37, %v329_v38  ;;  %v2730_v41 = vcombine.low (!%p2155_p3), %v325_v37, %v329_v38  ;;  %v333_v43 = vld [vmem:[%s2720_s24 + $0x40] sm:$0xff] (!%p2155_p3)  ;;  %v2737_v46 = vcombine.high (!%p2155_p3), %v326_v39, %v330_v42  ;;  %v2739_v47 = vcombine.low (!%p2155_p3), %v326_v39, %v330_v42  ;;  %v334_v49 = vld [vmem:[%s2720_s24 + $0x48] sm:$0xff] (!%p2155_p3)  ;;  %v328_v14 = vld [vmem:[%s2720_s24 + $0x18] sm:$0xff] (!%p2155_p3)  ;;  %s2204_s7 = sshll.u32 (!%p2155_p3), %s801_s6, 2 }
  0x47   : > { %v337_v44 = vld [vmem:[%s2720_s24 + $0x60] sm:$0xff] (!%p2155_p3)  ;;  %v338_v50 = vld [vmem:[%s2720_s24 + $0x68] sm:$0xff] (!%p2155_p3)  ;;  %v332_v15 = vld [vmem:[%s2720_s24 + $0x38] sm:$0xff] (!%p2155_p3)  ;;  %v2806_v17 = vcombine.high (!%p2155_p3), %v327_v12, %v331_v13  ;;  %v2823_v25 = vcombine.low (!%p2155_p3), %v327_v12, %v331_v13  ;;  %s3072_s12 = scalar_lea.vmem (!%p2155_p3), [#allocation2], %s2204_s7  ;;  %vm755_vm4 = vcmask (!%p2155_p3), 2048  }
  0x48   : > { %v2741_v48 = vcombine.high (!%p2155_p3), %v333_v43, %v337_v44  ;;  %v341_v51 = vld [vmem:[%s2720_s24 + $0x80] sm:$0xff] (!%p2155_p3)  ;;  %571 = vmatprep.subr.bf16.mxu0 (!%p2155_p3), %v2728_v40  ;;  %v2747_v52 = vcombine.high (!%p2155_p3), %v334_v49, %v338_v50  ;;  %v342_v54 = vld [vmem:[%s2720_s24 + $0x88] sm:$0xff] (!%p2155_p3)  ;;  %612 = vmatprep.subr.bf16.mxu1 (!%p2155_p3), %v2737_v46  ;;  %v2754_v56 = vcombine.low (!%p2155_p3), %v333_v43, %v337_v44  ;;  %v335_v20 = vld [vmem:[%s2720_s24 + $0x50] sm:$0xff] (!%p2155_p3) }
  0x49   : > { %v345_v53 = vld [vmem:[%s2720_s24 + $0xa0] sm:$0xff] (!%p2155_p3)  ;;  %v346_v55 = vld [vmem:[%s2720_s24 + $0xa8] sm:$0xff] (!%p2155_p3)  ;;  %572 = vmatpush1.bf16.msra.mxu0 (!%p2155_p3), %v2730_v41  ;;  %613 = vmatpush1.bf16.msra.mxu1 (!%p2155_p3), %v2739_v47  ;;  %v2758_v57 = vcombine.low (!%p2155_p3), %v334_v49, %v338_v50  ;;  %v2813_v19 = vcombine.high (!%p2155_p3), %v328_v14, %v332_v15  ;;  %v339_v21 = vld [vmem:[%s2720_s24 + $0x70] sm:$0xff] (!%p2155_p3)  ;;  %v2827_v26 = vcombine.low (!%p2155_p3), %v328_v14, %v332_v15 }
  0x4a   : > { %573 = vmatprep.subr.bf16.mxu0 (!%p2155_p3), %v2741_v48  ;;  %v2760_v58 = vcombine.high (!%p2155_p3), %v341_v51, %v345_v53  ;;  %614 = vmatprep.subr.bf16.mxu1 (!%p2155_p3), %v2747_v52  ;;  %v2763_v59 = vcombine.high (!%p2155_p3), %v342_v54, %v346_v55  ;;  %v349_v60 = vld [vmem:[%s2720_s24 + $0xc0] sm:$0xff] (!%p2155_p3)  ;;  %v350_v62 = vld [vmem:[%s2720_s24 + $0xc8] sm:$0xff] (!%p2155_p3)  ;;  %v2770_v0 = vcombine.low (!%p2155_p3), %v341_v51, %v345_v53  ;;  %v336_v22 = vld [vmem:[%s2720_s24 + $0x58] sm:$0xff] (!%p2155_p3) }
  0x4b   : > { %v353_v61 = vld [vmem:[%s2720_s24 + $0xe0] sm:$0xff] (!%p2155_p3)  ;;  %v354_v63 = vld [vmem:[%s2720_s24 + $0xe8] sm:$0xff] (!%p2155_p3)  ;;  %v2774_v1 = vcombine.low (!%p2155_p3), %v342_v54, %v346_v55  ;;  %v340_v23 = vld [vmem:[%s2720_s24 + $0x78] sm:$0xff] (!%p2155_p3)  ;;  %v2829_v27 = vcombine.high (!%p2155_p3), %v335_v20, %v339_v21  ;;  %v2841_v33 = vcombine.low (!%p2155_p3), %v335_v20, %v339_v21 }
  0x4c   : > { %v2776_v2 = vcombine.high %v349_v60, %v353_v61  ;;  %v2779_v3 = vcombine.high %v350_v62, %v354_v63  ;;  %v357_v4 = vld [vmem:[%s2720_s24 + $0x100] sm:$0xff]  ;;  %v358_v5 = vld [vmem:[%s2720_s24 + $0x108] sm:$0xff]  ;;  %v2784_v6 = vcombine.low %v349_v60, %v353_v61  ;;  %v2788_v7 = vcombine.low %v350_v62, %v354_v63  ;;  %v361_v24 = vld [vmem:[%s3310_s0] sm:$0x3] }
  0x4d   : > { %574 = vmatpush1.bf16.msra.mxu0 %v2754_v56  ;;  %615 = vmatpush1.bf16.msra.mxu1 %v2758_v57  ;;  %v2790_v8 = vcombine.high %v357_v4, %v357_v4  ;;  %v2188_v9 = vcombine.low %v357_v4, %v357_v4  ;;  %v2793_v10 = vcombine.high %v358_v5, %v358_v5  ;;  %v343_v29 = vld [vmem:[%s2720_s24 + $0x90] sm:$0xff]  ;;  %v344_v31 = vld [vmem:[%s2720_s24 + $0x98] sm:$0xff] }
  0x4e   : > { %575 = vmatprep.subr.bf16.mxu0 %v2760_v58  ;;  %616 = vmatprep.subr.bf16.mxu1 %v2763_v59  ;;  %v2190_v11 = vcombine.low %v358_v5, %v358_v5  ;;  %v2832_v28 = vcombine.high %v336_v22, %v340_v23  ;;  %v347_v30 = vld [vmem:[%s2720_s24 + $0xb0] sm:$0xff]  ;;  %v348_v32 = vld [vmem:[%s2720_s24 + $0xb8] sm:$0xff]  ;;  %v2845_v34 = vcombine.low %v336_v22, %v340_v23 }
  0x4f   : > { %v2804_v16 = vsel %vm546_vm1, %v2188_v9, 0  ;;  %v2847_v35 = vcombine.high %v343_v29, %v347_v30  ;;  %v2850_v36 = vcombine.high %v344_v31, %v348_v32  ;;  %v351_v37 = vld [vmem:[%s2720_s24 + $0xd0] sm:$0xff]  ;;  %v352_v39 = vld [vmem:[%s2720_s24 + $0xd8] sm:$0xff]  ;;  %v2859_v43 = vcombine.low %v343_v29, %v347_v30 }
  0x50   : > { %v2811_v18 = vsel %vm546_vm1, %v2190_v11, 0  ;;  %v355_v38 = vld [vmem:[%s2720_s24 + $0xf0] sm:$0xff]  ;;  %v356_v42 = vld [vmem:[%s2720_s24 + $0xf8] sm:$0xff]  ;;  %v2863_v44 = vcombine.low %v344_v31, %v348_v32 }
  0x51   : > { %576 = vmatpush1.bf16.msra.mxu0 %v2770_v0  ;;  %617 = vmatpush1.bf16.msra.mxu1 %v2774_v1  ;;  %v2865_v49 = vcombine.high %v351_v37, %v355_v38  ;;  %v2868_v50 = vcombine.high %v352_v39, %v356_v42  ;;  %v359_v51 = vld [vmem:[%s2720_s24 + $0x110] sm:$0xff]  ;;  %v360_v53 = vld [vmem:[%s2720_s24 + $0x118] sm:$0xff]  ;;  %v2873_v54 = vcombine.low %v351_v37, %v355_v38 }
  0x52   : > { %577 = vmatprep.subr.bf16.mxu0 %v2776_v2  ;;  %618 = vmatprep.subr.bf16.mxu1 %v2779_v3  ;;  %v2877_v55 = vcombine.low %v352_v39, %v356_v42  ;;  %v2879_v60 = vcombine.high %v359_v51, %v359_v51  ;;  %v2192_v61 = vcombine.low %v359_v51, %v359_v51  ;;  %v2205_v9 = vld [vmem:[%s3310_s0 + $0x2] sm:$0x3]  ;;  %v2219_v11 = vld [vmem:[%s3310_s0 + $0x4] sm:$0x3] }
  0x53   : > { %v2882_v62 = vcombine.high %v360_v53, %v360_v53  ;;  %v2194_v63 = vcombine.low %v360_v53, %v360_v53 }
  0x54   : > { %v2889_v4 = vsel %vm546_vm1, %v2192_v61, 0 }
  0x55   : > { %578 = vmatpush1.bf16.msra.mxu0 %v2784_v6  ;;  %619 = vmatpush1.bf16.msra.mxu1 %v2788_v7  ;;  %v2894_v5 = vsel %vm546_vm1, %v2194_v63, 0 }
  0x56   : > { %2196 = vmatprep.subr.msk.bf16.mxu0 %vm546_vm1, %v2790_v8  ;;  %2198 = vmatprep.subr.msk.bf16.mxu1 %vm546_vm1, %v2793_v10 }
  0x59   : > { %580 = vmatpush1.bf16.msra.mxu0 %v2804_v16  ;;  %621 = vmatpush1.bf16.msra.mxu1 %v2811_v18 }
  0x5a   : > { %653 = vmatprep.subr.bf16.mxu0 %v2806_v17  ;;  %694 = vmatprep.subr.bf16.mxu1 %v2813_v19 }
  0x5c   : > { %2197 = vmatmul.mubr.msk.bf16.vlgmr.msra.gmra.mrb[0].mxu0 %vm542_vm2, %v361_v24  ;;  %2199 = vmatmul.mubr.msk.bf16.vlgmr.msra.gmra.mrb[0].mxu1 %vm542_vm2, %v361_v24 }
  0x5d   : > { %654 = vmatpush1.bf16.msra.mxu0 %v2823_v25  ;;  %695 = vmatpush1.bf16.msra.mxu1 %v2827_v26 }
  0x5e   : > { %655 = vmatprep.subr.bf16.mxu0 %v2829_v27  ;;  %696 = vmatprep.subr.bf16.mxu1 %v2832_v28 }
  0x5f   : > { %685 = vmatprep.mubr.bf16.mxu0 %v2515_v45  ;;  %726 = vmatprep.mubr.bf16.mxu1 %v2515_v45 }
  0x61   : > { %656 = vmatpush1.bf16.msra.mxu0 %v2841_v33  ;;  %697 = vmatpush1.bf16.msra.mxu1 %v2845_v34 }
  0x62   : > { %657 = vmatprep.subr.bf16.mxu0 %v2847_v35  ;;  %698 = vmatprep.subr.bf16.mxu1 %v2850_v36 }
  0x65   : > { %658 = vmatpush1.bf16.msra.mxu0 %v2859_v43  ;;  %699 = vmatpush1.bf16.msra.mxu1 %v2863_v44 }
  0x66   : > { %659 = vmatprep.subr.bf16.mxu0 %v2865_v49  ;;  %700 = vmatprep.subr.bf16.mxu1 %v2868_v50 }
  0x69   : > { %660 = vmatpush1.bf16.msra.mxu0 %v2873_v54  ;;  %701 = vmatpush1.bf16.msra.mxu1 %v2877_v55 }
  0x6a   : > { %2200 = vmatprep.subr.msk.bf16.mxu0 %vm546_vm1, %v2879_v60  ;;  %2202 = vmatprep.subr.msk.bf16.mxu1 %vm546_vm1, %v2882_v62 }
  0x6d   : > { %662 = vmatpush1.bf16.msra.mxu0 %v2889_v4  ;;  %703 = vmatpush1.bf16.msra.mxu1 %v2894_v5 }
  0x6e   : > { %814 = vmatprep.subr.bf16.mxu0 %v2728_v40  ;;  %855 = vmatprep.subr.bf16.mxu1 %v2737_v46 }
  0x70   : > { %2201 = vmatmul.mubr.msk.bf16.vlgmr.msra.gmra.mrb[4].mxu0 %vm542_vm2, %v361_v24  ;;  %2203 = vmatmul.mubr.msk.bf16.vlgmr.msra.gmra.mrb[4].mxu1 %vm542_vm2, %v361_v24 }
  0x71   : > { %815 = vmatpush1.bf16.msra.mxu0 %v2730_v41  ;;  %856 = vmatpush1.bf16.msra.mxu1 %v2739_v47 }
  0x72   : > { %816 = vmatprep.subr.bf16.mxu0 %v2741_v48  ;;  %857 = vmatprep.subr.bf16.mxu1 %v2747_v52 }
  0x73   : > { %846 = vmatprep.mubr.bf16.mxu0 %v2515_v45  ;;  %887 = vmatprep.mubr.bf16.mxu1 %v2515_v45 }
  0x75   : > { %817 = vmatpush1.bf16.msra.mxu0 %v2754_v56  ;;  %858 = vmatpush1.bf16.msra.mxu1 %v2758_v57 }
  0x76   : > { %818 = vmatprep.subr.bf16.mxu0 %v2760_v58  ;;  %859 = vmatprep.subr.bf16.mxu1 %v2763_v59 }
  0x79   : > { %819 = vmatpush1.bf16.msra.mxu0 %v2770_v0  ;;  %860 = vmatpush1.bf16.msra.mxu1 %v2774_v1 }
  0x7a   : > { %820 = vmatprep.subr.bf16.mxu0 %v2776_v2  ;;  %861 = vmatprep.subr.bf16.mxu1 %v2779_v3 }
  0x7d   : > { %821 = vmatpush1.bf16.msra.mxu0 %v2784_v6  ;;  %862 = vmatpush1.bf16.msra.mxu1 %v2788_v7 }
  0x7e   : > { %2206 = vmatprep.subr.msk.bf16.mxu0 %vm546_vm1, %v2790_v8  ;;  %2208 = vmatprep.subr.msk.bf16.mxu1 %vm546_vm1, %v2793_v10 }
  0x81   : > { %823 = vmatpush1.bf16.msra.mxu0 %v2804_v16  ;;  %864 = vmatpush1.bf16.msra.mxu1 %v2811_v18 }
  0x82   : > { %896 = vmatprep.subr.bf16.mxu0 %v2806_v17  ;;  %937 = vmatprep.subr.bf16.mxu1 %v2813_v19 }
  0x84   : > { %2207 = vmatmul.mubr.msk.bf16.vlgmr.msra.gmra.mrb[8].mxu0 %vm542_vm2, %v2205_v9  ;;  %2209 = vmatmul.mubr.msk.bf16.vlgmr.msra.gmra.mrb[8].mxu1 %vm542_vm2, %v2205_v9 }
  0x85   : > { %897 = vmatpush1.bf16.msra.mxu0 %v2823_v25  ;;  %938 = vmatpush1.bf16.msra.mxu1 %v2827_v26 }
  0x86   : > { %898 = vmatprep.subr.bf16.mxu0 %v2829_v27  ;;  %939 = vmatprep.subr.bf16.mxu1 %v2832_v28 }
  0x87   : > { %928 = vmatprep.mubr.bf16.mxu0 %v2515_v45  ;;  %969 = vmatprep.mubr.bf16.mxu1 %v2515_v45 }
  0x89   : > { %899 = vmatpush1.bf16.msra.mxu0 %v2841_v33  ;;  %940 = vmatpush1.bf16.msra.mxu1 %v2845_v34 }
  0x8a   : > { %900 = vmatprep.subr.bf16.mxu0 %v2847_v35  ;;  %941 = vmatprep.subr.bf16.mxu1 %v2850_v36 }
  0x8d   : > { %901 = vmatpush1.bf16.msra.mxu0 %v2859_v43  ;;  %942 = vmatpush1.bf16.msra.mxu1 %v2863_v44 }
  0x8e   : > { %902 = vmatprep.subr.bf16.mxu0 %v2865_v49  ;;  %943 = vmatprep.subr.bf16.mxu1 %v2868_v50 }
  0x91   : > { %903 = vmatpush1.bf16.msra.mxu0 %v2873_v54  ;;  %944 = vmatpush1.bf16.msra.mxu1 %v2877_v55 }
  0x92   : > { %2210 = vmatprep.subr.msk.bf16.mxu0 %vm546_vm1, %v2879_v60  ;;  %2212 = vmatprep.subr.msk.bf16.mxu1 %vm546_vm1, %v2882_v62 }
  0x95   : > { %905 = vmatpush1.bf16.msra.mxu0 %v2889_v4  ;;  %946 = vmatpush1.bf16.msra.mxu1 %v2894_v5 }
  0x96   : > { %1054 = vmatprep.subr.bf16.mxu0 %v2728_v40  ;;  %1095 = vmatprep.subr.bf16.mxu1 %v2737_v46 }
  0x98   : > { %2211 = vmatmul.mubr.msk.bf16.vlgmr.msra.gmra.mrb[12].mxu0 %vm542_vm2, %v2205_v9  ;;  %2213 = vmatmul.mubr.msk.bf16.vlgmr.msra.gmra.mrb[12].mxu1 %vm542_vm2, %v2205_v9 }
  0x99   : > { %1055 = vmatpush1.bf16.msra.mxu0 %v2730_v41  ;;  %1096 = vmatpush1.bf16.msra.mxu1 %v2739_v47 }
  0x9a   : > { %1056 = vmatprep.subr.bf16.mxu0 %v2741_v48  ;;  %1097 = vmatprep.subr.bf16.mxu1 %v2747_v52 }
  0x9b   : > { %1086 = vmatprep.mubr.bf16.mxu0 %v2515_v45  ;;  %1127 = vmatprep.mubr.bf16.mxu1 %v2515_v45 }
  0x9d   : > { %1057 = vmatpush1.bf16.msra.mxu0 %v2754_v56  ;;  %1098 = vmatpush1.bf16.msra.mxu1 %v2758_v57 }
  0x9e   : > { %1058 = vmatprep.subr.bf16.mxu0 %v2760_v58  ;;  %1099 = vmatprep.subr.bf16.mxu1 %v2763_v59 }
  0xa1   : > { %1059 = vmatpush1.bf16.msra.mxu0 %v2770_v0  ;;  %1100 = vmatpush1.bf16.msra.mxu1 %v2774_v1 }
  0xa2   : > { %1060 = vmatprep.subr.bf16.mxu0 %v2776_v2  ;;  %1101 = vmatprep.subr.bf16.mxu1 %v2779_v3 }
  0xa5   : > { %1061 = vmatpush1.bf16.msra.mxu0 %v2784_v6  ;;  %1102 = vmatpush1.bf16.msra.mxu1 %v2788_v7 }
  0xa6   : > { %2220 = vmatprep.subr.msk.bf16.mxu0 %vm546_vm1, %v2790_v8  ;;  %2222 = vmatprep.subr.msk.bf16.mxu1 %vm546_vm1, %v2793_v10 }
  0xa9   : > { %1063 = vmatpush1.bf16.msra.mxu0 %v2804_v16  ;;  %1104 = vmatpush1.bf16.msra.mxu1 %v2811_v18 }
  0xaa   : > { %1136 = vmatprep.subr.bf16.mxu0 %v2806_v17  ;;  %1177 = vmatprep.subr.bf16.mxu1 %v2813_v19 }
  0xac   : > { %2221 = vmatmul.mubr.msk.bf16.vlgmr.msra.gmra.mrb[16].mxu0 %vm542_vm2, %v2219_v11  ;;  %2223 = vmatmul.mubr.msk.bf16.vlgmr.msra.gmra.mrb[16].mxu1 %vm542_vm2, %v2219_v11 }
  0xad   : > { %1137 = vmatpush1.bf16.msra.mxu0 %v2823_v25  ;;  %1178 = vmatpush1.bf16.msra.mxu1 %v2827_v26 }
  0xae   : > { %1138 = vmatprep.subr.bf16.mxu0 %v2829_v27  ;;  %1179 = vmatprep.subr.bf16.mxu1 %v2832_v28 }
  0xaf   : > { %1168 = vmatprep.mubr.bf16.mxu0 %v2515_v45  ;;  %1209 = vmatprep.mubr.bf16.mxu1 %v2515_v45 }
  0xb1   : > { %1139 = vmatpush1.bf16.msra.mxu0 %v2841_v33  ;;  %1180 = vmatpush1.bf16.msra.mxu1 %v2845_v34 }
  0xb2   : > { %1140 = vmatprep.subr.bf16.mxu0 %v2847_v35  ;;  %1181 = vmatprep.subr.bf16.mxu1 %v2850_v36 }
  0xb5   : > { %1141 = vmatpush1.bf16.msra.mxu0 %v2859_v43  ;;  %1182 = vmatpush1.bf16.msra.mxu1 %v2863_v44 }
  0xb6   : > { %1142 = vmatprep.subr.bf16.mxu0 %v2865_v49  ;;  %1183 = vmatprep.subr.bf16.mxu1 %v2868_v50 }
  0xb9   : > { %1143 = vmatpush1.bf16.msra.mxu0 %v2873_v54  ;;  %1184 = vmatpush1.bf16.msra.mxu1 %v2877_v55 }
  0xba   : > { %2224 = vmatprep.subr.msk.bf16.mxu0 %vm546_vm1, %v2879_v60  ;;  %2226 = vmatprep.subr.msk.bf16.mxu1 %vm546_vm1, %v2882_v62 }
  0xbd   : > { %1145 = vmatpush1.bf16.msra.mxu0 %v2889_v4  ;;  %1186 = vmatpush1.bf16.msra.mxu1 %v2894_v5 }
  0xbe   : > { %1294 = vmatprep.subr.bf16.mxu0 %v2728_v40  ;;  %1335 = vmatprep.subr.bf16.mxu1 %v2737_v46  ;;  %v2233_v40 = vld [vmem:[%s3310_s0 + $0x6] sm:$0x3] }
  0xc0   : > { %2225 = vmatmul.mubr.msk.bf16.vlgmr.msra.gmra.mrb[20].mxu0 %vm542_vm2, %v2219_v11  ;;  %2227 = vmatmul.mubr.msk.bf16.vlgmr.msra.gmra.mrb[20].mxu1 %vm542_vm2, %v2219_v11 }
  0xc1   : > { %1295 = vmatpush1.bf16.msra.mxu0 %v2730_v41  ;;  %1336 = vmatpush1.bf16.msra.mxu1 %v2739_v47 }
  0xc2   : > { %1296 = vmatprep.subr.bf16.mxu0 %v2741_v48  ;;  %1337 = vmatprep.subr.bf16.mxu1 %v2747_v52 }
  0xc3   : > { %1326 = vmatprep.mubr.bf16.mxu0 %v2515_v45  ;;  %1367 = vmatprep.mubr.bf16.mxu1 %v2515_v45 }
  0xc5   : > { %1297 = vmatpush1.bf16.msra.mxu0 %v2754_v56  ;;  %1338 = vmatpush1.bf16.msra.mxu1 %v2758_v57 }
  0xc6   : > { %1298 = vmatprep.subr.bf16.mxu0 %v2760_v58  ;;  %1339 = vmatprep.subr.bf16.mxu1 %v2763_v59 }
  0xc9   : > { %1299 = vmatpush1.bf16.msra.mxu0 %v2770_v0  ;;  %1340 = vmatpush1.bf16.msra.mxu1 %v2774_v1 }
  0xca   : > { %1300 = vmatprep.subr.bf16.mxu0 %v2776_v2  ;;  %1341 = vmatprep.subr.bf16.mxu1 %v2779_v3 }
  0xcd   : > { %1301 = vmatpush1.bf16.msra.mxu0 %v2784_v6  ;;  %1342 = vmatpush1.bf16.msra.mxu1 %v2788_v7 }
  0xce   : > { %2234 = vmatprep.subr.msk.bf16.mxu0 %vm546_vm1, %v2790_v8  ;;  %2236 = vmatprep.subr.msk.bf16.mxu1 %vm546_vm1, %v2793_v10 }
  0xd1   : > { %1303 = vmatpush1.bf16.msra.mxu0 %v2804_v16  ;;  %1344 = vmatpush1.bf16.msra.mxu1 %v2811_v18 }
  0xd2   : > { %1376 = vmatprep.subr.bf16.mxu0 %v2806_v17  ;;  %1417 = vmatprep.subr.bf16.mxu1 %v2813_v19 }
  0xd4   : > { %2235 = vmatmul.mubr.msk.bf16.vlgmr.msra.gmra.mrb[24].mxu0 %vm542_vm2, %v2233_v40  ;;  %2237 = vmatmul.mubr.msk.bf16.vlgmr.msra.gmra.mrb[24].mxu1 %vm542_vm2, %v2233_v40 }
  0xd5   : > { %1377 = vmatpush1.bf16.msra.mxu0 %v2823_v25  ;;  %1418 = vmatpush1.bf16.msra.mxu1 %v2827_v26 }
  0xd6   : > { %1378 = vmatprep.subr.bf16.mxu0 %v2829_v27  ;;  %1419 = vmatprep.subr.bf16.mxu1 %v2832_v28 }
  0xd7   : > { %1408 = vmatprep.mubr.bf16.mxu0 %v2515_v45  ;;  %1449 = vmatprep.mubr.bf16.mxu1 %v2515_v45 }
  0xd9   : > { %1379 = vmatpush1.bf16.msra.mxu0 %v2841_v33  ;;  %1420 = vmatpush1.bf16.msra.mxu1 %v2845_v34 }
  0xda   : > { %1380 = vmatprep.subr.bf16.mxu0 %v2847_v35  ;;  %1421 = vmatprep.subr.bf16.mxu1 %v2850_v36 }
  0xdd   : > { %1381 = vmatpush1.bf16.msra.mxu0 %v2859_v43  ;;  %1422 = vmatpush1.bf16.msra.mxu1 %v2863_v44 }
  0xde   : > { %1382 = vmatprep.subr.bf16.mxu0 %v2865_v49  ;;  %1423 = vmatprep.subr.bf16.mxu1 %v2868_v50 }
  0xe1   : > { %1383 = vmatpush1.bf16.msra.mxu0 %v2873_v54  ;;  %1424 = vmatpush1.bf16.msra.mxu1 %v2877_v55 }
  0xe2   : > { %2238 = vmatprep.subr.msk.bf16.mxu0 %vm546_vm1, %v2879_v60  ;;  %2240 = vmatprep.subr.msk.bf16.mxu1 %vm546_vm1, %v2882_v62 }
  0xe5   : > { %1385 = vmatpush1.bf16.msra.mxu0 %v2889_v4  ;;  %1426 = vmatpush1.bf16.msra.mxu1 %v2894_v5 }
  0xe8   : > { %2239 = vmatmul.mubr.msk.bf16.vlgmr.msra.gmra.mrb[28].mxu0 %vm542_vm2, %v2233_v40  ;;  %2241 = vmatmul.mubr.msk.bf16.vlgmr.msra.gmra.mrb[28].mxu1 %vm542_vm2, %v2233_v40 }
 0x12f   : > { %v605_v41 = vpop.f32.mrb[0].mxu0  ;;  %v646_v48 = vpop.f32.mrb[0].mxu1 }
 0x130   : > { %v737_v45 = vsel %vm736_vm3, %v605_v41, 0.0  ;;  %v758_v46 = vmul.f32 %v605_v41, %v605_v41  ;;  %v607_v47 = vpop.f32.mrb[1].mxu0  ;;  %v740_v59 = vsel %vm736_vm3, %v646_v48, 0.0  ;;  %v648_v0 = vpop.f32.mrb[1].mxu1  ;;  %v760_v3 = vmul.f32 %v646_v48, %v646_v48 }
 0x131   : > { %v738_v52 = vsel %vm736_vm3, %v607_v47, 0.0  ;;  %v759_v56 = vmul.f32 %v607_v47, %v607_v47  ;;  %v793_v57 = vcombine.low %v605_v41, %v607_v47  ;;  %v609_v58 = vpop.f32.mrb[2].mxu0  ;;  %v650_v7 = vpop.f32.mrb[2].mxu1  ;;  %v742_v10 = vsel %vm736_vm3, %v648_v0, 0.0 }
 0x132   : > { %v766_v1 = vsel %vm736_vm3, %v758_v46, 0.0  ;;  %v739_v2 = vadd.f32 %v738_v52, %v737_v45  ;;  %v610_v6 = vpop.f32.mrb[3].mxu0  ;;  %v761_v12 = vmul.f32 %v648_v0, %v648_v0  ;;  %v794_v13 = vcombine.low %v646_v48, %v648_v0  ;;  %v651_v14 = vpop.f32.mrb[3].mxu1 }
 0x133   : > { %v767_v8 = vsel %vm736_vm3, %v759_v56, 0.0  ;;  %805 = vst [vmem:[%s3072_s12] sm:$0x77] %v793_v57  ;;  %v769_v17 = vsel %vm736_vm3, %v760_v3, 0.0 }
 0x134   : > { %v768_v15 = vadd.f32 %v767_v8, %v766_v1  ;;  %v741_v16 = vadd.f32 %v740_v59, %v739_v2  ;;  %v771_v18 = vsel %vm736_vm3, %v761_v12, 0.0  ;;  %806 = vst [vmem:[%s3072_s12 + $0x8] sm:$0x77] %v794_v13 }
 0x136   : > { %v770_v19 = vadd.f32 %v769_v17, %v768_v15  ;;  %v743_v20 = vadd.f32 %v742_v10, %v741_v16 }
 0x138   : > { %v772_v21 = vadd.f32 %v771_v18, %v770_v19 }
 0x143   : > { %v687_v22 = vpop.f32.mrb[4].mxu0  ;;  %v728_v26 = vpop.f32.mrb[4].mxu1 }
 0x144   : > { %v744_v23 = vsel %vm736_vm3, %v687_v22, 0.0  ;;  %v762_v24 = vmul.f32 %v687_v22, %v687_v22  ;;  %v689_v25 = vpop.f32.mrb[5].mxu0  ;;  %v730_v32 = vpop.f32.mrb[5].mxu1  ;;  %v764_v34 = vmul.f32 %v728_v26, %v728_v26  ;;  %v748_v49 = vsel %vm736_vm3, %v728_v26, 0.0 }
 0x145   : > { %v745_v27 = vadd.f32 %v744_v23, %v743_v20  ;;  %v746_v28 = vsel %vm736_vm3, %v689_v25, 0.0  ;;  %v763_v29 = vmul.f32 %v689_v25, %v689_v25  ;;  %v795_v30 = vcombine.low %v687_v22, %v689_v25  ;;  %v691_v31 = vpop.f32.mrb[6].mxu0  ;;  %v732_v38 = vpop.f32.mrb[6].mxu1 }
 0x146   : > { %v773_v33 = vsel %vm736_vm3, %v762_v24, 0.0  ;;  %v692_v35 = vpop.f32.mrb[7].mxu0  ;;  %v765_v36 = vmul.f32 %v730_v32, %v730_v32  ;;  %v796_v37 = vcombine.low %v728_v26, %v730_v32  ;;  %v733_v43 = vpop.f32.mrb[7].mxu1  ;;  %v750_v50 = vsel %vm736_vm3, %v730_v32, 0.0 }
 0x147   : > { %v774_v39 = vadd.f32 %v773_v33, %v772_v21  ;;  %v775_v42 = vsel %vm736_vm3, %v763_v29, 0.0  ;;  %807 = vst [vmem:[%s3072_s12 + $0x10] sm:$0x77] %v795_v30  ;;  %v747_v44 = vadd.f32 %v746_v28, %v745_v27  ;;  %v777_v51 = vsel %vm736_vm3, %v764_v34, 0.0 }
 0x148   : > { %808 = vst [vmem:[%s3072_s12 + $0x18] sm:$0x77] %v796_v37  ;;  %v779_v55 = vsel %vm736_vm3, %v765_v36, 0.0 }
 0x149   : > { %v749_v53 = vadd.f32 %v748_v49, %v747_v44  ;;  %v776_v54 = vadd.f32 %v775_v42, %v774_v39 }
 0x14b   : > { %v751_v60 = vadd.f32 %v750_v50, %v749_v53  ;;  %v778_v61 = vadd.f32 %v777_v51, %v776_v54 }
 0x14d   : > { %752 = vadd.xlane.f32.xlu0 %v751_v60  ;;  %v780_v62 = vadd.f32 %v779_v55, %v778_v61 }
 0x151   : > { %781 = vadd.xlane.f32.xlu0 %v780_v62 }
 0x157   : > { %v848_v63 = vpop.f32.mrb[8].mxu0  ;;  %v889_v11 = vpop.f32.mrb[8].mxu1 }
 0x158   : > { %v979_v4 = vsel %vm736_vm3, %v848_v63, 0.0  ;;  %v999_v5 = vmul.f32 %v848_v63, %v848_v63  ;;  %v850_v9 = vpop.f32.mrb[9].mxu0  ;;  %v982_v47 = vsel %vm736_vm3, %v889_v11, 0.0  ;;  %v891_v48 = vpop.f32.mrb[9].mxu1  ;;  %v1001_v57 = vmul.f32 %v889_v11, %v889_v11 }
 0x159   : > { %v980_v40 = vsel %vm736_vm3, %v850_v9, 0.0  ;;  %v1000_v41 = vmul.f32 %v850_v9, %v850_v9  ;;  %v1034_v45 = vcombine.low %v848_v63, %v850_v9  ;;  %v852_v46 = vpop.f32.mrb[10].mxu0  ;;  %v893_v59 = vpop.f32.mrb[10].mxu1  ;;  %v984_v1 = vsel %vm736_vm3, %v891_v48, 0.0 }
 0x15a   : > { %v1007_v52 = vsel %vm736_vm3, %v999_v5, 0.0  ;;  %v981_v56 = vadd.f32 %v980_v40, %v979_v4  ;;  %v853_v58 = vpop.f32.mrb[11].mxu0  ;;  %v1002_v2 = vmul.f32 %v891_v48, %v891_v48  ;;  %v1035_v3 = vcombine.low %v889_v11, %v891_v48  ;;  %v894_v6 = vpop.f32.mrb[11].mxu1 }
 0x15b   : > { %v1008_v0 = vsel %vm736_vm3, %v1000_v41, 0.0  ;;  %2215 = vst [vmem:[%s3072_s12 + $0x40] sm:$0x77] %v1034_v45  ;;  %v1010_v10 = vsel %vm736_vm3, %v1001_v57, 0.0 }
 0x15c   : > { %v1009_v7 = vadd.f32 %v1008_v0, %v1007_v52  ;;  %v983_v8 = vadd.f32 %v982_v47, %v981_v56  ;;  %v1012_v12 = vsel %vm736_vm3, %v1002_v2, 0.0  ;;  %2216 = vst [vmem:[%s3072_s12 + $0x48] sm:$0x77] %v1035_v3 }
 0x15e   : > { %v1011_v13 = vadd.f32 %v1010_v10, %v1009_v7  ;;  %v985_v14 = vadd.f32 %v984_v1, %v983_v8 }
 0x160   : > { %v1013_v15 = vadd.f32 %v1012_v12, %v1011_v13 }
 0x16b   : > { %v930_v16 = vpop.f32.mrb[12].mxu0  ;;  %v971_v20 = vpop.f32.mrb[12].mxu1 }
 0x16c   : > { %v986_v17 = vsel %vm736_vm3, %v930_v16, 0.0  ;;  %v1003_v18 = vmul.f32 %v930_v16, %v930_v16  ;;  %v932_v19 = vpop.f32.mrb[13].mxu0  ;;  %v973_v26 = vpop.f32.mrb[13].mxu1  ;;  %v1005_v28 = vmul.f32 %v971_v20, %v971_v20  ;;  %v990_v37 = vsel %vm736_vm3, %v971_v20, 0.0 }
 0x16d   : > { %v987_v21 = vadd.f32 %v986_v17, %v985_v14  ;;  %v988_v22 = vsel %vm736_vm3, %v932_v19, 0.0  ;;  %v1004_v23 = vmul.f32 %v932_v19, %v932_v19  ;;  %v1036_v24 = vcombine.low %v930_v16, %v932_v19  ;;  %v934_v25 = vpop.f32.mrb[14].mxu0  ;;  %v975_v32 = vpop.f32.mrb[14].mxu1 }
 0x16e   : > { %v1014_v27 = vsel %vm736_vm3, %v1003_v18, 0.0  ;;  %v935_v29 = vpop.f32.mrb[15].mxu0  ;;  %v1006_v30 = vmul.f32 %v973_v26, %v973_v26  ;;  %v1037_v31 = vcombine.low %v971_v20, %v973_v26  ;;  %v976_v35 = vpop.f32.mrb[15].mxu1  ;;  %v992_v38 = vsel %vm736_vm3, %v973_v26, 0.0 }
 0x16f   : > { %v1015_v33 = vadd.f32 %v1014_v27, %v1013_v15  ;;  %v1016_v34 = vsel %vm736_vm3, %v1004_v23, 0.0  ;;  %2217 = vst [vmem:[%s3072_s12 + $0x50] sm:$0x77] %v1036_v24  ;;  %v989_v36 = vadd.f32 %v988_v22, %v987_v21  ;;  %v1018_v39 = vsel %vm736_vm3, %v1005_v28, 0.0 }
 0x170   : > { %2218 = vst [vmem:[%s3072_s12 + $0x58] sm:$0x77] %v1037_v31  ;;  %v1020_v44 = vsel %vm736_vm3, %v1006_v30, 0.0 }
 0x171   : > { %v991_v42 = vadd.f32 %v990_v37, %v989_v36  ;;  %v1017_v43 = vadd.f32 %v1016_v34, %v1015_v33 }
 0x173   : > { %v993_v49 = vadd.f32 %v992_v38, %v991_v42  ;;  %v1019_v50 = vadd.f32 %v1018_v39, %v1017_v43 }
 0x175   : > { %994 = vadd.xlane.f32.xlu1 %v993_v49  ;;  %v1021_v51 = vadd.f32 %v1020_v44, %v1019_v50 }
 0x179   : > { %1022 = vadd.xlane.f32.xlu1 %v1021_v51 }
 0x17f   : > { %v1088_v53 = vpop.f32.mrb[16].mxu0  ;;  %v1129_v61 = vpop.f32.mrb[16].mxu1 }
 0x180   : > { %v1219_v54 = vsel %vm736_vm3, %v1088_v53, 0.0  ;;  %v1239_v55 = vmul.f32 %v1088_v53, %v1088_v53  ;;  %v1090_v60 = vpop.f32.mrb[17].mxu0  ;;  %v1222_v9 = vsel %vm736_vm3, %v1129_v61, 0.0  ;;  %v1131_v11 = vpop.f32.mrb[17].mxu1  ;;  %v1241_v45 = vmul.f32 %v1129_v61, %v1129_v61 }
 0x181   : > { %v1220_v62 = vsel %vm736_vm3, %v1090_v60, 0.0  ;;  %v1240_v63 = vmul.f32 %v1090_v60, %v1090_v60  ;;  %v1274_v4 = vcombine.low %v1088_v53, %v1090_v60  ;;  %v1092_v5 = vpop.f32.mrb[18].mxu0  ;;  %v1133_v47 = vpop.f32.mrb[18].mxu1  ;;  %v1224_v52 = vsel %vm736_vm3, %v1131_v11, 0.0 }
 0x182   : > { %v1247_v40 = vsel %vm736_vm3, %v1239_v55, 0.0  ;;  %v1221_v41 = vadd.f32 %v1220_v62, %v1219_v54  ;;  %v1093_v46 = vpop.f32.mrb[19].mxu0  ;;  %v1242_v56 = vmul.f32 %v1131_v11, %v1131_v11  ;;  %v1275_v57 = vcombine.low %v1129_v61, %v1131_v11  ;;  %v1134_v58 = vpop.f32.mrb[19].mxu1 }
 0x183   : > { %v1248_v48 = vsel %vm736_vm3, %v1240_v63, 0.0  ;;  %2229 = vst [vmem:[%s3072_s12 + $0x80] sm:$0x77] %v1274_v4  ;;  %v1250_v1 = vsel %vm736_vm3, %v1241_v45, 0.0 }
 0x184   : > { %v1249_v59 = vadd.f32 %v1248_v48, %v1247_v40  ;;  %v1223_v0 = vadd.f32 %v1222_v9, %v1221_v41  ;;  %v1252_v2 = vsel %vm736_vm3, %v1242_v56, 0.0  ;;  %2230 = vst [vmem:[%s3072_s12 + $0x88] sm:$0x77] %v1275_v57 }
 0x186   : > { %v1251_v3 = vadd.f32 %v1250_v1, %v1249_v59  ;;  %v1225_v6 = vadd.f32 %v1224_v52, %v1223_v0 }
 0x188   : > { %v1253_v7 = vadd.f32 %v1252_v2, %v1251_v3 }
 0x193   : > { %v1170_v8 = vpop.f32.mrb[20].mxu0  ;;  %v1211_v14 = vpop.f32.mrb[20].mxu1 }
 0x194   : > { %v1226_v10 = vsel %vm736_vm3, %v1170_v8, 0.0  ;;  %v1243_v12 = vmul.f32 %v1170_v8, %v1170_v8  ;;  %v1172_v13 = vpop.f32.mrb[21].mxu0  ;;  %v1213_v20 = vpop.f32.mrb[21].mxu1  ;;  %v1230_v22 = vsel %vm736_vm3, %v1211_v14, 0.0  ;;  %v1245_v23 = vmul.f32 %v1211_v14, %v1211_v14 }
 0x195   : > { %v1227_v15 = vadd.f32 %v1226_v10, %v1225_v6  ;;  %v1228_v16 = vsel %vm736_vm3, %v1172_v13, 0.0  ;;  %v1244_v17 = vmul.f32 %v1172_v13, %v1172_v13  ;;  %v1276_v18 = vcombine.low %v1170_v8, %v1172_v13  ;;  %v1174_v19 = vpop.f32.mrb[22].mxu0  ;;  %v1215_v26 = vpop.f32.mrb[22].mxu1 }
 0x196   : > { %v1254_v21 = vsel %vm736_vm3, %v1243_v12, 0.0  ;;  %v1175_v24 = vpop.f32.mrb[23].mxu0  ;;  %v1246_v25 = vmul.f32 %v1213_v20, %v1213_v20  ;;  %v1277_v30 = vcombine.low %v1211_v14, %v1213_v20  ;;  %v1216_v31 = vpop.f32.mrb[23].mxu1  ;;  %v1232_v32 = vsel %vm736_vm3, %v1213_v20, 0.0 }
 0x197   : > { %v1255_v27 = vadd.f32 %v1254_v21, %v1253_v7  ;;  %v1229_v28 = vadd.f32 %v1228_v16, %v1227_v15  ;;  %v1256_v29 = vsel %vm736_vm3, %v1244_v17, 0.0  ;;  %2231 = vst [vmem:[%s3072_s12 + $0x90] sm:$0x77] %v1276_v18  ;;  %v1258_v33 = vsel %vm736_vm3, %v1245_v23, 0.0 }
 0x198   : > { %2232 = vst [vmem:[%s3072_s12 + $0x98] sm:$0x77] %v1277_v30  ;;  %v1260_v36 = vsel %vm736_vm3, %v1246_v25, 0.0 }
 0x199   : > { %v1231_v34 = vadd.f32 %v1230_v22, %v1229_v28  ;;  %v1257_v35 = vadd.f32 %v1256_v29, %v1255_v27 }
 0x19b   : > { %v1233_v37 = vadd.f32 %v1232_v32, %v1231_v34  ;;  %v1259_v38 = vadd.f32 %v1258_v33, %v1257_v35  ;;  %v735_v34 = vld [vmem:[#allocation3] sm:$0x7] }
 0x19d   : > { %1234 = vadd.xlane.f32.xlu0 %v1233_v37  ;;  %v1261_v39 = vadd.f32 %v1260_v36, %v1259_v38  ;;  %v757_v37 = vld [vmem:[#allocation4] sm:$0x7] }
 0x19f   : > { %1262 = vadd.xlane.f32.xlu1 %v1261_v39 }
 0x1a7   : > { %v1328_v42 = vpop.f32.mrb[24].mxu0  ;;  %v1369_v50 = vpop.f32.mrb[24].mxu1 }
 0x1a8   : > { %v1459_v43 = vsel %vm736_vm3, %v1328_v42, 0.0  ;;  %v1479_v44 = vmul.f32 %v1328_v42, %v1328_v42  ;;  %v1330_v49 = vpop.f32.mrb[25].mxu0  ;;  %v1462_v60 = vsel %vm736_vm3, %v1369_v50, 0.0  ;;  %v1371_v61 = vpop.f32.mrb[25].mxu1  ;;  %v1481_v4 = vmul.f32 %v1369_v50, %v1369_v50 }
 0x1a9   : > { %v1460_v51 = vsel %vm736_vm3, %v1330_v49, 0.0  ;;  %v1480_v53 = vmul.f32 %v1330_v49, %v1330_v49  ;;  %v1514_v54 = vcombine.low %v1328_v42, %v1330_v49  ;;  %v1332_v55 = vpop.f32.mrb[26].mxu0  ;;  %v1373_v9 = vpop.f32.mrb[26].mxu1  ;;  %v1464_v40 = vsel %vm736_vm3, %v1371_v61, 0.0 }
 0x1aa   : > { %v1487_v62 = vsel %vm736_vm3, %v1479_v44, 0.0  ;;  %v1461_v63 = vadd.f32 %v1460_v51, %v1459_v43  ;;  %v1333_v5 = vpop.f32.mrb[27].mxu0  ;;  %v1482_v41 = vmul.f32 %v1371_v61, %v1371_v61  ;;  %v1515_v45 = vcombine.low %v1369_v50, %v1371_v61  ;;  %v1374_v46 = vpop.f32.mrb[27].mxu1 }
 0x1ab   : > { %v1488_v11 = vsel %vm736_vm3, %v1480_v53, 0.0  ;;  %2243 = vst [vmem:[%s3072_s12 + $0xc0] sm:$0x77] %v1514_v54  ;;  %v1490_v52 = vsel %vm736_vm3, %v1481_v4, 0.0 }
 0x1ac   : > { %v1489_v47 = vadd.f32 %v1488_v11, %v1487_v62  ;;  %v1463_v48 = vadd.f32 %v1462_v60, %v1461_v63  ;;  %v1492_v56 = vsel %vm736_vm3, %v1482_v41, 0.0  ;;  %2244 = vst [vmem:[%s3072_s12 + $0xc8] sm:$0x77] %v1515_v45 }
 0x1ae   : > { %v1491_v57 = vadd.f32 %v1490_v52, %v1489_v47  ;;  %v1465_v58 = vadd.f32 %v1464_v40, %v1463_v48 }
 0x1b0   : > { %v1493_v59 = vadd.f32 %v1492_v56, %v1491_v57 }
 0x1bb   : > { %v1410_v0 = vpop.f32.mrb[28].mxu0  ;;  %v1451_v6 = vpop.f32.mrb[28].mxu1 }
 0x1bc   : > { %v1466_v1 = vsel %vm736_vm3, %v1410_v0, 0.0  ;;  %v1483_v2 = vmul.f32 %v1410_v0, %v1410_v0  ;;  %v1412_v3 = vpop.f32.mrb[29].mxu0  ;;  %v1453_v14 = vpop.f32.mrb[29].mxu1  ;;  %v1470_v16 = vsel %vm736_vm3, %v1451_v6, 0.0  ;;  %v1485_v17 = vmul.f32 %v1451_v6, %v1451_v6 }
 0x1bd   : > { %v1467_v7 = vadd.f32 %v1466_v1, %v1465_v58  ;;  %v1468_v8 = vsel %vm736_vm3, %v1412_v3, 0.0  ;;  %v1484_v10 = vmul.f32 %v1412_v3, %v1412_v3  ;;  %v1516_v12 = vcombine.low %v1410_v0, %v1412_v3  ;;  %v1414_v13 = vpop.f32.mrb[30].mxu0  ;;  %v1455_v19 = vpop.f32.mrb[30].mxu1 }
 0x1be   : > { %v1494_v15 = vsel %vm736_vm3, %v1483_v2, 0.0  ;;  %v1415_v18 = vpop.f32.mrb[31].mxu0  ;;  %v1517_v23 = vcombine.low %v1451_v6, %v1453_v14  ;;  %v1456_v24 = vpop.f32.mrb[31].mxu1  ;;  %v1486_v25 = vmul.f32 %v1453_v14, %v1453_v14  ;;  %v1498_v26 = vsel %vm736_vm3, %v1485_v17, 0.0 }
 0x1bf   : > { %v1495_v20 = vadd.f32 %v1494_v15, %v1493_v59  ;;  %v1469_v21 = vadd.f32 %v1468_v8, %v1467_v7  ;;  %v1496_v22 = vsel %vm736_vm3, %v1484_v10, 0.0  ;;  %2245 = vst [vmem:[%s3072_s12 + $0xd0] sm:$0x77] %v1516_v12  ;;  %v1472_v29 = vsel %vm736_vm3, %v1453_v14, 0.0 }
 0x1c0   : > { %2246 = vst [vmem:[%s3072_s12 + $0xd8] sm:$0x77] %v1517_v23  ;;  %v1500_v32 = vsel %vm736_vm3, %v1486_v25, 0.0 }
 0x1c1   : > { %v1471_v27 = vadd.f32 %v1470_v16, %v1469_v21  ;;  %v1497_v28 = vadd.f32 %v1496_v22, %v1495_v20 }
 0x1c3   : > { %v1473_v30 = vadd.f32 %v1472_v29, %v1471_v27  ;;  %v1499_v31 = vadd.f32 %v1498_v26, %v1497_v28 }
 0x1c5   : > { %1474 = vadd.xlane.f32.xlu0 %v1473_v30  ;;  %v1501_v33 = vadd.f32 %v1500_v32, %v1499_v31 }
 0x1c7   : > { %1502 = vadd.xlane.f32.xlu1 %v1501_v33 }
 0x1da   : > { %v753_v35 = vpop.xlane.xlu0 %752 }
 0x1db   : > { %v754_v36 = vadd.f32 %v753_v35, %v735_v34 }
 0x1dd   : > { %756 = vst.msk [vmem:[#allocation3] sm:$0x7] %vm755_vm4, %v754_v36 }
 0x1de   : > { %v782_v38 = vpop.xlane.xlu0 %781 }
 0x1df   : > { %v783_v39 = vadd.f32 %v782_v38, %v757_v37 }
 0x1e1   : > { %784 = vst.msk [vmem:[#allocation4] sm:$0x7] %vm755_vm4, %v783_v39 }
 0x1e4   : > { %v978_v42 = vld [vmem:[#allocation3] sm:$0x7] }
 0x1e8   : > { %v998_v49 = vld [vmem:[#allocation4] sm:$0x7] }
 0x202   : > { %v995_v43 = vpop.xlane.xlu1 %994 }
 0x203   : > { %v996_v44 = vadd.f32 %v995_v43, %v978_v42 }
 0x205   : > { %997 = vst.msk [vmem:[#allocation3] sm:$0x7] %vm755_vm4, %v996_v44 }
 0x206   : > { %v1023_v50 = vpop.xlane.xlu1 %1022 }
 0x207   : > { %v1024_v51 = vadd.f32 %v1023_v50, %v998_v49 }
 0x209   : > { %1025 = vst.msk [vmem:[#allocation4] sm:$0x7] %vm755_vm4, %v1024_v51 }
 0x20c   : > { %v1218_v53 = vld [vmem:[#allocation3] sm:$0x7] }
 0x210   : > { %v1238_v60 = vld [vmem:[#allocation4] sm:$0x7] }
 0x22a   : > { %v1235_v54 = vpop.xlane.xlu0 %1234 }
 0x22b   : > { %v1236_v55 = vadd.f32 %v1235_v54, %v1218_v53 }
 0x22c   : > { %v1263_v61 = vpop.xlane.xlu1 %1262 }
 0x22d   : > { %1237 = vst.msk [vmem:[#allocation3] sm:$0x7] %vm755_vm4, %v1236_v55  ;;  %v1264_v62 = vadd.f32 %v1263_v61, %v1238_v60 }
 0x22f   : > { %1265 = vst.msk [vmem:[#allocation4] sm:$0x7] %vm755_vm4, %v1264_v62 }
 0x234   : > { %v1458_v63 = vld [vmem:[#allocation3] sm:$0x7] }
 0x236   : > { %v1478_v9 = vld [vmem:[#allocation4] sm:$0x7] }
 0x252   : > { %v1475_v4 = vpop.xlane.xlu0 %1474 }
 0x253   : > { %v1476_v5 = vadd.f32 %v1475_v4, %v1458_v63 }
 0x254   : > { %v1503_v11 = vpop.xlane.xlu1 %1502 }
 0x255   : > { %1477 = vst.msk [vmem:[#allocation3] sm:$0x7] %vm755_vm4, %v1476_v5  ;;  %v1504_v40 = vadd.f32 %v1503_v11, %v1478_v9 }
 0x257   : > { %1505 = vst.msk [vmem:[#allocation4] sm:$0x7] %vm755_vm4, %v1504_v40 }
 0x258 PF: > { %p1529_p4 = scmp.eq.s32.totalorder %s2500_s20, 1 }
 0x25a   : > { %p1530_p5 = pnand %p1529_p4, %p314_p1 }
 0x25b   : > { %v1542_v57 = vld [vmem:[%s3312_s2] sm:$0x7] (!%p1530_p5)  ;;  %vm1544_vm5 = vcmask (!%p1530_p5), 2048  }
 0x25c   : > { %1533 = sbr.rel (%p1530_p5) target bundleno = 631 (0x277), region = 71  ;;  %v1534_v41 = vld [vmem:[#allocation3] sm:$0x7] (!%p1530_p5) }
 0x25d   : > { %v1535_v46 = vmul.f32 (!%p1530_p5), 0.00015625, %v1534_v41  ;;  %v1546_v0 = vld [vmem:[%s3313_s3] sm:$0x7] (!%p1530_p5) }
 0x25e   : > { %v1536_v45 = vld [vmem:[#allocation4] sm:$0x7] (!%p1530_p5) }
 0x25f   : > { %v1537_v47 = vmul.f32 (!%p1530_p5), 0.00015625, %v1536_v45  ;;  %v1538_v48 = vmul.f32 (!%p1530_p5), %v1535_v46, %v1535_v46 }
 0x261   : > { %v1539_v52 = vsub.f32 (!%p1530_p5), %v1537_v47, %v1538_v48 }
 0x263   : > { %v1540_v56 = vadd.f32 1e-05, %v1539_v52 }
 0x265   : > { %2375 = vrsqrt.f32 %v1540_v56 }
 0x26f   : > { %v2376_v58 = vpop.eup %2375 }
 0x270   : > { %v1543_v59 = vmul.f32 %v2376_v58, %v1542_v57 }
 0x272   : > { %1545 = vst.msk [vmem:[#allocation5] sm:$0x7] %vm1544_vm5, %v1543_v59  ;;  %v1547_v1 = vmul.f32 %v1543_v59, %v1535_v46 }
 0x274   : > { %v1548_v2 = vsub.f32 %v1546_v0, %v1547_v1 }
 0x276   : > { %1549 = vst.msk [vmem:[#allocation6] sm:$0x7] %vm1544_vm5, %v1548_v2 }
 0x277 PF: > { %p2247_p6 = scmp.ne.s32.totalorder %s2500_s20, 1 }
 0x278   : > { %v2516_v6 = vmov (!%p2247_p6), 0   ;;  %v2517_v8 = vmov (!%p2247_p6), 839922192   ;;  %v1581_v12 = vlaneseq (!%p2247_p6)  ;;  %s1553_s9 = sshra.s32 (!%p2247_p6), %s2154_s13, 7  ;;  %vm1983_vm6 = vcmask (!%p2247_p6), 1041408  }
 0x279   : > { %1552 = sbr.rel (%p2247_p6) target bundleno = 824 (0x338), region = 75  ;;  %v1573_v3 = vld [vmem:[#allocation5] sm:$0x7] (!%p2247_p6)  ;;  %2377 = vset.pattern.permute.xlu0 (!%p2247_p6), %v2516_v6  ;;  %v1579_v10 = vunpack.c.l.s4 (!%p2247_p6), %v2517_v8  ;;  %s2248_s10 = sshll.u32 (!%p2247_p6), %s1553_s9, 2  ;;  %vm1984_vm7 = vsmask.f32 (!%p2247_p6), 1280 }
 0x27a   : > { %1576 = vperm.xlu0 (!%p2247_p6), %2377, %v1573_v3   ;;  %v3167_v14 = vshrl.u32 (!%p2247_p6), %v1581_v12, 7  ;;  %s3172_s11 = scalar_lea.vmem (!%p2247_p6), [#allocation2], %s2248_s10  ;;  %vm1986_vm8 = vcmask (!%p2247_p6), 1043458   ;;  %vm1987_vm9 = vsmask.f32 (!%p2247_p6), 3328  ;;  %vm3190_vm10 = vmand (!%p2247_p6), %vm1983_vm6, %vm1984_vm7  ;;  %vm1990_vm12 = vcmask (!%p2247_p6), 1045508  }
 0x27b   : > { %v1580_v13 = vunpack.c.0.s8 (!%p2247_p6), %v1579_v10  ;;  %v1557_v18 = vld [vmem:[%s3172_s11] sm:$0x77] (!%p2247_p6)  ;;  %v1558_v19 = vld [vmem:[%s3172_s11 + $0x8] sm:$0x77] (!%p2247_p6)  ;;  %v1559_v20 = vld [vmem:[%s3172_s11 + $0x10] sm:$0x77] (!%p2247_p6) }
 0x27c   : > { %v1560_v22 = vld [vmem:[%s3172_s11 + $0x18] sm:$0x77] (!%p2247_p6)  ;;  %v1561_v23 = vld [vmem:[%s3172_s11 + $0x40] sm:$0x77] (!%p2247_p6)  ;;  %v1562_v24 = vld [vmem:[%s3172_s11 + $0x48] sm:$0x77] (!%p2247_p6) }
 0x27d   : > { %v1602_v7 = vld [vmem:[#allocation6] sm:$0x7] (!%p2247_p6)  ;;  %v1583_v15 = vsub.s32 (!%p2247_p6), %v1580_v13, %v3167_v14  ;;  %v1563_v29 = vld [vmem:[%s3172_s11 + $0x50] sm:$0x77] (!%p2247_p6)  ;;  %v1564_v31 = vld [vmem:[%s3172_s11 + $0x58] sm:$0x77] (!%p2247_p6) }
 0x27e   : > { %1605 = vperm.xlu0 (!%p2247_p6), %2377, %v1602_v7   ;;  %v1565_v32 = vld [vmem:[%s3172_s11 + $0x80] sm:$0x77] (!%p2247_p6)  ;;  %v1566_v39 = vld [vmem:[%s3172_s11 + $0x88] sm:$0x77] (!%p2247_p6)  ;;  %v1567_v44 = vld [vmem:[%s3172_s11 + $0x90] sm:$0x77] (!%p2247_p6) }
 0x27f   : > { %v1568_v49 = vld [vmem:[%s3172_s11 + $0x98] sm:$0x77] (!%p2247_p6)  ;;  %v1569_v62 = vld [vmem:[%s3172_s11 + $0xc0] sm:$0x77] (!%p2247_p6)  ;;  %v1570_v9 = vld [vmem:[%s3172_s11 + $0xc8] sm:$0x77] (!%p2247_p6) }
 0x280   : > { %v1571_v45 = vld [vmem:[%s3172_s11 + $0xd0] sm:$0x77]  ;;  %v1572_v52 = vld [vmem:[%s3172_s11 + $0xd8] sm:$0x77]  ;;  %vm3194_vm11 = vmand %vm1986_vm8, %vm1987_vm9  ;;  %vm1991_vm13 = vsmask.f32 5376 }
 0x281   : > { %vm1989_vm14 = vmor %vm3194_vm11, %vm3190_vm10  ;;  %vm1994_vm0 = vcmask 1047558   ;;  %vm1995_vm1 = vsmask.f32 7424 }
 0x282   : > { %vm1992_vm15 = vmand %vm1990_vm12, %vm1991_vm13 }
 0x283   : > { %vm3210_vm2 = vmor %vm1992_vm15, %vm1989_vm14 }
 0x284   : > { %vm1996_vm3 = vmand %vm1994_vm0, %vm1995_vm1 }
 0x285   : > { %vm3219_vm4 = vmor %vm1996_vm3, %vm3210_vm2 }
 0x2f9   : > { %v1577_v16 = vpop.permute.xlu0 %1576 }
 0x2fa   : > { %v1584_v17 = vrot.slane %v1577_v16, %v1583_v15 }
 0x2fc   : > { %v1586_v25 = vmul.f32 %v1584_v17, %v1557_v18  ;;  %v1587_v26 = vmul.f32 %v1584_v17, %v1558_v19  ;;  %v1588_v27 = vmul.f32 %v1584_v17, %v1559_v20  ;;  %v1589_v30 = vmul.f32 %v1584_v17, %v1560_v22 }
 0x2fd   : > { %v1606_v21 = vpop.permute.xlu0 %1605  ;;  %v1590_v33 = vmul.f32 %v1584_v17, %v1561_v23  ;;  %v1591_v37 = vmul.f32 %v1584_v17, %v1562_v24  ;;  %v1592_v42 = vmul.f32 %v1584_v17, %v1563_v29  ;;  %v1593_v50 = vmul.f32 %v1584_v17, %v1564_v31 }
 0x2fe   : > { %v1613_v28 = vrot.slane %v1606_v21, %v1583_v15  ;;  %v1594_v51 = vmul.f32 %v1584_v17, %v1565_v32  ;;  %v1595_v63 = vmul.f32 %v1584_v17, %v1566_v39  ;;  %v1596_v11 = vmul.f32 %v1584_v17, %v1567_v44 }
 0x2ff   : > { %v1597_v46 = vmul.f32 %v1584_v17, %v1568_v49  ;;  %v1598_v56 = vmul.f32 %v1584_v17, %v1569_v62  ;;  %v1599_v59 = vmul.f32 %v1584_v17, %v1570_v9  ;;  %v1600_v2 = vmul.f32 %v1584_v17, %v1571_v45 }
 0x300   : > { %v1615_v34 = vadd.f32 %v1613_v28, %v1586_v25  ;;  %v1616_v35 = vadd.f32 %v1613_v28, %v1587_v26  ;;  %v1617_v36 = vadd.f32 %v1613_v28, %v1588_v27  ;;  %v1618_v38 = vadd.f32 %v1613_v28, %v1589_v30 }
 0x301   : > { %v1619_v43 = vadd.f32 %v1613_v28, %v1590_v33  ;;  %v1620_v53 = vadd.f32 %v1613_v28, %v1591_v37  ;;  %v1621_v54 = vadd.f32 %v1613_v28, %v1592_v42  ;;  %v1622_v4 = vadd.f32 %v1613_v28, %v1593_v50 }
 0x302   : > { %v2249_v55 = vmul.f32 -1.442695, %v1615_v34  ;;  %v2250_v60 = vmul.f32 -1.442695, %v1616_v35  ;;  %v2251_v61 = vmul.f32 -1.442695, %v1617_v36  ;;  %v1623_v40 = vadd.f32 %v1613_v28, %v1594_v51 }
 0x303   : > { %v2252_v5 = vmul.f32 -1.442695, %v1618_v38  ;;  %v2253_v41 = vmul.f32 -1.442695, %v1619_v43  ;;  %v1624_v47 = vadd.f32 %v1613_v28, %v1595_v63  ;;  %v2254_v48 = vmul.f32 -1.442695, %v1620_v53 }
 0x304   : > { %2378 = vpow2.f32 %v2249_v55  ;;  %v1625_v57 = vadd.f32 %v1613_v28, %v1596_v11  ;;  %v2255_v58 = vmul.f32 -1.442695, %v1621_v54  ;;  %v1626_v0 = vadd.f32 %v1613_v28, %v1597_v46 }
 0x305   : > { %2380 = vpow2.f32 %v2250_v60  ;;  %v2256_v1 = vmul.f32 -1.442695, %v1622_v4  ;;  %v1627_v3 = vadd.f32 %v1613_v28, %v1598_v56  ;;  %v2257_v6 = vmul.f32 -1.442695, %v1623_v40 }
 0x306   : > { %2382 = vpow2.f32 %v2251_v61  ;;  %v1601_v7 = vmul.f32 %v1584_v17, %v1572_v52  ;;  %v1628_v8 = vadd.f32 %v1613_v28, %v1599_v59  ;;  %v2258_v10 = vmul.f32 -1.442695, %v1624_v47 }
 0x307   : > { %2384 = vpow2.f32 %v2252_v5  ;;  %v1629_v12 = vadd.f32 %v1613_v28, %v1600_v2  ;;  %v2259_v13 = vmul.f32 -1.442695, %v1625_v57  ;;  %v2260_v16 = vmul.f32 -1.442695, %v1626_v0 }
 0x308   : > { %2386 = vpow2.f32 %v2253_v41  ;;  %v1630_v15 = vadd.f32 %v1613_v28, %v1601_v7  ;;  %v2261_v18 = vmul.f32 -1.442695, %v1627_v3  ;;  %v2262_v19 = vmul.f32 -1.442695, %v1628_v8 }
 0x309   : > { %2388 = vpow2.f32 %v2254_v48  ;;  %v2263_v21 = vmul.f32 -1.442695, %v1629_v12  ;;  %v2518_v36 = vmov 1983009808  }
 0x30a   : > { %2390 = vpow2.f32 %v2255_v58  ;;  %v2264_v23 = vmul.f32 -1.442695, %v1630_v15  ;;  %v1842_v37 = vunpack.c.l.s4 %v2518_v36 }
 0x30b   : > { %2392 = vpow2.f32 %v2256_v1 }
 0x30c   : > { %2394 = vpow2.f32 %v2257_v6  ;;  %v1843_v60 = vunpack.c.0.s8 %v1842_v37 }
 0x30d   : > { %2396 = vpow2.f32 %v2258_v10 }
 0x30e   : > { %v2379_v20 = vpop.eup %2378  ;;  %2398 = vpow2.f32 %v2259_v13  ;;  %v3203_v45 = vsub.s32 %v1843_v60, %v3167_v14 }
 0x30f   : > { %v2381_v22 = vpop.eup %2380  ;;  %2400 = vpow2.f32 %v2260_v16  ;;  %v1679_v24 = vadd.f32 1.0, %v2379_v20 }
 0x310   : > { %v2383_v17 = vpop.eup %2382  ;;  %2402 = vpow2.f32 %v2261_v18  ;;  %v1680_v26 = vadd.f32 1.0, %v2381_v22  ;;  %v1998_v22 = vld [vmem:[%s2722_s5] sm:$0xff] }
 0x311   : > { %v2385_v25 = vpop.eup %2384  ;;  %2404 = vpow2.f32 %v2262_v19  ;;  %v1681_v28 = vadd.f32 1.0, %v2383_v17 }
 0x312   : > { %v2387_v27 = vpop.eup %2386  ;;  %2406 = vpow2.f32 %v2263_v21  ;;  %v1682_v30 = vadd.f32 1.0, %v2385_v25 }
 0x313   : > { %v2389_v29 = vpop.eup %2388  ;;  %2408 = vpow2.f32 %v2264_v23  ;;  %v1683_v32 = vadd.f32 1.0, %v2387_v27 }
 0x314   : > { %v2391_v31 = vpop.eup %2390  ;;  %2410 = vrcp.f32 %v1679_v24  ;;  %v1684_v34 = vadd.f32 1.0, %v2389_v29 }
 0x315   : > { %v2393_v33 = vpop.eup %2392  ;;  %2412 = vrcp.f32 %v1680_v26  ;;  %v1685_v38 = vadd.f32 1.0, %v2391_v31  ;;  %v2001_v31 = vld [vmem:[%s2722_s5 + $0x8] sm:$0xff] }
 0x316   : > { %v2395_v35 = vpop.eup %2394  ;;  %2414 = vrcp.f32 %v1681_v28  ;;  %v1686_v42 = vadd.f32 1.0, %v2393_v33 }
 0x317   : > { %v2397_v39 = vpop.eup %2396  ;;  %2416 = vrcp.f32 %v1682_v30  ;;  %v1687_v44 = vadd.f32 1.0, %v2395_v35 }
 0x318   : > { %v2399_v43 = vpop.eup %2398  ;;  %2418 = vrcp.f32 %v1683_v32  ;;  %v1688_v50 = vadd.f32 1.0, %v2397_v39 }
 0x319   : > { %v2401_v49 = vpop.eup %2400  ;;  %2420 = vrcp.f32 %v1684_v34  ;;  %v1689_v54 = vadd.f32 1.0, %v2399_v43 }
 0x31a   : > { %v2403_v51 = vpop.eup %2402  ;;  %2422 = vrcp.f32 %v1685_v38  ;;  %v1690_v62 = vadd.f32 1.0, %v2401_v49 }
 0x31b   : > { %v2405_v55 = vpop.eup %2404  ;;  %2424 = vrcp.f32 %v1686_v42  ;;  %v1691_v4 = vadd.f32 1.0, %v2403_v51 }
 0x31c   : > { %v2407_v63 = vpop.eup %2406  ;;  %2426 = vrcp.f32 %v1687_v44  ;;  %v1692_v9 = vadd.f32 1.0, %v2405_v55  ;;  %v2004_v44 = vld [vmem:[%s2722_s5 + $0x10] sm:$0xff] }
 0x31d   : > { %v2409_v5 = vpop.eup %2408  ;;  %2428 = vrcp.f32 %v1688_v50  ;;  %v1693_v40 = vadd.f32 1.0, %v2407_v63 }
 0x31e   : > { %v2411_v11 = vpop.eup %2410  ;;  %2430 = vrcp.f32 %v1689_v54  ;;  %v1694_v46 = vadd.f32 1.0, %v2409_v5 }
 0x31f   : > { %v2413_v41 = vpop.eup %2412  ;;  %2432 = vrcp.f32 %v1690_v62  ;;  %v1743_v47 = vcombine.high %v2411_v11, %v2411_v11 }
 0x320   : > { %v2415_v48 = vpop.eup %2414  ;;  %2434 = vrcp.f32 %v1691_v4  ;;  %v1744_v52 = vcombine.high %v2413_v41, %v2413_v41  ;;  %v2007_v4 = vld [vmem:[%s2722_s5 + $0x18] sm:$0xff] }
 0x321   : > { %v2417_v56 = vpop.eup %2416  ;;  %2436 = vrcp.f32 %v1692_v9  ;;  %v1745_v57 = vcombine.high %v2415_v48, %v2415_v48  ;;  %v2265_v58 = vpack.c.bf16 %v1743_v47, %v2411_v11 }
 0x322   : > { %v2419_v59 = vpop.eup %2418  ;;  %2438 = vrcp.f32 %v1693_v40  ;;  %v1746_v0 = vcombine.high %v2417_v56, %v2417_v56  ;;  %v2266_v1 = vpack.c.bf16 %v1744_v52, %v2413_v41 }
 0x323   : > { %v2421_v2 = vpop.eup %2420  ;;  %2440 = vrcp.f32 %v1694_v46  ;;  %v1747_v3 = vcombine.high %v2419_v59, %v2419_v59  ;;  %v1847_v6 = vrot.slane %v2265_v58, %v3203_v45  ;;  %v2267_v7 = vpack.c.bf16 %v1745_v57, %v2415_v48  ;;  %v2010_v46 = vld [vmem:[%s2722_s5 + $0x20] sm:$0xff] }
 0x324   : > { %v2423_v8 = vpop.eup %2422  ;;  %v1748_v10 = vcombine.high %v2421_v2, %v2421_v2  ;;  %v1854_v12 = vrot.slane %v2266_v1, %v3203_v45  ;;  %v2268_v13 = vpack.c.bf16 %v1746_v0, %v2417_v56  ;;  %v2013_v0 = vld [vmem:[%s2722_s5 + $0x28] sm:$0xff] }
 0x325   : > { %v2425_v15 = vpop.eup %2424  ;;  %v1749_v16 = vcombine.high %v2423_v8, %v2423_v8  ;;  %v1864_v18 = vrot.slane %v2267_v7, %v3203_v45  ;;  %v2269_v19 = vpack.c.bf16 %v1747_v3, %v2419_v59 }
 0x326   : > { %v2427_v20 = vpop.eup %2426  ;;  %v1750_v23 = vcombine.high %v2425_v15, %v2425_v15  ;;  %v1855_v17 = vcombine.low %v1847_v6, %v1854_v12  ;;  %v1871_v24 = vrot.slane %v2268_v13, %v3203_v45  ;;  %v2270_v25 = vpack.c.bf16 %v1748_v10, %v2421_v2  ;;  %v2016_v12 = vld [vmem:[%s2722_s5 + $0x30] sm:$0xff] }
 0x327   : > { %v2429_v26 = vpop.eup %2428  ;;  %v1751_v27 = vcombine.high %v2427_v20, %v2427_v20  ;;  %v1881_v28 = vrot.slane %v2269_v19, %v3203_v45  ;;  %v2271_v29 = vpack.c.bf16 %v1749_v16, %v2423_v8  ;;  %v2019_v19 = vld [vmem:[%s2722_s5 + $0x38] sm:$0xff] }
 0x328   : > { %v2431_v30 = vpop.eup %2430  ;;  %v1752_v32 = vcombine.high %v2429_v26, %v2429_v26  ;;  %v1872_v33 = vcombine.low %v1864_v18, %v1871_v24  ;;  %v1888_v34 = vrot.slane %v2270_v25, %v3203_v45  ;;  %v2272_v35 = vpack.c.bf16 %v1750_v23, %v2425_v15 }
 0x329   : > { %v2433_v36 = vpop.eup %2432  ;;  %v1753_v37 = vcombine.high %v2431_v30, %v2431_v30  ;;  %v1898_v38 = vrot.slane %v2271_v29, %v3203_v45  ;;  %v2273_v39 = vpack.c.bf16 %v1751_v27, %v2427_v20  ;;  %v1999_v42 = vsel %vm3219_vm4, %v1855_v17, %v1998_v22 }
 0x32a   : > { %v2435_v43 = vpop.eup %2434  ;;  %v1754_v49 = vcombine.high %v2433_v36, %v2433_v36  ;;  %v1889_v50 = vcombine.low %v1881_v28, %v1888_v34  ;;  %v1905_v51 = vrot.slane %v2272_v35, %v3203_v45  ;;  %v2274_v53 = vpack.c.bf16 %v1752_v32, %v2429_v26  ;;  %2000 = vst [vmem:[%s2722_s5] sm:$0xff] %v1999_v42 }
 0x32b   : > { %v2437_v54 = vpop.eup %2436  ;;  %v1755_v55 = vcombine.high %v2435_v43, %v2435_v43  ;;  %v1915_v60 = vrot.slane %v2273_v39, %v3203_v45  ;;  %v2275_v61 = vpack.c.bf16 %v1753_v37, %v2431_v30  ;;  %v2002_v62 = vsel %vm3219_vm4, %v1872_v33, %v2001_v31 }
 0x32c   : > { %v2439_v63 = vpop.eup %2438  ;;  %v1756_v5 = vcombine.high %v2437_v54, %v2437_v54  ;;  %v1906_v9 = vcombine.low %v1898_v38, %v1905_v51  ;;  %v1922_v11 = vrot.slane %v2274_v53, %v3203_v45  ;;  %v2276_v40 = vpack.c.bf16 %v1754_v49, %v2433_v36  ;;  %2003 = vst [vmem:[%s2722_s5 + $0x8] sm:$0xff] %v2002_v62 }
 0x32d   : > { %v2441_v41 = vpop.eup %2440  ;;  %v1757_v47 = vcombine.high %v2439_v63, %v2439_v63  ;;  %v1932_v48 = vrot.slane %v2275_v61, %v3203_v45  ;;  %v2277_v52 = vpack.c.bf16 %v1755_v55, %v2435_v43  ;;  %v2005_v56 = vsel %vm3219_vm4, %v1889_v50, %v2004_v44 }
 0x32e   : > { %v1758_v57 = vcombine.high %v2441_v41, %v2441_v41  ;;  %v1923_v58 = vcombine.low %v1915_v60, %v1922_v11  ;;  %v1939_v59 = vrot.slane %v2276_v40, %v3203_v45  ;;  %v2278_v14 = vpack.c.bf16 %v1756_v5, %v2437_v54  ;;  %2006 = vst [vmem:[%s2722_s5 + $0x10] sm:$0xff] %v2005_v56 }
 0x32f   : > { %v1949_v1 = vrot.slane %v2277_v52, %v3203_v45  ;;  %v2279_v2 = vpack.c.bf16 %v1757_v47, %v2439_v63  ;;  %v2008_v3 = vsel %vm3219_vm4, %v1906_v9, %v2007_v4 }
 0x330   : > { %v1940_v6 = vcombine.low %v1932_v48, %v1939_v59  ;;  %v1956_v7 = vrot.slane %v2278_v14, %v3203_v45  ;;  %v2280_v8 = vpack.c.bf16 %v1758_v57, %v2441_v41  ;;  %2009 = vst [vmem:[%s2722_s5 + $0x18] sm:$0xff] %v2008_v3  ;;  %v2011_v10 = vsel %vm3219_vm4, %v1923_v58, %v2010_v46 }
 0x331   : > { %v1966_v13 = vrot.slane %v2279_v2, %v3203_v45  ;;  %2012 = vst [vmem:[%s2722_s5 + $0x20] sm:$0xff] %v2011_v10 }
 0x332   : > { %v1957_v15 = vcombine.low %v1949_v1, %v1956_v7  ;;  %v1973_v16 = vrot.slane %v2280_v8, %v3203_v45  ;;  %v2014_v18 = vsel %vm3219_vm4, %v1940_v6, %v2013_v0 }
 0x333   : > { %2015 = vst [vmem:[%s2722_s5 + $0x28] sm:$0xff] %v2014_v18 }
 0x334   : > { %v1974_v20 = vcombine.low %v1966_v13, %v1973_v16  ;;  %v2017_v22 = vsel %vm3219_vm4, %v1957_v15, %v2016_v12 }
 0x335   : > { %2018 = vst [vmem:[%s2722_s5 + $0x30] sm:$0xff] %v2017_v22 }
 0x336   : > { %v2020_v23 = vsel %vm3219_vm4, %v1974_v20, %v2019_v19 }
 0x337   : > { %2021 = vst [vmem:[%s2722_s5 + $0x38] sm:$0xff] %v2020_v23 }
 0x338 PF: > { %2028 = sbr.rel (!%p2618_p8) target bundleno = 833 (0x341), region = 79  ;;  %v2045_v45 = vld [vmem:[%s2722_s5] sm:$0xff] (%p2618_p8)  ;;  %v2047_v17 = vld [vmem:[%s2722_s5 + $0x8] sm:$0xff] (%p2618_p8)  ;;  %v2049_v21 = vld [vmem:[%s2722_s5 + $0x10] sm:$0xff] (%p2618_p8) }
 0x339   : > { %s2029_s13 = smul.u32 (%p2618_p8), %s2496_s19, %s2500_s20  ;;  %v2051_v24 = vld [vmem:[%s2722_s5 + $0x18] sm:$0xff] (%p2618_p8)  ;;  %v2053_v25 = vld [vmem:[%s2722_s5 + $0x20] sm:$0xff] (%p2618_p8) }
 0x33a   : > { %v2055_v26 = vld [vmem:[%s2722_s5 + $0x28] sm:$0xff] (%p2618_p8) }
 0x33b   : > { %s2287_s28 = sshll.u32 (%p2618_p8), %s2029_s13, 4 }
 0x33c   : > { %v2057_v27 = vld [vmem:[%s2722_s5 + $0x30] sm:$0xff] (%p2618_p8)  ;;  %s2032_s6 = scalar_lea.vmem (%p2618_p8), %s3314_s4, %s2287_s28 }
 0x33d   : > { %2046 = vst [vmem:[%s2032_s6] sm:$0xff] (%p2618_p8), %v2045_v45  ;;  %2048 = vst [vmem:[%s2032_s6 + $0x8] sm:$0xff] (%p2618_p8), %v2047_v17 }
 0x33e   : > { %v2059_v28 = vld [vmem:[%s2722_s5 + $0x38] sm:$0xff] (%p2618_p8)  ;;  %2050 = vst [vmem:[%s2032_s6 + $0x20] sm:$0xff] (%p2618_p8), %v2049_v21  ;;  %2052 = vst [vmem:[%s2032_s6 + $0x28] sm:$0xff] (%p2618_p8), %v2051_v24 }
 0x33f   : > { %2054 = vst [vmem:[%s2032_s6 + $0x40] sm:$0xff] %v2053_v25  ;;  %2056 = vst [vmem:[%s2032_s6 + $0x48] sm:$0xff] %v2055_v26 }
 0x340   : > { %2058 = vst [vmem:[%s2032_s6 + $0x60] sm:$0xff] %v2057_v27  ;;  %2060 = vst [vmem:[%s2032_s6 + $0x68] sm:$0xff] %v2059_v28 }
 0x341 PF: > { %s14_s23 = sadd.s32 1, %s2512_s23   ;;  %s3325_s15 = smov %s2484_s16 }
 0x342   : > { %p11_p7 = scmp.ge.s32.totalorder %s14_s23, 6   ;;  %s3326_s16 = smov %s2623_s27 }
 0x343   : > { %s3327_s17 = smov %s2492_s18  ;;  %s3328_s18 = smov %s2626_s29 }
 0x344   : > { %s3329_s19 = smov %s2504_s21  ;;  %s3330_s20 = smov %s2508_s22 }
 0x345   : > { %s3331_s21 = smov %s3334_s25  ;;  %s3332_s22 = smov %s3338_s26 }
 0x346   :  { %13 = sbr.rel (!%p11_p7) target bundleno = 5 (0x5), region = 141 }

</bundles_post_ra>
